<compile_context>
chip_gen: v6e
topology: v6e:2x2x1
jax: 0.10.0
libtpu: 0.0.40
codegen_flags: <defaults>
</compile_context>

<pallas_src>
import jax
import jax.numpy as jnp
from jax.experimental import pallas as pl
from jax.experimental.pallas import tpu as pltpu


# ---------------------------------------------------------------------------
# Pallas channel-major matmul:  out (P, M) = W (P, K) @ A (K, M) [+b] [tanh]
# ---------------------------------------------------------------------------
def _make_kernel(has_bias, activation):
    def kernel(*refs):
        idx = 0
        w_ref = refs[idx]; idx += 1
        a_ref = refs[idx]; idx += 1
        bias_ref = None
        if has_bias:
            bias_ref = refs[idx]; idx += 1
        o_ref = refs[idx]

        acc = jnp.dot(w_ref[...], a_ref[...],
                      preferred_element_type=jnp.float32)   # (P, tm) f32
        if has_bias:
            acc = acc + bias_ref[...]                        # (P,1) -> lanes
        if activation == "tanh":
            acc = jnp.tanh(acc)
        o_ref[...] = acc.astype(o_ref.dtype)
    return kernel


def _fits_vmem(tm, K, P):
    # double-buffered bf16 A tile + f32-epilogue out tile + resident weights
    return 2 * (K * tm * 2) + 2 * (P * tm * 4) + K * P * 2 <= (12 << 20)


def _pick_m_tiling(M, K, P):
    """Return (grid_m, tm) with tm a multiple of 128 or the full (ragged) M."""
    if _fits_vmem(M, K, P):
        # Big, evenly-splittable layers: 2 balanced steps so both v7x
        # TensorCores get work; everything else: single full-M block
        # (zero per-step overhead on the 1-TC v5e / v6e chips).
        if M >= 2048 and M % 256 == 0 and _fits_vmem(M // 2, K, P):
            return 2, M // 2
        return 1, M
    if M % 128 == 0:
        for g in range(2, 513):
            if M % g == 0 and (M // g) % 128 == 0 and _fits_vmem(M // g, K, P):
                return g, M // g
    return None, None


def matmul_cm(Wm, A, *, bias=None, activation=None, out_dtype=jnp.bfloat16):
    """Channel-major matmul with bias / tanh fused in the epilogue."""
    P, K = Wm.shape
    K2, M = A.shape
    assert K == K2
    Wm = Wm.astype(jnp.bfloat16)
    A = A.astype(jnp.bfloat16)
    bias_col = None if bias is None else bias.reshape(P, 1).astype(jnp.float32)

    def xla_path():
        acc = jnp.dot(Wm, A, preferred_element_type=jnp.float32)
        if bias_col is not None:
            acc = acc + bias_col
        if activation == "tanh":
            acc = jnp.tanh(acc)
        return acc.astype(out_dtype)

    if M < 128:                       # tiny layers: launch overhead dominates
        return xla_path()

    grid_m, tm = _pick_m_tiling(M, K, P)
    if grid_m is None:                # shouldn't trigger at these shapes
        return xla_path()

    in_specs = [pl.BlockSpec((P, K), lambda i: (0, 0)),
                pl.BlockSpec((K, tm), lambda i: (0, i))]
    args = [Wm, A]
    if bias_col is not None:
        in_specs.append(pl.BlockSpec((P, 1), lambda i: (0, 0)))
        args.append(bias_col)

    out = pl.pallas_call(
        _make_kernel(bias_col is not None, activation),
        out_shape=jax.ShapeDtypeStruct((P, M), out_dtype),
        grid_spec=pltpu.PrefetchScalarGridSpec(
            num_scalar_prefetch=0,
            grid=(grid_m,),
            in_specs=in_specs,
            out_specs=pl.BlockSpec((P, tm), lambda i: (0, i)),
        ),
        compiler_params=pltpu.CompilerParams(
            dimension_semantics=("parallel",),
            vmem_limit_bytes=32 * 1024 * 1024),
    )(*args)
    return out


# ---------------------------------------------------------------------------
# Layer lowerings (channel-major activations: (C, N, H, W))
# ---------------------------------------------------------------------------
def conv_transpose2d_1x1_s1(x_cm, w):
    """ConvTranspose2d(k=4, s=1, p=0) on a 1x1 input.  x_cm:(Cin,N), w:(Cin,Cout,4,4)."""
    Cin, N = x_cm.shape
    Cout, k = w.shape[1], w.shape[2]
    Wm = jnp.transpose(w, (1, 2, 3, 0)).reshape(Cout * k * k, Cin)
    out = jnp.dot(Wm.astype(jnp.float32), x_cm.astype(jnp.float32))   # (Cout*16, N)
    return out.reshape(Cout, k, k, N).transpose(0, 3, 1, 2)           # (Cout, N, 4, 4)


def bn_relu_conv3x3(y_cm, gamma, beta, w, b, eps=1e-5):
    """BatchNorm2d(batch stats) + ReLU, then Conv2d(k=3, s=1, p=1, bias).

    y_cm: (C, N, H, W) pre-BN activation, w: (Cout, Cin, 3, 3), b: (Cout,).
    """
    C, N, H, W = y_cm.shape
    y32 = y_cm.astype(jnp.float32)
    mean = jnp.mean(y32, axis=(1, 2, 3), keepdims=True)
    var = jnp.mean(jnp.square(y32 - mean), axis=(1, 2, 3), keepdims=True)
    scale = gamma[:, None, None, None] / jnp.sqrt(var + eps)
    shift = beta[:, None, None, None] - mean * scale
    a = jnp.maximum(y32 * scale + shift, 0.0).astype(jnp.bfloat16)

    # zero spatial pad AFTER relu (exact PyTorch semantics), then 3x3 im2col
    ap = jnp.pad(a, ((0, 0), (0, 0), (1, 1), (1, 1)))
    M = N * H * W
    cols = [ap[:, :, ty:ty + H, tx:tx + W].reshape(C, M)
            for ty in range(3) for tx in range(3)]
    A = jnp.concatenate(cols, axis=0)                       # (9C, M), rows (ty,tx,ci)

    Cout = w.shape[0]
    Wm = jnp.transpose(w, (0, 2, 3, 1)).reshape(Cout, 9 * C)  # cols (ty,tx,ci)
    out = matmul_cm(Wm, A, bias=b, out_dtype=jnp.bfloat16)
    return out.reshape(Cout, N, H, W)


def conv_transpose2d_s2(x_cm, w, *, activation=None, out_dtype=jnp.bfloat16):
    """ConvTranspose2d(k=4, s=2, p=1, bias=False) via sub-pixel decomposition.

    x_cm: (Cin, N, H, W), w: (Cin, Cout, 4, 4) -> (Cout, N, 2H, 2W).
    """
    Cin, N, H, W = x_cm.shape
    Cout = w.shape[1]
    xp = jnp.pad(x_cm.astype(jnp.bfloat16), ((0, 0), (0, 0), (1, 1), (1, 1)))
    Hw, Ww = H + 1, W + 1
    Mw = N * Hw * Ww

    # 2x2 im2col of the (un-dilated) padded input; rows ordered (dy, dx, ci)
    cols = [xp[:, :, dy:dy + Hw, dx:dx + Ww].reshape(Cin, Mw)
            for dy in range(2) for dx in range(2)]
    A = jnp.concatenate(cols, axis=0)                       # (4Cin, Mw)

    # weight (4Cout, 4Cin): rows (sy,sx,co), cols (dy,dx,ci);
    # out[2m+sy, 2p+sx] uses window (m+sy, p+sx) with taps w[3-2dy-sy, 3-2dx-sx]
    blocks = []
    for sy in range(2):
        for sx in range(2):
            row = [w[:, :, 3 - 2 * dy - sy, 3 - 2 * dx - sx].T
                   for dy in range(2) for dx in range(2)]
            blocks.append(jnp.concatenate(row, axis=1))     # (Cout, 4Cin)
    Bm = jnp.concatenate(blocks, axis=0)                    # (4Cout, 4Cin)

    Yt = matmul_cm(Bm, A, activation=activation, out_dtype=out_dtype)
    Y = Yt.reshape(2, 2, Cout, N, Hw, Ww)

    # pixel shuffle: out[:, :, 2m+sy, 2p+sx] = Y[sy, sx, :, :, m+sy, p+sx]
    # TODO(synk): write this directly from the kernel via a (sy,sx) output
    # index_map / fold into the next layer's im2col to drop the HBM round trip.
    rows = []
    for sy in range(2):
        sub = [Y[sy, sx, :, :, sy:sy + H, sx:sx + W] for sx in range(2)]
        rows.append(jnp.stack(sub, axis=-1))                # (Cout, N, H, W, 2)
    out = jnp.stack(rows, axis=3)                           # (Cout, N, H, 2, W, 2)
    return out.reshape(Cout, N, 2 * H, 2 * W)


# ---------------------------------------------------------------------------
# Generator parameters + forward
# ---------------------------------------------------------------------------
def make_generator_params(nz, ngf, nc, key):
    ks = iter(jax.random.split(key, 64))
    p = {}

    def convT_w(cin, cout):
        return 0.02 * jax.random.normal(next(ks), (cin, cout, 4, 4), jnp.float32)

    def conv_w(c):
        return 0.02 * jax.random.normal(next(ks), (c, c, 3, 3), jnp.float32)

    def conv_b(c):
        return 0.02 * jax.random.normal(next(ks), (c,), jnp.float32)

    def bn(c):
        return (1.0 + 0.02 * jax.random.normal(next(ks), (c,), jnp.float32),
                jnp.zeros((c,), jnp.float32))

    chans = [ngf * 8, ngf * 6, ngf * 4, ngf * 2, ngf]
    p["ct0"] = convT_w(nz, chans[0])
    prev = chans[0]
    for li, c in enumerate(chans):
        if li > 0:
            p[f"ct{li}"] = convT_w(prev, c)
            prev = c
        p[f"bn{li}"] = bn(c)
        p[f"cw{li}"] = conv_w(c)
        p[f"cb{li}"] = conv_b(c)
    p["ct_out"] = convT_w(chans[-1], nc)
    return p


def generator_forward(params, x_nchw):
    N, Cin = x_nchw.shape[0], x_nchw.shape[1]
    x_cm = jnp.transpose(x_nchw.astype(jnp.float32), (1, 0, 2, 3)).reshape(Cin, N)

    # block 0: ConvT(nz->8ngf, 4,1,0) -> BN + ReLU -> Conv3x3
    y = conv_transpose2d_1x1_s1(x_cm, params["ct0"])            # (8ngf, N, 4, 4)
    x = bn_relu_conv3x3(y, *params["bn0"], params["cw0"], params["cb0"])

    # blocks 1..4: ConvT(.., 4,2,1) -> BN + ReLU -> Conv3x3
    for li in range(1, 5):
        y = conv_transpose2d_s2(x, params[f"ct{li}"])
        x = bn_relu_conv3x3(y, *params[f"bn{li}"],
                            params[f"cw{li}"], params[f"cb{li}"])

    # output: ConvT(ngf->nc, 4,2,1) + tanh (fused into the matmul epilogue)
    out = conv_transpose2d_s2(x, params["ct_out"],
                              activation="tanh", out_dtype=jnp.float32)
    return jnp.transpose(out, (1, 0, 2, 3))                     # (N, nc, H, W)


# ---------------------------------------------------------------------------
# Pure-JAX f32 reference (PyTorch semantics) for a sanity check
# ---------------------------------------------------------------------------
def _ref_convT(x, w, stride, padding):
    k = w.shape[2]
    w_conv = jnp.flip(jnp.transpose(w, (1, 0, 2, 3)), axis=(2, 3))
    p = k - 1 - padding
    return jax.lax.conv_general_dilated(
        x, w_conv, window_strides=(1, 1), padding=[(p, p), (p, p)],
        lhs_dilation=(stride, stride),
        dimension_numbers=("NCHW", "OIHW", "NCHW"),
        precision=jax.lax.Precision.HIGHEST)


def _ref_conv(x, w, b):
    y = jax.lax.conv_general_dilated(
        x, w, window_strides=(1, 1), padding=[(1, 1), (1, 1)],
        dimension_numbers=("NCHW", "OIHW", "NCHW"),
        precision=jax.lax.Precision.HIGHEST)
    return y + b[None, :, None, None]


def _ref_bn_relu(x, gamma, beta, eps=1e-5):
    mean = jnp.mean(x, axis=(0, 2, 3), keepdims=True)
    var = jnp.mean((x - mean) ** 2, axis=(0, 2, 3), keepdims=True)
    y = ((x - mean) / jnp.sqrt(var + eps) * gamma[None, :, None, None]
         + beta[None, :, None, None])
    return jnp.maximum(y, 0.0)


def generator_reference(params, x):
    x = x.astype(jnp.float32)
    x = _ref_convT(x, params["ct0"], 1, 0)
    x = _ref_bn_relu(x, *params["bn0"])
    x = _ref_conv(x, params["cw0"], params["cb0"])
    for li in range(1, 5):
        x = _ref_convT(x, params[f"ct{li}"], 2, 1)
        x = _ref_bn_relu(x, *params[f"bn{li}"])
        x = _ref_conv(x, params[f"cw{li}"], params[f"cb{li}"])
    x = _ref_convT(x, params["ct_out"], 2, 1)
    return jnp.tanh(x)


if __name__ == "__main__":
    nz, ngf, nc, batch = 8, 8, 3, 2
    key = jax.random.PRNGKey(0)
    kx, kp = jax.random.split(key)

    x = jax.random.normal(kx, (batch, nz, 1, 1), jnp.float32)   # latent NCHW
    params = make_generator_params(nz, ngf, nc, kp)

    out = jax.block_until_ready(jax.jit(generator_forward)(params, x))

    assert out.shape == (batch, nc, 128, 128), out.shape
    assert bool(jnp.all(jnp.isfinite(out)))
    assert bool(jnp.all(jnp.abs(out) <= 1.0 + 1e-6))            # tanh range

    ref = jax.block_until_ready(jax.jit(generator_reference)(params, x))
    max_diff = float(jnp.max(jnp.abs(out - ref)))
    mean_diff = float(jnp.mean(jnp.abs(out - ref)))
    ref_max = float(jnp.max(jnp.abs(ref)))
    ref_mean = float(jnp.mean(jnp.abs(ref)))
    assert max_diff <= 0.12 * ref_max + 3e-3, (max_diff, ref_max)
    assert mean_diff <= 0.08 * ref_mean + 5e-4, (mean_diff, ref_mean)
    print("KERNEL_OK")
</pallas_src>

<mosaic_0001>
module attributes {stable_mosaic.version = 11 : i64} {
  func.func @kernel(%arg0: i32, %arg1: memref<48x432xbf16, #tpu.memory_space<vmem>>, %arg2: memref<432x128xbf16, #tpu.memory_space<vmem>>, %arg3: memref<48x1xf32, #tpu.memory_space<vmem>>, %arg4: memref<48x128xbf16, #tpu.memory_space<vmem>>) attributes {dimension_semantics = [#tpu.dimension_semantics<parallel>], iteration_bounds = array<i64: 1>, scalar_prefetch = 0 : i64, scratch_operands = 0 : i64, tpu.core_type = #tpu.core_type<tc>, window_params = [{pipeline_mode = #tpu.pipeline_mode<synchronous>, transform_indices = @transform_0, window_bounds = array<i64: 48, 432>}, {transform_indices = @transform_1, window_bounds = array<i64: 432, 128>}, {pipeline_mode = #tpu.pipeline_mode<synchronous>, transform_indices = @transform_2, window_bounds = array<i64: 48, 1>}, {transform_indices = @transform_3, window_bounds = array<i64: 48, 128>}]} {
    %c0 = arith.constant 0 : index
    %c0_0 = arith.constant 0 : index
    %0 = vector.load %arg1[%c0, %c0_0] : memref<48x432xbf16, #tpu.memory_space<vmem>>, vector<48x432xbf16>
    %c0_1 = arith.constant 0 : index
    %c0_2 = arith.constant 0 : index
    %1 = vector.load %arg2[%c0_1, %c0_2] : memref<432x128xbf16, #tpu.memory_space<vmem>>, vector<432x128xbf16>
    %cst = arith.constant dense<0.000000e+00> : vector<48x128xf32>
    %2 = tpu.matmul %0, %1, %cst {dimension_numbers = #tpu.dot_dimension_numbers<[1], [0], [0], [1], [0, 0, 1, 1], [], []>} : vector<48x432xbf16>, vector<432x128xbf16>, vector<48x128xf32> -> vector<48x128xf32>
    %c0_3 = arith.constant 0 : index
    %c0_4 = arith.constant 0 : index
    %3 = vector.load %arg3[%c0_3, %c0_4] : memref<48x1xf32, #tpu.memory_space<vmem>>, vector<48x1xf32>
    %4 = vector.broadcast %3 : vector<48x1xf32> to vector<48x128xf32>
    %5 = arith.addf %2, %4 : vector<48x128xf32>
    %6 = arith.truncf %5 : vector<48x128xf32> to vector<48x128xbf16>
    %c0_5 = arith.constant 0 : index
    %c0_6 = arith.constant 0 : index
    %7 = vector.load %arg4[%c0_5, %c0_6] : memref<48x128xbf16, #tpu.memory_space<vmem>>, vector<48x128xbf16>
    tpu.vector_store %arg4[%c0_5, %c0_6], %6 {strides = array<i32>} : memref<48x128xbf16, #tpu.memory_space<vmem>>, vector<48x128xbf16>,
    return
  }
  func.func @transform_0(%arg0: i32) -> (i32, i32) {
    %c0_i32 = arith.constant 0 : i32
    %c0_i32_0 = arith.constant 0 : i32
    %c0_i32_1 = arith.constant 0 : i32
    return %c0_i32, %c0_i32_0 : i32, i32
  }
  func.func @transform_1(%arg0: i32) -> (i32, i32) {
    %c0_i32 = arith.constant 0 : i32
    %c0_i32_0 = arith.constant 0 : i32
    return %c0_i32, %arg0 : i32, i32
  }
  func.func @transform_2(%arg0: i32) -> (i32, i32) {
    %c0_i32 = arith.constant 0 : i32
    %c0_i32_0 = arith.constant 0 : i32
    %c0_i32_1 = arith.constant 0 : i32
    return %c0_i32, %c0_i32_0 : i32, i32
  }
  func.func @transform_3(%arg0: i32) -> (i32, i32) {
    %c0_i32 = arith.constant 0 : i32
    %c0_i32_0 = arith.constant 0 : i32
    return %c0_i32, %arg0 : i32, i32
  }
}

module attributes {stable_mosaic.version = 11 : i64} {
  func.func @kernel(%arg0: i32, %arg1: memref<128x192xbf16, #tpu.memory_space<vmem>>, %arg2: memref<192x162xbf16, #tpu.memory_space<vmem>>, %arg3: memref<128x162xbf16, #tpu.memory_space<vmem>>) attributes {dimension_semantics = [#tpu.dimension_semantics<parallel>], iteration_bounds = array<i64: 1>, scalar_prefetch = 0 : i64, scratch_operands = 0 : i64, tpu.core_type = #tpu.core_type<tc>, window_params = [{pipeline_mode = #tpu.pipeline_mode<synchronous>, transform_indices = @transform_0, window_bounds = array<i64: 128, 192>}, {transform_indices = @transform_1, window_bounds = array<i64: 192, 162>}, {transform_indices = @transform_2, window_bounds = array<i64: 128, 162>}]} {
    %c0 = arith.constant 0 : index
    %c0_0 = arith.constant 0 : index
    %0 = vector.load %arg1[%c0, %c0_0] : memref<128x192xbf16, #tpu.memory_space<vmem>>, vector<128x192xbf16>
    %c0_1 = arith.constant 0 : index
    %c0_2 = arith.constant 0 : index
    %1 = vector.load %arg2[%c0_1, %c0_2] : memref<192x162xbf16, #tpu.memory_space<vmem>>, vector<192x162xbf16>
    %cst = arith.constant dense<0.000000e+00> : vector<128x162xf32>
    %2 = tpu.matmul %0, %1, %cst {dimension_numbers = #tpu.dot_dimension_numbers<[1], [0], [0], [1], [0, 0, 1, 1], [], []>} : vector<128x192xbf16>, vector<192x162xbf16>, vector<128x162xf32> -> vector<128x162xf32>
    %3 = arith.truncf %2 : vector<128x162xf32> to vector<128x162xbf16>
    %c0_3 = arith.constant 0 : index
    %c0_4 = arith.constant 0 : index
    %4 = vector.load %arg3[%c0_3, %c0_4] : memref<128x162xbf16, #tpu.memory_space<vmem>>, vector<128x162xbf16>
    tpu.vector_store %arg3[%c0_3, %c0_4], %3 {strides = array<i32>} : memref<128x162xbf16, #tpu.memory_space<vmem>>, vector<128x162xbf16>,
    return
  }
  func.func @transform_0(%arg0: i32) -> (i32, i32) {
    %c0_i32 = arith.constant 0 : i32
    %c0_i32_0 = arith.constant 0 : i32
    %c0_i32_1 = arith.constant 0 : i32
    return %c0_i32, %c0_i32_0 : i32, i32
  }
  func.func @transform_1(%arg0: i32) -> (i32, i32) {
    %c0_i32 = arith.constant 0 : i32
    %c0_i32_0 = arith.constant 0 : i32
    return %c0_i32, %arg0 : i32, i32
  }
  func.func @transform_2(%arg0: i32) -> (i32, i32) {
    %c0_i32 = arith.constant 0 : i32
    %c0_i32_0 = arith.constant 0 : i32
    return %c0_i32, %arg0 : i32, i32
  }
}

module attributes {stable_mosaic.version = 11 : i64} {
  func.func @kernel(%arg0: i32, %arg1: memref<32x288xbf16, #tpu.memory_space<vmem>>, %arg2: memref<288x512xbf16, #tpu.memory_space<vmem>>, %arg3: memref<32x1xf32, #tpu.memory_space<vmem>>, %arg4: memref<32x512xbf16, #tpu.memory_space<vmem>>) attributes {dimension_semantics = [#tpu.dimension_semantics<parallel>], iteration_bounds = array<i64: 1>, scalar_prefetch = 0 : i64, scratch_operands = 0 : i64, tpu.core_type = #tpu.core_type<tc>, window_params = [{pipeline_mode = #tpu.pipeline_mode<synchronous>, transform_indices = @transform_0, window_bounds = array<i64: 32, 288>}, {transform_indices = @transform_1, window_bounds = array<i64: 288, 512>}, {pipeline_mode = #tpu.pipeline_mode<synchronous>, transform_indices = @transform_2, window_bounds = array<i64: 32, 1>}, {transform_indices = @transform_3, window_bounds = array<i64: 32, 512>}]} {
    %c0 = arith.constant 0 : index
    %c0_0 = arith.constant 0 : index
    %0 = vector.load %arg1[%c0, %c0_0] : memref<32x288xbf16, #tpu.memory_space<vmem>>, vector<32x288xbf16>
    %c0_1 = arith.constant 0 : index
    %c0_2 = arith.constant 0 : index
    %1 = vector.load %arg2[%c0_1, %c0_2] : memref<288x512xbf16, #tpu.memory_space<vmem>>, vector<288x512xbf16>
    %cst = arith.constant dense<0.000000e+00> : vector<32x512xf32>
    %2 = tpu.matmul %0, %1, %cst {dimension_numbers = #tpu.dot_dimension_numbers<[1], [0], [0], [1], [0, 0, 1, 1], [], []>} : vector<32x288xbf16>, vector<288x512xbf16>, vector<32x512xf32> -> vector<32x512xf32>
    %c0_3 = arith.constant 0 : index
    %c0_4 = arith.constant 0 : index
    %3 = vector.load %arg3[%c0_3, %c0_4] : memref<32x1xf32, #tpu.memory_space<vmem>>, vector<32x1xf32>
    %4 = vector.broadcast %3 : vector<32x1xf32> to vector<32x512xf32>
    %5 = arith.addf %2, %4 : vector<32x512xf32>
    %6 = arith.truncf %5 : vector<32x512xf32> to vector<32x512xbf16>
    %c0_5 = arith.constant 0 : index
    %c0_6 = arith.constant 0 : index
    %7 = vector.load %arg4[%c0_5, %c0_6] : memref<32x512xbf16, #tpu.memory_space<vmem>>, vector<32x512xbf16>
    tpu.vector_store %arg4[%c0_5, %c0_6], %6 {strides = array<i32>} : memref<32x512xbf16, #tpu.memory_space<vmem>>, vector<32x512xbf16>,
    return
  }
  func.func @transform_0(%arg0: i32) -> (i32, i32) {
    %c0_i32 = arith.constant 0 : i32
    %c0_i32_0 = arith.constant 0 : i32
    %c0_i32_1 = arith.constant 0 : i32
    return %c0_i32, %c0_i32_0 : i32, i32
  }
  func.func @transform_1(%arg0: i32) -> (i32, i32) {
    %c0_i32 = arith.constant 0 : i32
    %c0_i32_0 = arith.constant 0 : i32
    return %c0_i32, %arg0 : i32, i32
  }
  func.func @transform_2(%arg0: i32) -> (i32, i32) {
    %c0_i32 = arith.constant 0 : i32
    %c0_i32_0 = arith.constant 0 : i32
    %c0_i32_1 = arith.constant 0 : i32
    return %c0_i32, %c0_i32_0 : i32, i32
  }
  func.func @transform_3(%arg0: i32) -> (i32, i32) {
    %c0_i32 = arith.constant 0 : i32
    %c0_i32_0 = arith.constant 0 : i32
    return %c0_i32, %arg0 : i32, i32
  }
}

module attributes {stable_mosaic.version = 11 : i64} {
  func.func @kernel(%arg0: i32, %arg1: memref<64x128xbf16, #tpu.memory_space<vmem>>, %arg2: memref<128x578xbf16, #tpu.memory_space<vmem>>, %arg3: memref<64x578xbf16, #tpu.memory_space<vmem>>) attributes {dimension_semantics = [#tpu.dimension_semantics<parallel>], iteration_bounds = array<i64: 1>, scalar_prefetch = 0 : i64, scratch_operands = 0 : i64, tpu.core_type = #tpu.core_type<tc>, window_params = [{pipeline_mode = #tpu.pipeline_mode<synchronous>, transform_indices = @transform_0, window_bounds = array<i64: 64, 128>}, {transform_indices = @transform_1, window_bounds = array<i64: 128, 578>}, {transform_indices = @transform_2, window_bounds = array<i64: 64, 578>}]} {
    %c0 = arith.constant 0 : index
    %c0_0 = arith.constant 0 : index
    %0 = vector.load %arg1[%c0, %c0_0] : memref<64x128xbf16, #tpu.memory_space<vmem>>, vector<64x128xbf16>
    %c0_1 = arith.constant 0 : index
    %c0_2 = arith.constant 0 : index
    %1 = vector.load %arg2[%c0_1, %c0_2] : memref<128x578xbf16, #tpu.memory_space<vmem>>, vector<128x578xbf16>
    %cst = arith.constant dense<0.000000e+00> : vector<64x578xf32>
    %2 = tpu.matmul %0, %1, %cst {dimension_numbers = #tpu.dot_dimension_numbers<[1], [0], [0], [1], [0, 0, 1, 1], [], []>} : vector<64x128xbf16>, vector<128x578xbf16>, vector<64x578xf32> -> vector<64x578xf32>
    %3 = arith.truncf %2 : vector<64x578xf32> to vector<64x578xbf16>
    %c0_3 = arith.constant 0 : index
    %c0_4 = arith.constant 0 : index
    %4 = vector.load %arg3[%c0_3, %c0_4] : memref<64x578xbf16, #tpu.memory_space<vmem>>, vector<64x578xbf16>
    tpu.vector_store %arg3[%c0_3, %c0_4], %3 {strides = array<i32>} : memref<64x578xbf16, #tpu.memory_space<vmem>>, vector<64x578xbf16>,
    return
  }
  func.func @transform_0(%arg0: i32) -> (i32, i32) {
    %c0_i32 = arith.constant 0 : i32
    %c0_i32_0 = arith.constant 0 : i32
    %c0_i32_1 = arith.constant 0 : i32
    return %c0_i32, %c0_i32_0 : i32, i32
  }
  func.func @transform_1(%arg0: i32) -> (i32, i32) {
    %c0_i32 = arith.constant 0 : i32
    %c0_i32_0 = arith.constant 0 : i32
    return %c0_i32, %arg0 : i32, i32
  }
  func.func @transform_2(%arg0: i32) -> (i32, i32) {
    %c0_i32 = arith.constant 0 : i32
    %c0_i32_0 = arith.constant 0 : i32
    return %c0_i32, %arg0 : i32, i32
  }
}

module attributes {stable_mosaic.version = 11 : i64} {
  func.func @kernel(%arg0: i32, %arg1: memref<16x144xbf16, #tpu.memory_space<vmem>>, %arg2: memref<144x1024xbf16, #tpu.memory_space<vmem>>, %arg3: memref<16x1xf32, #tpu.memory_space<vmem>>, %arg4: memref<16x1024xbf16, #tpu.memory_space<vmem>>) attributes {dimension_semantics = [#tpu.dimension_semantics<parallel>], iteration_bounds = array<i64: 2>, scalar_prefetch = 0 : i64, scratch_operands = 0 : i64, tpu.core_type = #tpu.core_type<tc>, window_params = [{pipeline_mode = #tpu.pipeline_mode<synchronous>, transform_indices = @transform_0, window_bounds = array<i64: 16, 144>}, {transform_indices = @transform_1, window_bounds = array<i64: 144, 1024>}, {pipeline_mode = #tpu.pipeline_mode<synchronous>, transform_indices = @transform_2, window_bounds = array<i64: 16, 1>}, {transform_indices = @transform_3, window_bounds = array<i64: 16, 1024>}]} {
    %c0 = arith.constant 0 : index
    %c0_0 = arith.constant 0 : index
    %0 = vector.load %arg1[%c0, %c0_0] : memref<16x144xbf16, #tpu.memory_space<vmem>>, vector<16x144xbf16>
    %c0_1 = arith.constant 0 : index
    %c0_2 = arith.constant 0 : index
    %1 = vector.load %arg2[%c0_1, %c0_2] : memref<144x1024xbf16, #tpu.memory_space<vmem>>, vector<144x1024xbf16>
    %cst = arith.constant dense<0.000000e+00> : vector<16x1024xf32>
    %2 = tpu.matmul %0, %1, %cst {dimension_numbers = #tpu.dot_dimension_numbers<[1], [0], [0], [1], [0, 0, 1, 1], [], []>} : vector<16x144xbf16>, vector<144x1024xbf16>, vector<16x1024xf32> -> vector<16x1024xf32>
    %c0_3 = arith.constant 0 : index
    %c0_4 = arith.constant 0 : index
    %3 = vector.load %arg3[%c0_3, %c0_4] : memref<16x1xf32, #tpu.memory_space<vmem>>, vector<16x1xf32>
    %4 = vector.broadcast %3 : vector<16x1xf32> to vector<16x1024xf32>
    %5 = arith.addf %2, %4 : vector<16x1024xf32>
    %6 = arith.truncf %5 : vector<16x1024xf32> to vector<16x1024xbf16>
    %c0_5 = arith.constant 0 : index
    %c0_6 = arith.constant 0 : index
    %7 = vector.load %arg4[%c0_5, %c0_6] : memref<16x1024xbf16, #tpu.memory_space<vmem>>, vector<16x1024xbf16>
    tpu.vector_store %arg4[%c0_5, %c0_6], %6 {strides = array<i32>} : memref<16x1024xbf16, #tpu.memory_space<vmem>>, vector<16x1024xbf16>,
    return
  }
  func.func @transform_0(%arg0: i32) -> (i32, i32) {
    %c0_i32 = arith.constant 0 : i32
    %c0_i32_0 = arith.constant 0 : i32
    %c0_i32_1 = arith.constant 0 : i32
    return %c0_i32, %c0_i32_0 : i32, i32
  }
  func.func @transform_1(%arg0: i32) -> (i32, i32) {
    %c0_i32 = arith.constant 0 : i32
    %c0_i32_0 = arith.constant 0 : i32
    return %c0_i32, %arg0 : i32, i32
  }
  func.func @transform_2(%arg0: i32) -> (i32, i32) {
    %c0_i32 = arith.constant 0 : i32
    %c0_i32_0 = arith.constant 0 : i32
    %c0_i32_1 = arith.constant 0 : i32
    return %c0_i32, %c0_i32_0 : i32, i32
  }
  func.func @transform_3(%arg0: i32) -> (i32, i32) {
    %c0_i32 = arith.constant 0 : i32
    %c0_i32_0 = arith.constant 0 : i32
    return %c0_i32, %arg0 : i32, i32
  }
}

module attributes {stable_mosaic.version = 11 : i64} {
  func.func @kernel(%arg0: i32, %arg1: memref<32x64xbf16, #tpu.memory_space<vmem>>, %arg2: memref<64x2178xbf16, #tpu.memory_space<vmem>>, %arg3: memref<32x2178xbf16, #tpu.memory_space<vmem>>) attributes {dimension_semantics = [#tpu.dimension_semantics<parallel>], iteration_bounds = array<i64: 1>, scalar_prefetch = 0 : i64, scratch_operands = 0 : i64, tpu.core_type = #tpu.core_type<tc>, window_params = [{pipeline_mode = #tpu.pipeline_mode<synchronous>, transform_indices = @transform_0, window_bounds = array<i64: 32, 64>}, {transform_indices = @transform_1, window_bounds = array<i64: 64, 2178>}, {transform_indices = @transform_2, window_bounds = array<i64: 32, 2178>}]} {
    %c0 = arith.constant 0 : index
    %c0_0 = arith.constant 0 : index
    %0 = vector.load %arg1[%c0, %c0_0] : memref<32x64xbf16, #tpu.memory_space<vmem>>, vector<32x64xbf16>
    %c0_1 = arith.constant 0 : index
    %c0_2 = arith.constant 0 : index
    %1 = vector.load %arg2[%c0_1, %c0_2] : memref<64x2178xbf16, #tpu.memory_space<vmem>>, vector<64x2178xbf16>
    %cst = arith.constant dense<0.000000e+00> : vector<32x2178xf32>
    %2 = tpu.matmul %0, %1, %cst {dimension_numbers = #tpu.dot_dimension_numbers<[1], [0], [0], [1], [0, 0, 1, 1], [], []>} : vector<32x64xbf16>, vector<64x2178xbf16>, vector<32x2178xf32> -> vector<32x2178xf32>
    %3 = arith.truncf %2 : vector<32x2178xf32> to vector<32x2178xbf16>
    %c0_3 = arith.constant 0 : index
    %c0_4 = arith.constant 0 : index
    %4 = vector.load %arg3[%c0_3, %c0_4] : memref<32x2178xbf16, #tpu.memory_space<vmem>>, vector<32x2178xbf16>
    tpu.vector_store %arg3[%c0_3, %c0_4], %3 {strides = array<i32>} : memref<32x2178xbf16, #tpu.memory_space<vmem>>, vector<32x2178xbf16>,
    return
  }
  func.func @transform_0(%arg0: i32) -> (i32, i32) {
    %c0_i32 = arith.constant 0 : i32
    %c0_i32_0 = arith.constant 0 : i32
    %c0_i32_1 = arith.constant 0 : i32
    return %c0_i32, %c0_i32_0 : i32, i32
  }
  func.func @transform_1(%arg0: i32) -> (i32, i32) {
    %c0_i32 = arith.constant 0 : i32
    %c0_i32_0 = arith.constant 0 : i32
    return %c0_i32, %arg0 : i32, i32
  }
  func.func @transform_2(%arg0: i32) -> (i32, i32) {
    %c0_i32 = arith.constant 0 : i32
    %c0_i32_0 = arith.constant 0 : i32
    return %c0_i32, %arg0 : i32, i32
  }
}

module attributes {stable_mosaic.version = 11 : i64} {
  func.func @kernel(%arg0: i32, %arg1: memref<8x72xbf16, #tpu.memory_space<vmem>>, %arg2: memref<72x4096xbf16, #tpu.memory_space<vmem>>, %arg3: memref<8x1xf32, #tpu.memory_space<vmem>>, %arg4: memref<8x4096xbf16, #tpu.memory_space<vmem>>) attributes {dimension_semantics = [#tpu.dimension_semantics<parallel>], iteration_bounds = array<i64: 2>, scalar_prefetch = 0 : i64, scratch_operands = 0 : i64, tpu.core_type = #tpu.core_type<tc>, window_params = [{pipeline_mode = #tpu.pipeline_mode<synchronous>, transform_indices = @transform_0, window_bounds = array<i64: 8, 72>}, {transform_indices = @transform_1, window_bounds = array<i64: 72, 4096>}, {pipeline_mode = #tpu.pipeline_mode<synchronous>, transform_indices = @transform_2, window_bounds = array<i64: 8, 1>}, {transform_indices = @transform_3, window_bounds = array<i64: 8, 4096>}]} {
    %c0 = arith.constant 0 : index
    %c0_0 = arith.constant 0 : index
    %0 = vector.load %arg1[%c0, %c0_0] : memref<8x72xbf16, #tpu.memory_space<vmem>>, vector<8x72xbf16>
    %c0_1 = arith.constant 0 : index
    %c0_2 = arith.constant 0 : index
    %1 = vector.load %arg2[%c0_1, %c0_2] : memref<72x4096xbf16, #tpu.memory_space<vmem>>, vector<72x4096xbf16>
    %cst = arith.constant dense<0.000000e+00> : vector<8x4096xf32>
    %2 = tpu.matmul %0, %1, %cst {dimension_numbers = #tpu.dot_dimension_numbers<[1], [0], [0], [1], [0, 0, 1, 1], [], []>} : vector<8x72xbf16>, vector<72x4096xbf16>, vector<8x4096xf32> -> vector<8x4096xf32>
    %c0_3 = arith.constant 0 : index
    %c0_4 = arith.constant 0 : index
    %3 = vector.load %arg3[%c0_3, %c0_4] : memref<8x1xf32, #tpu.memory_space<vmem>>, vector<8x1xf32>
    %4 = vector.broadcast %3 : vector<8x1xf32> to vector<8x4096xf32>
    %5 = arith.addf %2, %4 : vector<8x4096xf32>
    %6 = arith.truncf %5 : vector<8x4096xf32> to vector<8x4096xbf16>
    %c0_5 = arith.constant 0 : index
    %c0_6 = arith.constant 0 : index
    %7 = vector.load %arg4[%c0_5, %c0_6] : memref<8x4096xbf16, #tpu.memory_space<vmem>>, vector<8x4096xbf16>
    tpu.vector_store %arg4[%c0_5, %c0_6], %6 {strides = array<i32>} : memref<8x4096xbf16, #tpu.memory_space<vmem>>, vector<8x4096xbf16>,
    return
  }
  func.func @transform_0(%arg0: i32) -> (i32, i32) {
    %c0_i32 = arith.constant 0 : i32
    %c0_i32_0 = arith.constant 0 : i32
    %c0_i32_1 = arith.constant 0 : i32
    return %c0_i32, %c0_i32_0 : i32, i32
  }
  func.func @transform_1(%arg0: i32) -> (i32, i32) {
    %c0_i32 = arith.constant 0 : i32
    %c0_i32_0 = arith.constant 0 : i32
    return %c0_i32, %arg0 : i32, i32
  }
  func.func @transform_2(%arg0: i32) -> (i32, i32) {
    %c0_i32 = arith.constant 0 : i32
    %c0_i32_0 = arith.constant 0 : i32
    %c0_i32_1 = arith.constant 0 : i32
    return %c0_i32, %c0_i32_0 : i32, i32
  }
  func.func @transform_3(%arg0: i32) -> (i32, i32) {
    %c0_i32 = arith.constant 0 : i32
    %c0_i32_0 = arith.constant 0 : i32
    return %c0_i32, %arg0 : i32, i32
  }
}

module attributes {stable_mosaic.version = 11 : i64} {
  func.func @kernel(%arg0: i32, %arg1: memref<12x32xbf16, #tpu.memory_space<vmem>>, %arg2: memref<32x8450xbf16, #tpu.memory_space<vmem>>, %arg3: memref<12x8450xf32, #tpu.memory_space<vmem>>) attributes {dimension_semantics = [#tpu.dimension_semantics<parallel>], iteration_bounds = array<i64: 1>, scalar_prefetch = 0 : i64, scratch_operands = 0 : i64, tpu.core_type = #tpu.core_type<tc>, window_params = [{pipeline_mode = #tpu.pipeline_mode<synchronous>, transform_indices = @transform_0, window_bounds = array<i64: 12, 32>}, {transform_indices = @transform_1, window_bounds = array<i64: 32, 8450>}, {transform_indices = @transform_2, window_bounds = array<i64: 12, 8450>}]} {
    %c0 = arith.constant 0 : index
    %c0_0 = arith.constant 0 : index
    %0 = vector.load %arg1[%c0, %c0_0] : memref<12x32xbf16, #tpu.memory_space<vmem>>, vector<12x32xbf16>
    %c0_1 = arith.constant 0 : index
    %c0_2 = arith.constant 0 : index
    %1 = vector.load %arg2[%c0_1, %c0_2] : memref<32x8450xbf16, #tpu.memory_space<vmem>>, vector<32x8450xbf16>
    %cst = arith.constant dense<0.000000e+00> : vector<12x8450xf32>
    %2 = tpu.matmul %0, %1, %cst {dimension_numbers = #tpu.dot_dimension_numbers<[1], [0], [0], [1], [0, 0, 1, 1], [], []>} : vector<12x32xbf16>, vector<32x8450xbf16>, vector<12x8450xf32> -> vector<12x8450xf32>
    %3 = math.tanh %2 : vector<12x8450xf32>
    %c0_3 = arith.constant 0 : index
    %c0_4 = arith.constant 0 : index
    %4 = vector.load %arg3[%c0_3, %c0_4] : memref<12x8450xf32, #tpu.memory_space<vmem>>, vector<12x8450xf32>
    tpu.vector_store %arg3[%c0_3, %c0_4], %3 {strides = array<i32>} : memref<12x8450xf32, #tpu.memory_space<vmem>>, vector<12x8450xf32>,
    return
  }
  func.func @transform_0(%arg0: i32) -> (i32, i32) {
    %c0_i32 = arith.constant 0 : i32
    %c0_i32_0 = arith.constant 0 : i32
    %c0_i32_1 = arith.constant 0 : i32
    return %c0_i32, %c0_i32_0 : i32, i32
  }
  func.func @transform_1(%arg0: i32) -> (i32, i32) {
    %c0_i32 = arith.constant 0 : i32
    %c0_i32_0 = arith.constant 0 : i32
    return %c0_i32, %arg0 : i32, i32
  }
  func.func @transform_2(%arg0: i32) -> (i32, i32) {
    %c0_i32 = arith.constant 0 : i32
    %c0_i32_0 = arith.constant 0 : i32
    return %c0_i32, %arg0 : i32, i32
  }
}

</mosaic_0001>

<bundles_post_ra>
// kernel: generator_forward.8
= control target key start
LH: loop header
LB: loop body
LE: loop exit
PB: predicated region body
PF: predicated region fallthrough
CT: control target
= control target key end

     0   :  { %v647_v0 = vmov 0   ;;  %vm336_vm0 = vcmask 392192   ;;  %s828_s1 = inlined_call_operand.vmem [shape: bf16[432,128], index: 1, kind: input, shape index: {}]   ;;  %s829_s0 = inlined_call_operand.vmem [shape: bf16[48,432], index: 0, kind: input, shape index: {}]   ;;  %s830_s2 = inlined_call_operand.vmem [shape: f32[48,1], index: 2, kind: input, shape index: {}]   ;;  %s831_s3 = inlined_call_operand.vmem [shape: bf16[48,128], index: 3, kind: output, shape index: {}]  }
   0x1   :  { %403 = vmatprep.subr.bf16.mxu1 %v647_v0  ;;  %v602_v1 = vld [vmem:[%s828_s1 + $0x78] sm:$0xff]   ;;  %600 = vset.pattern.permute.xlu0 %v647_v0  ;;  %v605_v4 = vld [vmem:[%s828_s1 + $0x70] sm:$0xff]   ;;  %v608_v7 = vld [vmem:[%s828_s1 + $0x68] sm:$0xff]  }
   0x2   :  { %v603_v2 = vld [vmem:[%s828_s1 + $0xb8] sm:$0xff]   ;;  %601 = vset.pattern.permute.xlu1 %v647_v0  ;;  %565 = vmatprep.subr.bf16.mxu0 %v602_v1  ;;  %v606_v5 = vld [vmem:[%s828_s1 + $0xb0] sm:$0xff]   ;;  %v609_v8 = vld [vmem:[%s828_s1 + $0xa8] sm:$0xff]  }
   0x3   :  { %v604_v3 = vld [vmem:[%s828_s1 + $0x38] sm:$0xff]   ;;  %404 = vmatpush1.bf16.msra.mxu1 %v603_v2  ;;  %v607_v6 = vld [vmem:[%s828_s1 + $0x30] sm:$0xff]   ;;  %v610_v9 = vld [vmem:[%s828_s1 + $0x28] sm:$0xff]  }
   0x4   :  { %566 = vmatpush3.bf16.msra.mxu0 %v604_v3  ;;  %405 = vmatprep.subr.bf16.mxu1 %v647_v0  ;;  %v611_v10 = vld [vmem:[%s828_s1 + $0x60] sm:$0xff]   ;;  %v614_v13 = vld [vmem:[%s828_s1 + $0x58] sm:$0xff]   ;;  %v617_v16 = vld [vmem:[%s828_s1 + $0x50] sm:$0xff]  }
   0x5   :  { %567 = vmatprep.subr.bf16.mxu0 %v605_v4  ;;  %v612_v11 = vld [vmem:[%s828_s1 + $0xa0] sm:$0xff]   ;;  %v615_v14 = vld [vmem:[%s828_s1 + $0x98] sm:$0xff]   ;;  %v618_v17 = vld [vmem:[%s828_s1 + $0x90] sm:$0xff]  }
   0x6   :  { %v613_v12 = vld [vmem:[%s828_s1 + $0x20] sm:$0xff]   ;;  %v616_v15 = vld [vmem:[%s828_s1 + $0x18] sm:$0xff]   ;;  %v619_v18 = vld [vmem:[%s828_s1 + $0x10] sm:$0xff]  }
   0x7   :  { %406 = vmatpush1.bf16.msra.mxu1 %v606_v5  ;;  %v620_v19 = vld [vmem:[%s828_s1 + $0x48] sm:$0xff]   ;;  %v623_v22 = vld [vmem:[%s828_s1 + $0x40] sm:$0xff]   ;;  %v629_v28 = vld [vmem:[%s828_s1 + $0xd0] sm:$0xff]  }
   0x8   :  { %568 = vmatpush3.bf16.msra.mxu0 %v607_v6  ;;  %407 = vmatprep.subr.bf16.mxu1 %v647_v0  ;;  %v621_v20 = vld [vmem:[%s828_s1 + $0x88] sm:$0xff]   ;;  %v628_v23 = vld [vmem:[%s829_s0 + $0x4] ss:$16 sps:$4 sm:$0xff]   ;;  %v626_v26 = vld [vmem:[%s829_s0] ss:$16 sps:$4 sm:$0xff]  }
   0x9   :  { %569 = vmatprep.subr.bf16.mxu0 %v608_v7  ;;  %v622_v21 = vld [vmem:[%s828_s1 + $0x8] sm:$0xff]   ;;  %v624_v24 = vld [vmem:[%s828_s1 + $0x80] sm:$0xff]   ;;  %378 = vmatprep.mubr.bf16.mxu0 %v628_v23  ;;  %v83_v32 = vld [vmem:[%s830_s2 + $0x10] sm:$0xff] }
   0xa   :  { %v625_v25 = vld [vmem:[%s828_s1] sm:$0xff]   ;;  %v637_v27 = vld [vmem:[%s829_s0 + $0xc] ss:$16 sps:$4 sm:$0xff]   ;;  %99 = vperm.xlu1 %601, %v83_v32   ;;  %v635_v38 = vld [vmem:[%s829_s0 + $0x8] ss:$16 sps:$4 sm:$0xff]  }
   0xb   :  { %408 = vmatpush1.bf16.msra.mxu1 %v609_v8  ;;  %v631_v29 = vld [vmem:[%s829_s0 + $0x24] ss:$16 sps:$4 sm:$0xff]   ;;  %533 = vmatprep.mubr.msk.bf16.mxu1 %vm336_vm0, %v637_v27  ;;  %v630_v30 = vld [vmem:[%s828_s1 + $0xc8] sm:$0xff]   ;;  %v84_v34 = vld [vmem:[%s830_s2 + $0x18] sm:$0xff] }
   0xc   :  { %570 = vmatpush3.bf16.msra.mxu0 %v610_v9  ;;  %409 = vmatprep.subr.bf16.mxu1 %v647_v0  ;;  %v81_v31 = vld [vmem:[%s830_s2] sm:$0xff]  ;;  %v82_v33 = vld [vmem:[%s830_s2 + $0x8] sm:$0xff] }
   0xd   :  { %571 = vmatprep.subr.bf16.mxu0 %v611_v10  ;;  %89 = vperm.xlu0 %600, %v81_v31   ;;  %v633_v35 = vld [vmem:[%s829_s0 + $0x20] ss:$16 sps:$4 sm:$0xff]   ;;  %v638_v37 = vld [vmem:[%s829_s0 + $0x44] ss:$16 sps:$4 sm:$0xff]   ;;  %v86_v39 = vld [vmem:[%s830_s2 + $0x28] sm:$0xff] }
   0xe   :  { %v634_v36 = vld [vmem:[%s828_s1 + $0xc0] sm:$0xff]   ;;  %104 = vperm.xlu1 %601, %v84_v34   ;;  %v641_v41 = vld [vmem:[%s829_s0 + $0x2c] ss:$16 sps:$4 sm:$0xff]   ;;  %v643_v43 = vld [vmem:[%s829_s0 + $0x28] ss:$16 sps:$4 sm:$0xff]  }
   0xf   :  { %410 = vmatpush1.bf16.msra.mxu1 %v612_v11  ;;  %v85_v40 = vld [vmem:[%s830_s2 + $0x20] sm:$0xff]  ;;  %v644_v44 = vld [vmem:[%s829_s0 + $0x4c] ss:$16 sps:$4 sm:$0xff]   ;;  %v646_v45 = vld [vmem:[%s829_s0 + $0x48] ss:$16 sps:$4 sm:$0xff]  }
  0x10   :  { %572 = vmatpush3.bf16.msra.mxu0 %v613_v12  ;;  %411 = vmatprep.subr.bf16.mxu1 %v647_v0  ;;  %v640_v42 = vld [vmem:[%s829_s0 + $0x40] ss:$16 sps:$4 sm:$0xff]  }
  0x11   :  { %573 = vmatprep.subr.bf16.mxu0 %v614_v13  ;;  %94 = vperm.xlu0 %600, %v82_v33  }
  0x12   :  { %114 = vperm.xlu1 %601, %v86_v39  }
  0x13   :  { %412 = vmatpush1.bf16.msra.mxu1 %v615_v14 }
  0x14   :  { %574 = vmatpush3.bf16.msra.mxu0 %v616_v15  ;;  %413 = vmatprep.subr.bf16.mxu1 %v647_v0 }
  0x15   :  { %575 = vmatprep.subr.bf16.mxu0 %v617_v16  ;;  %109 = vperm.xlu0 %600, %v85_v40  }
  0x17   :  { %414 = vmatpush1.bf16.msra.mxu1 %v618_v17 }
  0x18   :  { %576 = vmatpush3.bf16.msra.mxu0 %v619_v18  ;;  %415 = vmatprep.subr.bf16.mxu1 %v647_v0 }
  0x19   :  { %577 = vmatprep.subr.bf16.mxu0 %v620_v19 }
  0x1b   :  { %416 = vmatpush1.bf16.msra.mxu1 %v621_v20 }
  0x1c   :  { %578 = vmatpush3.bf16.msra.mxu0 %v622_v21  ;;  %417 = vmatprep.subr.bf16.mxu1 %v647_v0 }
  0x1d   :  { %579 = vmatprep.subr.bf16.mxu0 %v623_v22 }
  0x1f   :  { %418 = vmatpush1.bf16.msra.mxu1 %v624_v24 }
  0x20   :  { %580 = vmatpush3.bf16.msra.mxu0 %v625_v25  ;;  %429 = vmatprep.subr.bf16.mxu1 %v647_v0 }
  0x23   :  { %379 = vmatmul.mubr.bf16.vlgmr.msra.gmra.mxu0 %v626_v26  ;;  %430 = vmatpush2.bf16.msra.mxu1 %v629_v28 }
  0x24   :  { %431 = vmatprep.subr.bf16.mxu1 %v647_v0  ;;  %386 = vmatprep.mubr.bf16.mxu0 %v631_v29 }
  0x27   :  { %432 = vmatpush2.bf16.msra.mxu1 %v630_v30 }
  0x28   :  { %433 = vmatprep.subr.bf16.mxu1 %v647_v0 }
  0x2b   :  { %387 = vmatmul.mubr.bf16.gmra.mxu0 %v633_v35  ;;  %434 = vmatpush2.bf16.msra.mxu1 %v634_v36 }
  0x2c   :  { %394 = vmatprep.mubr.bf16.mxu0 %v638_v37 }
  0x2e   :  { %436 = vmatmul.mubr.bf16.vlgmr.msra.gmra.mxu1 %v635_v38 }
  0x2f   :  { %534 = vmatprep.mubr.msk.bf16.mxu1 %vm336_vm0, %v641_v41 }
  0x33   :  { %395 = vmatmul.mubr.bf16.gmra.mxu0 %v640_v42 }
  0x36   :  { %444 = vmatmul.mubr.bf16.gmra.mxu1 %v643_v43 }
  0x37   :  { %535 = vmatprep.mubr.msk.bf16.mxu1 %vm336_vm0, %v644_v44 }
  0x3e   :  { %452 = vmatmul.mubr.bf16.gmra.mxu1 %v646_v45 }
  0x85   :  { %v100_v58 = vpop.permute.xlu1 %99 }
  0x88   :  { %v90_v49 = vpop.permute.xlu0 %89 }
  0x89   :  { %v105_v8 = vpop.permute.xlu1 %104 }
  0x8c   :  { %v95_v55 = vpop.permute.xlu0 %94 }
  0x8d   :  { %v115_v24 = vpop.permute.xlu1 %114 }
  0x90   :  { %v110_v22 = vpop.permute.xlu0 %109 }
  0xe3   :  { %v581_v46 = vpop.f32.mrf.mxu0 }
  0xe5   :  { %v582_v47 = vpop.f32.mrf.mxu0 }
  0xe6   :  { %v583_v52 = vadd.f32 %v582_v47, %v581_v46 }
  0xe7   :  { %v584_v48 = vpop.f32.mrf.mxu0 }
  0xe8   :  { %v381_v60 = vadd.f32 %v583_v52, %v90_v49 }
  0xe9   :  { %v585_v50 = vpop.f32.mrf.mxu0 }
  0xea   :  { %v586_v53 = vadd.f32 %v585_v50, %v584_v48 }
  0xeb   :  { %v587_v51 = vpop.f32.mrf.mxu0 }
  0xec   :  { %v384_v61 = vadd.f32 %v586_v53, %v95_v55 }
  0xed   :  { %v588_v54 = vpop.f32.mrf.mxu0 }
  0xee   :  { %v437_v56 = vpop.f32.mrf.mxu1  ;;  %v589_v4 = vadd.f32 %v588_v54, %v587_v51 }
  0xef   :  { %v590_v57 = vpop.f32.mrf.mxu0  ;;  %v438_v0 = vadd.f32 %v437_v56, %v381_v60 }
  0xf0   :  { %v439_v59 = vpop.f32.mrf.mxu1  ;;  %v389_v12 = vadd.f32 %v589_v4, %v100_v58 }
  0xf1   :  { %v591_v62 = vpop.f32.mrf.mxu0 }
  0xf2   :  { %v440_v63 = vpop.f32.mrf.mxu1  ;;  %v592_v5 = vadd.f32 %v591_v62, %v590_v57 }
  0xf3   :  { %v441_v1 = vadd.f32 %v440_v63, %v384_v61  ;;  %v593_v2 = vpop.f32.mrf.mxu0 }
  0xf4   :  { %v442_v3 = vpop.f32.mrf.mxu1  ;;  %v392_v13 = vadd.f32 %v592_v5, %v105_v8 }
  0xf5   :  { %v551_v6 = vpack.c.bf16 %v441_v1, %v438_v0  ;;  %v594_v7 = vpop.f32.mrf.mxu0 }
  0xf6   :  { %v445_v9 = vpop.f32.mrf.mxu1  ;;  %v595_v19 = vadd.f32 %v594_v7, %v593_v2 }
  0xf7   :  { %552 = vst [vmem:[%s831_s3] sm:$0xff] %v551_v6   ;;  %v596_v10 = vpop.f32.mrf.mxu0  ;;  %v446_v16 = vadd.f32 %v445_v9, %v389_v12 }
  0xf8   :  { %v447_v11 = vpop.f32.mrf.mxu1  ;;  %v397_v26 = vadd.f32 %v595_v19, %v110_v22 }
  0xf9   :  { %v597_v14 = vpop.f32.mrf.mxu0 }
  0xfa   :  { %v448_v15 = vpop.f32.mrf.mxu1  ;;  %v598_v20 = vadd.f32 %v597_v14, %v596_v10 }
  0xfb   :  { %v449_v17 = vadd.f32 %v448_v15, %v392_v13 }
  0xfc   :  { %v450_v18 = vpop.f32.mrf.mxu1  ;;  %v400_v27 = vadd.f32 %v598_v20, %v115_v24 }
  0xfd   :  { %v556_v21 = vpack.c.bf16 %v449_v17, %v446_v16 }
  0xfe   :  { %v453_v23 = vpop.f32.mrf.mxu1 }
  0xff   :  { %563 = vst [vmem:[%s831_s3 + $0x8] sm:$0xff] %v556_v21   ;;  %v454_v29 = vadd.f32 %v453_v23, %v397_v26 }
 0x100   :  { %v455_v25 = vpop.f32.mrf.mxu1 }
 0x102   :  { %v456_v28 = vpop.f32.mrf.mxu1 }
 0x103   :  { %v457_v30 = vadd.f32 %v456_v28, %v400_v27 }
 0x104   :  { %v458_v31 = vpop.f32.mrf.mxu1 }
 0x105   :  { %v561_v32 = vpack.c.bf16 %v457_v30, %v454_v29 }
 0x107   :  { %564 = vst [vmem:[%s831_s3 + $0x10] sm:$0xff] %v561_v32  }

// kernel: generator_forward.9
= control target key start
LH: loop header
LB: loop body
LE: loop exit
PB: predicated region body
PF: predicated region fallthrough
CT: control target
= control target key end

     0   :  { %vm244_vm0 = vcmask 523264   ;;  %vm478_vm1 = vcmask 1043456   ;;  %vm479_vm2 = vcmask 277508   ;;  %s892_s1 = inlined_call_operand.vmem [shape: bf16[192,162], index: 1, kind: input, shape index: {}]   ;;  %s893_s0 = inlined_call_operand.vmem [shape: bf16[128,192], index: 0, kind: input, shape index: {}]   ;;  %s894_s2 = inlined_call_operand.vmem [shape: bf16[128,162], index: 2, kind: output, shape index: {}]  }
   0x1   :  { %v605_v0 = vld [vmem:[%s892_s1 + $0x74] ss:$8 sps:$4 sm:$0xff]   ;;  %v607_v1 = vld [vmem:[%s892_s1 + $0x70] ss:$8 sps:$4 sm:$0xff]   ;;  %v608_v2 = vld [vmem:[%s892_s1 + $0x64] ss:$8 sps:$4 sm:$0xff]  }
   0x2   :  { %269 = vmatprep.subr.bf16.mxu0 %v605_v0  ;;  %581 = vmatprep.subr.bf16.mxu1 %v605_v0  ;;  %v610_v3 = vld [vmem:[%s892_s1 + $0x60] ss:$8 sps:$4 sm:$0xff]   ;;  %v611_v4 = vld [vmem:[%s892_s1 + $0x54] ss:$8 sps:$4 sm:$0xff]   ;;  %v613_v5 = vld [vmem:[%s892_s1 + $0x50] ss:$8 sps:$4 sm:$0xff]  }
   0x3   :  { %270 = vmatpush1.bf16.msra.mxu0 %v607_v1  ;;  %593 = vmatpush1.bf16.msra.mxu1 %v607_v1  ;;  %v614_v6 = vld [vmem:[%s892_s1 + $0x44] ss:$8 sps:$4 sm:$0xff]   ;;  %v616_v7 = vld [vmem:[%s892_s1 + $0x40] ss:$8 sps:$4 sm:$0xff]   ;;  %v617_v8 = vld [vmem:[%s892_s1 + $0x34] ss:$8 sps:$4 sm:$0xff]  }
   0x4   :  { %271 = vmatprep.subr.bf16.mxu0 %v608_v2  ;;  %582 = vmatprep.subr.bf16.mxu1 %v608_v2  ;;  %v619_v9 = vld [vmem:[%s892_s1 + $0x30] ss:$8 sps:$4 sm:$0xff]   ;;  %v620_v10 = vld [vmem:[%s892_s1 + $0x24] ss:$8 sps:$4 sm:$0xff]   ;;  %v622_v13 = vld [vmem:[%s892_s1 + $0x20] ss:$8 sps:$4 sm:$0xff]  }
   0x5   :  { %v643_v11 = vld [vmem:[%s893_s0 + $0x4] ss:$8 sps:$4 sm:$0xff]   ;;  %v623_v14 = vld [vmem:[%s892_s1 + $0x14] ss:$8 sps:$4 sm:$0xff]   ;;  %v625_v15 = vld [vmem:[%s892_s1 + $0x10] ss:$8 sps:$4 sm:$0xff]  }
   0x6   :  { %v646_v12 = vld [vmem:[%s893_s0 + $0x44] ss:$8 sps:$4 sm:$0xff]   ;;  %541 = vmatprep.mubr.msk.bf16.mxu0 %vm244_vm0, %v643_v11  ;;  %v628_v17 = vld [vmem:[%s892_s1] ss:$8 sps:$4 sm:$0xff]   ;;  %v629_v18 = vld [vmem:[%s892_s1 + $0xb4] ss:$8 sps:$4 sm:$0xff]  }
   0x7   :  { %272 = vmatpush1.bf16.msra.mxu0 %v610_v3  ;;  %594 = vmatpush1.bf16.msra.mxu1 %v610_v3  ;;  %v626_v16 = vld [vmem:[%s892_s1 + $0x4] ss:$8 sps:$4 sm:$0xff]   ;;  %v631_v19 = vld [vmem:[%s892_s1 + $0xb0] ss:$8 sps:$4 sm:$0xff]   ;;  %v634_v21 = vld [vmem:[%s892_s1 + $0xa0] ss:$8 sps:$4 sm:$0xff]  }
   0x8   :  { %273 = vmatprep.subr.bf16.mxu0 %v611_v4  ;;  %583 = vmatprep.subr.bf16.mxu1 %v611_v4  ;;  %v632_v20 = vld [vmem:[%s892_s1 + $0xa4] ss:$8 sps:$4 sm:$0xff]   ;;  %v635_v22 = vld [vmem:[%s892_s1 + $0x94] ss:$8 sps:$4 sm:$0xff]   ;;  %v637_v23 = vld [vmem:[%s892_s1 + $0x90] ss:$8 sps:$4 sm:$0xff]  }
   0x9   :  { %545 = vmatprep.mubr.msk.bf16.mxu1 %vm244_vm0, %v646_v12  ;;  %v638_v24 = vld [vmem:[%s892_s1 + $0x84] ss:$8 sps:$4 sm:$0xff]   ;;  %v640_v25 = vld [vmem:[%s892_s1 + $0x80] ss:$8 sps:$4 sm:$0xff]   ;;  %v647_v28 = vld [vmem:[%s893_s0 + $0x14] ss:$8 sps:$4 sm:$0xff]  }
   0xa   :  { %v641_v26 = vld [vmem:[%s893_s0] ss:$8 sps:$4 sm:$0xff]   ;;  %v649_v29 = vld [vmem:[%s893_s0 + $0x54] ss:$8 sps:$4 sm:$0xff]   ;;  %v651_v30 = vld [vmem:[%s893_s0 + $0x10] ss:$8 sps:$4 sm:$0xff]  }
   0xb   :  { %274 = vmatpush1.bf16.msra.mxu0 %v613_v5  ;;  %595 = vmatpush1.bf16.msra.mxu1 %v613_v5  ;;  %v644_v27 = vld [vmem:[%s893_s0 + $0x40] ss:$8 sps:$4 sm:$0xff]   ;;  %v652_v31 = vld [vmem:[%s893_s0 + $0x50] ss:$8 sps:$4 sm:$0xff]   ;;  %v653_v32 = vld [vmem:[%s893_s0 + $0x24] ss:$8 sps:$4 sm:$0xff]  }
   0xc   :  { %275 = vmatprep.subr.bf16.mxu0 %v614_v6  ;;  %584 = vmatprep.subr.bf16.mxu1 %v614_v6  ;;  %v655_v33 = vld [vmem:[%s893_s0 + $0x64] ss:$8 sps:$4 sm:$0xff]   ;;  %v657_v34 = vld [vmem:[%s893_s0 + $0x20] ss:$8 sps:$4 sm:$0xff]   ;;  %v659_v36 = vld [vmem:[%s893_s0 + $0x34] ss:$8 sps:$4 sm:$0xff]  }
   0xd   :  { %v658_v35 = vld [vmem:[%s893_s0 + $0x60] ss:$8 sps:$4 sm:$0xff]   ;;  %v661_v37 = vld [vmem:[%s893_s0 + $0x74] ss:$8 sps:$4 sm:$0xff]   ;;  %v663_v38 = vld [vmem:[%s893_s0 + $0x30] ss:$8 sps:$4 sm:$0xff]  }
   0xe   :  { %v664_v39 = vld [vmem:[%s893_s0 + $0x70] ss:$8 sps:$4 sm:$0xff]   ;;  %vm808_vm3 = vmor %vm479_vm2, %vm478_vm1 }
   0xf   :  { %276 = vmatpush1.bf16.msra.mxu0 %v616_v7  ;;  %596 = vmatpush1.bf16.msra.mxu1 %v616_v7 }
  0x10   :  { %277 = vmatprep.subr.bf16.mxu0 %v617_v8  ;;  %585 = vmatprep.subr.bf16.mxu1 %v617_v8 }
  0x13   :  { %278 = vmatpush1.bf16.msra.mxu0 %v619_v9  ;;  %597 = vmatpush1.bf16.msra.mxu1 %v619_v9 }
  0x14   :  { %279 = vmatprep.subr.bf16.mxu0 %v620_v10  ;;  %586 = vmatprep.subr.bf16.mxu1 %v620_v10 }
  0x17   :  { %280 = vmatpush1.bf16.msra.mxu0 %v622_v13  ;;  %598 = vmatpush1.bf16.msra.mxu1 %v622_v13 }
  0x18   :  { %281 = vmatprep.subr.bf16.mxu0 %v623_v14  ;;  %587 = vmatprep.subr.bf16.mxu1 %v623_v14 }
  0x1b   :  { %282 = vmatpush1.bf16.msra.mxu0 %v625_v15  ;;  %599 = vmatpush1.bf16.msra.mxu1 %v625_v15 }
  0x1c   :  { %283 = vmatprep.subr.bf16.mxu0 %v626_v16  ;;  %588 = vmatprep.subr.bf16.mxu1 %v626_v16 }
  0x1f   :  { %284 = vmatpush1.bf16.msra.mxu0 %v628_v17  ;;  %600 = vmatpush1.bf16.msra.mxu1 %v628_v17 }
  0x20   :  { %293 = vmatprep.subr.bf16.mxu0 %v629_v18  ;;  %589 = vmatprep.subr.bf16.mxu1 %v629_v18 }
  0x23   :  { %294 = vmatpush2.bf16.msra.mxu0 %v631_v19  ;;  %601 = vmatpush2.bf16.msra.mxu1 %v631_v19 }
  0x24   :  { %295 = vmatprep.subr.bf16.mxu0 %v632_v20  ;;  %590 = vmatprep.subr.bf16.mxu1 %v632_v20 }
  0x27   :  { %296 = vmatpush2.bf16.msra.mxu0 %v634_v21  ;;  %602 = vmatpush2.bf16.msra.mxu1 %v634_v21 }
  0x28   :  { %297 = vmatprep.subr.bf16.mxu0 %v635_v22  ;;  %591 = vmatprep.subr.bf16.mxu1 %v635_v22 }
  0x2b   :  { %298 = vmatpush2.bf16.msra.mxu0 %v637_v23  ;;  %603 = vmatpush2.bf16.msra.mxu1 %v637_v23 }
  0x2c   :  { %299 = vmatprep.subr.bf16.mxu0 %v638_v24  ;;  %592 = vmatprep.subr.bf16.mxu1 %v638_v24 }
  0x2f   :  { %300 = vmatpush2.bf16.msra.mxu0 %v640_v25  ;;  %604 = vmatpush2.bf16.msra.mxu1 %v640_v25 }
  0x32   :  { %302 = vmatmul.mubr.bf16.vlgmr.msra.gmra.mxu0 %v641_v26  ;;  %342 = vmatmul.mubr.bf16.vlgmr.msra.gmra.mxu1 %v644_v27 }
  0x33   :  { %542 = vmatprep.mubr.msk.bf16.mxu0 %vm244_vm0, %v647_v28  ;;  %546 = vmatprep.mubr.msk.bf16.mxu1 %vm244_vm0, %v649_v29 }
  0x3a   :  { %312 = vmatmul.mubr.bf16.gmra.mxu0 %v651_v30  ;;  %352 = vmatmul.mubr.bf16.gmra.mxu1 %v652_v31 }
  0x3b   :  { %543 = vmatprep.mubr.msk.bf16.mxu0 %vm244_vm0, %v653_v32  ;;  %547 = vmatprep.mubr.msk.bf16.mxu1 %vm244_vm0, %v655_v33 }
  0x42   :  { %322 = vmatmul.mubr.bf16.gmra.mxu0 %v657_v34  ;;  %362 = vmatmul.mubr.bf16.gmra.mxu1 %v658_v35 }
  0x43   :  { %544 = vmatprep.mubr.msk.bf16.mxu0 %vm244_vm0, %v659_v36  ;;  %548 = vmatprep.mubr.msk.bf16.mxu1 %vm244_vm0, %v661_v37 }
  0x4a   :  { %332 = vmatmul.mubr.bf16.gmra.mxu0 %v663_v38  ;;  %372 = vmatmul.mubr.bf16.gmra.mxu1 %v664_v39 }
  0xf2   :  { %v303_v40 = vpop.f32.mrf.mxu0  ;;  %v343_v41 = vpop.f32.mrf.mxu1 }
  0xf4   :  { %v305_v42 = vpop.f32.mrf.mxu0  ;;  %v345_v44 = vpop.f32.mrf.mxu1 }
  0xf5   :  { %v565_v45 = vpack.c.bf16 %v305_v42, %v303_v40  ;;  %v573_v46 = vpack.c.bf16 %v345_v44, %v343_v41 }
  0xf6   :  { %v307_v47 = vpop.f32.mrf.mxu0  ;;  %v347_v48 = vpop.f32.mrf.mxu1 }
  0xf7   :  { %481 = vst.msk [vmem:[%s894_s2] sm:$0xff] %vm808_vm3, %v565_v45  ;;  %489 = vst.msk [vmem:[%s894_s2 + $0x40] sm:$0xff] %vm808_vm3, %v573_v46 }
  0xf8   :  { %v309_v49 = vpop.f32.mrf.mxu0  ;;  %v349_v50 = vpop.f32.mrf.mxu1 }
  0xf9   :  { %v566_v51 = vpack.c.bf16 %v309_v49, %v307_v47  ;;  %v574_v52 = vpack.c.bf16 %v349_v50, %v347_v48 }
  0xfa   :  { %v313_v53 = vpop.f32.mrf.mxu0  ;;  %v353_v54 = vpop.f32.mrf.mxu1 }
  0xfb   :  { %482 = vst.msk [vmem:[%s894_s2 + $0x8] sm:$0xff] %vm808_vm3, %v566_v51  ;;  %490 = vst.msk [vmem:[%s894_s2 + $0x48] sm:$0xff] %vm808_vm3, %v574_v52 }
  0xfc   :  { %v315_v55 = vpop.f32.mrf.mxu0  ;;  %v355_v56 = vpop.f32.mrf.mxu1 }
  0xfd   :  { %v567_v57 = vpack.c.bf16 %v315_v55, %v313_v53  ;;  %v575_v58 = vpack.c.bf16 %v355_v56, %v353_v54 }
  0xfe   :  { %v317_v59 = vpop.f32.mrf.mxu0  ;;  %v357_v60 = vpop.f32.mrf.mxu1 }
  0xff   :  { %483 = vst.msk [vmem:[%s894_s2 + $0x10] sm:$0xff] %vm808_vm3, %v567_v57  ;;  %491 = vst.msk [vmem:[%s894_s2 + $0x50] sm:$0xff] %vm808_vm3, %v575_v58 }
 0x100   :  { %v319_v61 = vpop.f32.mrf.mxu0  ;;  %v359_v62 = vpop.f32.mrf.mxu1 }
 0x101   :  { %v568_v63 = vpack.c.bf16 %v319_v61, %v317_v59  ;;  %v576_v0 = vpack.c.bf16 %v359_v62, %v357_v60 }
 0x102   :  { %v323_v1 = vpop.f32.mrf.mxu0  ;;  %v363_v2 = vpop.f32.mrf.mxu1 }
 0x103   :  { %484 = vst.msk [vmem:[%s894_s2 + $0x18] sm:$0xff] %vm808_vm3, %v568_v63  ;;  %492 = vst.msk [vmem:[%s894_s2 + $0x58] sm:$0xff] %vm808_vm3, %v576_v0 }
 0x104   :  { %v325_v3 = vpop.f32.mrf.mxu0  ;;  %v365_v4 = vpop.f32.mrf.mxu1 }
 0x105   :  { %v569_v5 = vpack.c.bf16 %v325_v3, %v323_v1  ;;  %v577_v6 = vpack.c.bf16 %v365_v4, %v363_v2 }
 0x106   :  { %v327_v7 = vpop.f32.mrf.mxu0  ;;  %v367_v8 = vpop.f32.mrf.mxu1 }
 0x107   :  { %485 = vst.msk [vmem:[%s894_s2 + $0x20] sm:$0xff] %vm808_vm3, %v569_v5  ;;  %493 = vst.msk [vmem:[%s894_s2 + $0x60] sm:$0xff] %vm808_vm3, %v577_v6 }
 0x108   :  { %v329_v9 = vpop.f32.mrf.mxu0  ;;  %v369_v10 = vpop.f32.mrf.mxu1 }
 0x109   :  { %v570_v11 = vpack.c.bf16 %v329_v9, %v327_v7  ;;  %v578_v12 = vpack.c.bf16 %v369_v10, %v367_v8 }
 0x10a   :  { %v333_v13 = vpop.f32.mrf.mxu0  ;;  %v373_v14 = vpop.f32.mrf.mxu1 }
 0x10b   :  { %486 = vst.msk [vmem:[%s894_s2 + $0x28] sm:$0xff] %vm808_vm3, %v570_v11  ;;  %494 = vst.msk [vmem:[%s894_s2 + $0x68] sm:$0xff] %vm808_vm3, %v578_v12 }
 0x10c   :  { %v335_v15 = vpop.f32.mrf.mxu0  ;;  %v375_v16 = vpop.f32.mrf.mxu1 }
 0x10d   :  { %v571_v17 = vpack.c.bf16 %v335_v15, %v333_v13  ;;  %v579_v18 = vpack.c.bf16 %v375_v16, %v373_v14 }
 0x10e   :  { %v337_v19 = vpop.f32.mrf.mxu0  ;;  %v377_v20 = vpop.f32.mrf.mxu1 }
 0x10f   :  { %487 = vst.msk [vmem:[%s894_s2 + $0x30] sm:$0xff] %vm808_vm3, %v571_v17  ;;  %495 = vst.msk [vmem:[%s894_s2 + $0x70] sm:$0xff] %vm808_vm3, %v579_v18 }
 0x110   :  { %v339_v21 = vpop.f32.mrf.mxu0  ;;  %v379_v22 = vpop.f32.mrf.mxu1 }
 0x111   :  { %v572_v23 = vpack.c.bf16 %v339_v21, %v337_v19  ;;  %v580_v24 = vpack.c.bf16 %v379_v22, %v377_v20 }
 0x113   :  { %488 = vst.msk [vmem:[%s894_s2 + $0x38] sm:$0xff] %vm808_vm3, %v572_v23  ;;  %496 = vst.msk [vmem:[%s894_s2 + $0x78] sm:$0xff] %vm808_vm3, %v580_v24 }

// kernel: generator_forward.10
= control target key start
LH: loop header
LB: loop body
LE: loop exit
PB: predicated region body
PF: predicated region fallthrough
CT: control target
= control target key end

     0   :  { %v1005_v1 = vmov 0   ;;  %vm509_vm0 = vcmask 261120   ;;  %s1314_s1 = inlined_call_operand.vmem [shape: bf16[288,512], index: 1, kind: input, shape index: {}]   ;;  %s1315_s0 = inlined_call_operand.vmem [shape: bf16[32,288], index: 0, kind: input, shape index: {}]   ;;  %s1316_s2 = inlined_call_operand.vmem [shape: f32[32,1], index: 2, kind: input, shape index: {}]   ;;  %s1317_s3 = inlined_call_operand.vmem [shape: bf16[32,512], index: 3, kind: output, shape index: {}]  }
   0x1   :  { %v889_v0 = vld [vmem:[%s1314_s1 + $0xe4] ss:$16 sps:$4 sm:$0xff]   ;;  %601 = vmatprep.mubr.bf16.mxu1 %v1005_v1  ;;  %887 = vset.pattern.permute.xlu0 %v1005_v1  ;;  %v891_v2 = vld [vmem:[%s1314_s1 + $0xe0] ss:$16 sps:$4 sm:$0xff]   ;;  %v904_v11 = vld [vmem:[%s1314_s1 + $0xe8] ss:$16 sps:$4 sm:$0xff]  }
   0x2   :  { %888 = vset.pattern.permute.xlu1 %v1005_v1  ;;  %516 = vmatprep.subr.bf16.mxu0 %v889_v0  ;;  %v892_v3 = vld [vmem:[%s1314_s1 + $0x224] ss:$16 sps:$4 sm:$0xff]   ;;  %v894_v4 = vld [vmem:[%s1314_s1 + $0x220] ss:$16 sps:$4 sm:$0xff]   ;;  %v906_v12 = vld [vmem:[%s1314_s1 + $0xec] ss:$16 sps:$4 sm:$0xff]  }
   0x3   :  { %517 = vmatpush1.bf16.msra.mxu0 %v891_v2  ;;  %v895_v5 = vld [vmem:[%s1314_s1 + $0xc4] ss:$16 sps:$4 sm:$0xff]   ;;  %v897_v6 = vld [vmem:[%s1314_s1 + $0xc0] ss:$16 sps:$4 sm:$0xff]   ;;  %581 = vmatprep.subr.bf16.mxu1 %v892_v3  ;;  %v913_v16 = vld [vmem:[%s1314_s1 + $0xcc] ss:$16 sps:$4 sm:$0xff]  }
   0x4   :  { %v898_v7 = vld [vmem:[%s1314_s1 + $0x204] ss:$16 sps:$4 sm:$0xff]   ;;  %582 = vmatpush1.bf16.msra.mxu1 %v894_v4  ;;  %518 = vmatprep.subr.bf16.mxu0 %v895_v5  ;;  %v900_v8 = vld [vmem:[%s1314_s1 + $0x200] ss:$16 sps:$4 sm:$0xff]   ;;  %v911_v18 = vld [vmem:[%s1314_s1 + $0xc8] ss:$16 sps:$4 sm:$0xff]  }
   0x5   :  { %583 = vmatprep.subr.bf16.mxu1 %v898_v7  ;;  %v901_v9 = vld [vmem:[%s1314_s1 + $0xa4] ss:$16 sps:$4 sm:$0xff]   ;;  %v903_v10 = vld [vmem:[%s1314_s1 + $0xa0] ss:$16 sps:$4 sm:$0xff]   ;;  %v919_v19 = vld [vmem:[%s1314_s1 + $0xac] ss:$16 sps:$4 sm:$0xff]  }
   0x6   :  { %v1068_v13 = vld [vmem:[%s1315_s0 + $0x8] ss:$12 sps:$4 sm:$0xff]   ;;  %v910_v15 = vld [vmem:[%s1314_s1 + $0x80] ss:$16 sps:$4 sm:$0xff]   ;;  %v925_v23 = vld [vmem:[%s1314_s1 + $0x8c] ss:$16 sps:$4 sm:$0xff]  }
   0x7   :  { %519 = vmatpush1.bf16.msra.mxu0 %v897_v6  ;;  %v908_v14 = vld [vmem:[%s1314_s1 + $0x84] ss:$16 sps:$4 sm:$0xff]   ;;  %v916_v20 = vld [vmem:[%s1314_s1 + $0x60] ss:$16 sps:$4 sm:$0xff]   ;;  %v917_v22 = vld [vmem:[%s1314_s1 + $0xa8] ss:$16 sps:$4 sm:$0xff]  }
   0x8   :  { %520 = vmatprep.subr.bf16.mxu0 %v901_v9  ;;  %584 = vmatpush1.bf16.msra.mxu1 %v900_v8  ;;  %v914_v17 = vld [vmem:[%s1314_s1 + $0x64] ss:$16 sps:$4 sm:$0xff]   ;;  %v922_v24 = vld [vmem:[%s1314_s1 + $0x40] ss:$16 sps:$4 sm:$0xff]   ;;  %v923_v26 = vld [vmem:[%s1314_s1 + $0x88] ss:$16 sps:$4 sm:$0xff]  }
   0x9   :  { %622 = vmatprep.subr.bf16.mxu1 %v906_v12  ;;  %v920_v21 = vld [vmem:[%s1314_s1 + $0x44] ss:$16 sps:$4 sm:$0xff]   ;;  %v931_v27 = vld [vmem:[%s1314_s1 + $0x6c] ss:$16 sps:$4 sm:$0xff]   ;;  %v928_v28 = vld [vmem:[%s1314_s1 + $0x20] ss:$16 sps:$4 sm:$0xff]  }
   0xa   :  { %v926_v25 = vld [vmem:[%s1314_s1 + $0x24] ss:$16 sps:$4 sm:$0xff]   ;;  %v929_v30 = vld [vmem:[%s1314_s1 + $0x68] ss:$16 sps:$4 sm:$0xff]   ;;  %v937_v31 = vld [vmem:[%s1314_s1 + $0x4c] ss:$16 sps:$4 sm:$0xff]  }
   0xb   :  { %521 = vmatpush1.bf16.msra.mxu0 %v903_v10  ;;  %866 = vmatmul.mubr.msk.bf16.vlgmr.msra.gmra.mxu1 %vm509_vm0, %v1068_v13  ;;  %v932_v29 = vld [vmem:[%s1314_s1 + $0x4] ss:$16 sps:$4 sm:$0xff]   ;;  %v934_v32 = vld [vmem:[%s1314_s1] ss:$16 sps:$4 sm:$0xff]   ;;  %v935_v34 = vld [vmem:[%s1314_s1 + $0x48] ss:$16 sps:$4 sm:$0xff]  }
   0xc   :  { %522 = vmatprep.subr.bf16.mxu0 %v908_v14  ;;  %623 = vmatpush1.bf16.msra.mxu1 %v904_v11  ;;  %v938_v33 = vld [vmem:[%s1314_s1 + $0x1e4] ss:$16 sps:$4 sm:$0xff]   ;;  %v943_v35 = vld [vmem:[%s1314_s1 + $0x2c] ss:$16 sps:$4 sm:$0xff]   ;;  %v940_v36 = vld [vmem:[%s1314_s1 + $0x1e0] ss:$16 sps:$4 sm:$0xff]  }
   0xd   :  { %611 = vmatprep.mubr.bf16.mxu1 %v1005_v1  ;;  %624 = vmatprep.subr.bf16.mxu1 %v913_v16  ;;  %v944_v37 = vld [vmem:[%s1314_s1 + $0x1c4] ss:$16 sps:$4 sm:$0xff]   ;;  %v941_v38 = vld [vmem:[%s1314_s1 + $0x28] ss:$16 sps:$4 sm:$0xff]   ;;  %v949_v39 = vld [vmem:[%s1314_s1 + $0xc] ss:$16 sps:$4 sm:$0xff]  }
   0xe   :  { %v946_v40 = vld [vmem:[%s1314_s1 + $0x1c0] ss:$16 sps:$4 sm:$0xff]   ;;  %v950_v41 = vld [vmem:[%s1314_s1 + $0x1a4] ss:$16 sps:$4 sm:$0xff]   ;;  %v947_v42 = vld [vmem:[%s1314_s1 + $0x8] ss:$16 sps:$4 sm:$0xff]  }
   0xf   :  { %523 = vmatpush1.bf16.msra.mxu0 %v910_v15  ;;  %v955_v43 = vld [vmem:[%s1314_s1 + $0x1ec] ss:$16 sps:$4 sm:$0xff]   ;;  %v952_v44 = vld [vmem:[%s1314_s1 + $0x1a0] ss:$16 sps:$4 sm:$0xff]   ;;  %v956_v45 = vld [vmem:[%s1314_s1 + $0x184] ss:$16 sps:$4 sm:$0xff]  }
  0x10   :  { %524 = vmatprep.subr.bf16.mxu0 %v914_v17  ;;  %625 = vmatpush1.bf16.msra.mxu1 %v911_v18  ;;  %v953_v46 = vld [vmem:[%s1314_s1 + $0x1e8] ss:$16 sps:$4 sm:$0xff]   ;;  %v961_v47 = vld [vmem:[%s1314_s1 + $0x1cc] ss:$16 sps:$4 sm:$0xff]   ;;  %v958_v48 = vld [vmem:[%s1314_s1 + $0x180] ss:$16 sps:$4 sm:$0xff]  }
  0x11   :  { %626 = vmatprep.subr.bf16.mxu1 %v919_v19  ;;  %v959_v49 = vld [vmem:[%s1314_s1 + $0x1c8] ss:$16 sps:$4 sm:$0xff]   ;;  %v962_v50 = vld [vmem:[%s1314_s1 + $0x164] ss:$16 sps:$4 sm:$0xff]   ;;  %v964_v52 = vld [vmem:[%s1314_s1 + $0x160] ss:$16 sps:$4 sm:$0xff]  }
  0x12   :  { %v988_v51 = vld [vmem:[%s1315_s0 + $0x4] ss:$12 sps:$4 sm:$0xff]   ;;  %v967_v53 = vld [vmem:[%s1314_s1 + $0x1ac] ss:$16 sps:$4 sm:$0xff]   ;;  %v965_v56 = vld [vmem:[%s1314_s1 + $0x1a8] ss:$16 sps:$4 sm:$0xff]  }
  0x13   :  { %525 = vmatpush1.bf16.msra.mxu0 %v916_v20  ;;  %548 = vmatprep.mubr.bf16.mxu0 %v988_v51  ;;  %v1196_v54 = vld [vmem:[%s1315_s0 + $0x20] ss:$12 sps:$4 sm:$0xff]   ;;  %v968_v55 = vld [vmem:[%s1314_s1 + $0x144] ss:$16 sps:$4 sm:$0xff]   ;;  %v971_v61 = vld [vmem:[%s1314_s1 + $0x188] ss:$16 sps:$4 sm:$0xff]  }
  0x14   :  { %526 = vmatprep.subr.bf16.mxu0 %v920_v21  ;;  %627 = vmatpush1.bf16.msra.mxu1 %v917_v22  ;;  %v973_v57 = vld [vmem:[%s1314_s1 + $0x18c] ss:$16 sps:$4 sm:$0xff]   ;;  %v970_v58 = vld [vmem:[%s1314_s1 + $0x140] ss:$16 sps:$4 sm:$0xff]   ;;  %v974_v59 = vld [vmem:[%s1314_s1 + $0x124] ss:$16 sps:$4 sm:$0xff]  }
  0x15   :  { %628 = vmatprep.subr.bf16.mxu1 %v925_v23  ;;  %867 = vmatmul.mubr.msk.bf16.gmra.mxu1 %vm509_vm0, %v1196_v54  ;;  %v95_v60 = vld [vmem:[%s1316_s2] sm:$0xff]  ;;  %v97_v62 = vld [vmem:[%s1316_s2 + $0x10] sm:$0xff]  ;;  %v979_v63 = vld [vmem:[%s1314_s1 + $0x16c] ss:$16 sps:$4 sm:$0xff]  }
  0x16   :  { %654 = vmatprep.mubr.bf16.mxu1 %v988_v51  ;;  %101 = vperm.xlu0 %887, %v95_v60   ;;  %v96_v0 = vld [vmem:[%s1316_s2 + $0x8] sm:$0xff]  ;;  %v976_v2 = vld [vmem:[%s1314_s1 + $0x120] ss:$16 sps:$4 sm:$0xff]   ;;  %v98_v3 = vld [vmem:[%s1316_s2 + $0x18] sm:$0xff] }
  0x17   :  { %527 = vmatpush1.bf16.msra.mxu0 %v922_v24  ;;  %111 = vperm.xlu1 %888, %v97_v62   ;;  %v980_v4 = vld [vmem:[%s1314_s1 + $0x104] ss:$16 sps:$4 sm:$0xff]   ;;  %v977_v5 = vld [vmem:[%s1314_s1 + $0x168] ss:$16 sps:$4 sm:$0xff]   ;;  %v985_v6 = vld [vmem:[%s1314_s1 + $0x14c] ss:$16 sps:$4 sm:$0xff]  }
  0x18   :  { %528 = vmatprep.subr.bf16.mxu0 %v926_v25  ;;  %629 = vmatpush1.bf16.msra.mxu1 %v923_v26  ;;  %v982_v7 = vld [vmem:[%s1314_s1 + $0x100] ss:$16 sps:$4 sm:$0xff]   ;;  %v991_v8 = vld [vmem:[%s1314_s1 + $0x22c] ss:$16 sps:$4 sm:$0xff]   ;;  %v983_v9 = vld [vmem:[%s1314_s1 + $0x148] ss:$16 sps:$4 sm:$0xff]  }
  0x19   :  { %630 = vmatprep.subr.bf16.mxu1 %v931_v27  ;;  %v986_v10 = vld [vmem:[%s1315_s0] ss:$12 sps:$4 sm:$0xff]   ;;  %v989_v12 = vld [vmem:[%s1314_s1 + $0x228] ss:$16 sps:$4 sm:$0xff]  }
  0x1a   :  { %106 = vperm.xlu0 %887, %v96_v0   ;;  %v995_v11 = vld [vmem:[%s1314_s1 + $0x12c] ss:$16 sps:$4 sm:$0xff]   ;;  %v993_v16 = vld [vmem:[%s1314_s1 + $0x128] ss:$16 sps:$4 sm:$0xff]  }
  0x1b   :  { %529 = vmatpush1.bf16.msra.mxu0 %v928_v28  ;;  %116 = vperm.xlu1 %888, %v98_v3   ;;  %v999_v14 = vld [vmem:[%s1315_s0 + $0x1c] ss:$12 sps:$4 sm:$0xff]   ;;  %v1001_v20 = vld [vmem:[%s1315_s0 + $0x18] ss:$12 sps:$4 sm:$0xff]  }
  0x1c   :  { %530 = vmatprep.subr.bf16.mxu0 %v932_v29  ;;  %631 = vmatpush1.bf16.msra.mxu1 %v929_v30  ;;  %v1004_v15 = vld [vmem:[%s1314_s1 + $0x20c] ss:$16 sps:$4 sm:$0xff]   ;;  %v1002_v18 = vld [vmem:[%s1314_s1 + $0x208] ss:$16 sps:$4 sm:$0xff]  }
  0x1d   :  { %632 = vmatprep.subr.bf16.mxu1 %v937_v31  ;;  %v998_v17 = vld [vmem:[%s1314_s1 + $0x10c] ss:$16 sps:$4 sm:$0xff]   ;;  %v996_v19 = vld [vmem:[%s1314_s1 + $0x108] ss:$16 sps:$4 sm:$0xff]  }
  0x1f   :  { %531 = vmatpush1.bf16.msra.mxu0 %v934_v32 }
  0x20   :  { %532 = vmatprep.subr.bf16.mxu0 %v938_v33  ;;  %633 = vmatpush1.bf16.msra.mxu1 %v935_v34 }
  0x21   :  { %634 = vmatprep.subr.bf16.mxu1 %v943_v35 }
  0x23   :  { %533 = vmatpush2.bf16.msra.mxu0 %v940_v36 }
  0x24   :  { %534 = vmatprep.subr.bf16.mxu0 %v944_v37  ;;  %635 = vmatpush1.bf16.msra.mxu1 %v941_v38 }
  0x25   :  { %636 = vmatprep.subr.bf16.mxu1 %v949_v39 }
  0x27   :  { %535 = vmatpush2.bf16.msra.mxu0 %v946_v40 }
  0x28   :  { %536 = vmatprep.subr.bf16.mxu0 %v950_v41  ;;  %637 = vmatpush1.bf16.msra.mxu1 %v947_v42 }
  0x29   :  { %638 = vmatprep.subr.bf16.mxu1 %v955_v43 }
  0x2b   :  { %537 = vmatpush2.bf16.msra.mxu0 %v952_v44 }
  0x2c   :  { %538 = vmatprep.subr.bf16.mxu0 %v956_v45  ;;  %639 = vmatpush2.bf16.msra.mxu1 %v953_v46 }
  0x2d   :  { %640 = vmatprep.subr.bf16.mxu1 %v961_v47 }
  0x2f   :  { %539 = vmatpush2.bf16.msra.mxu0 %v958_v48 }
  0x30   :  { %540 = vmatprep.subr.bf16.mxu0 %v962_v50  ;;  %641 = vmatpush2.bf16.msra.mxu1 %v959_v49 }
  0x31   :  { %642 = vmatprep.subr.bf16.mxu1 %v967_v53 }
  0x33   :  { %541 = vmatpush2.bf16.msra.mxu0 %v964_v52 }
  0x34   :  { %542 = vmatprep.subr.bf16.mxu0 %v968_v55  ;;  %643 = vmatpush2.bf16.msra.mxu1 %v965_v56 }
  0x35   :  { %644 = vmatprep.subr.bf16.mxu1 %v973_v57 }
  0x37   :  { %543 = vmatpush2.bf16.msra.mxu0 %v970_v58 }
  0x38   :  { %544 = vmatprep.subr.bf16.mxu0 %v974_v59  ;;  %645 = vmatpush2.bf16.msra.mxu1 %v971_v61 }
  0x39   :  { %646 = vmatprep.subr.bf16.mxu1 %v979_v63 }
  0x3b   :  { %545 = vmatpush2.bf16.msra.mxu0 %v976_v2 }
  0x3c   :  { %546 = vmatprep.subr.bf16.mxu0 %v980_v4  ;;  %647 = vmatpush2.bf16.msra.mxu1 %v977_v5 }
  0x3d   :  { %648 = vmatprep.subr.bf16.mxu1 %v985_v6 }
  0x3f   :  { %547 = vmatpush2.bf16.msra.mxu0 %v982_v7 }
  0x40   :  { %687 = vmatprep.subr.bf16.mxu0 %v991_v8  ;;  %649 = vmatpush2.bf16.msra.mxu1 %v983_v9 }
  0x41   :  { %650 = vmatprep.subr.bf16.mxu1 %v995_v11 }
  0x42   :  { %549 = vmatmul.mubr.bf16.vlgmr.msra.gmra.mxu0 %v986_v10 }
  0x43   :  { %688 = vmatpush1.bf16.msra.mxu0 %v989_v12  ;;  %558 = vmatprep.mubr.bf16.mxu0 %v999_v14 }
  0x44   :  { %689 = vmatprep.subr.bf16.mxu0 %v1004_v15  ;;  %651 = vmatpush2.bf16.msra.mxu1 %v993_v16 }
  0x45   :  { %652 = vmatprep.subr.bf16.mxu1 %v998_v17 }
  0x47   :  { %690 = vmatpush1.bf16.msra.mxu0 %v1002_v18 }
  0x48   :  { %653 = vmatpush2.bf16.msra.mxu1 %v996_v19 }
  0x4a   :  { %559 = vmatmul.mubr.bf16.gmra.mxu0 %v1001_v20 }
  0x4b   :  { %707 = vmatprep.mubr.bf16.mxu0 %v1005_v1  ;;  %655 = vmatmul.mubr.bf16.vlgmr.msra.gmra.mxu1 %v986_v10 }
  0x4c   :  { %664 = vmatprep.mubr.bf16.mxu1 %v999_v14 }
  0x52   :  { %868 = vmatmul.mubr.msk.bf16.vlgmr.msra.gmra.mxu0 %vm509_vm0, %v1068_v13 }
  0x53   :  { %717 = vmatprep.mubr.bf16.mxu0 %v1005_v1  ;;  %665 = vmatmul.mubr.bf16.gmra.mxu1 %v1001_v20 }
  0x5a   :  { %869 = vmatmul.mubr.msk.bf16.gmra.mxu0 %vm509_vm0, %v1196_v54 }
  0x91   :  { %v102_v26 = vpop.permute.xlu0 %101 }
  0x92   :  { %v112_v13 = vpop.permute.xlu1 %111 }
  0x95   :  { %v107_v30 = vpop.permute.xlu0 %106 }
  0x96   :  { %v117_v45 = vpop.permute.xlu1 %116 }
  0xcb   :  { %v603_v21 = vpop.f32.mrf.mxu1 }
  0xcd   :  { %v605_v22 = vpop.f32.mrf.mxu1 }
  0xcf   :  { %v607_v23 = vpop.f32.mrf.mxu1 }
  0xd1   :  { %v609_v24 = vpop.f32.mrf.mxu1 }
  0xd5   :  { %v613_v25 = vpop.f32.mrf.mxu1 }
  0xd7   :  { %v615_v27 = vpop.f32.mrf.mxu1 }
  0xd9   :  { %v617_v32 = vpop.f32.mrf.mxu1 }
  0xdb   :  { %v619_v38 = vpop.f32.mrf.mxu1 }
 0x102   :  { %v550_v28 = vpop.f32.mrf.mxu0 }
 0x103   :  { %v551_v29 = vadd.f32 %v550_v28, %v102_v26 }
 0x104   :  { %v552_v31 = vpop.f32.mrf.mxu0 }
 0x105   :  { %v553_v33 = vadd.f32 %v552_v31, %v102_v26  ;;  %v604_v1 = vadd.f32 %v603_v21, %v551_v29 }
 0x106   :  { %v554_v34 = vpop.f32.mrf.mxu0 }
 0x107   :  { %v606_v35 = vadd.f32 %v605_v22, %v553_v33  ;;  %v555_v36 = vadd.f32 %v554_v34, %v107_v30 }
 0x108   :  { %v556_v37 = vpop.f32.mrf.mxu0 }
 0x109   :  { %v878_v39 = vpack.c.bf16 %v606_v35, %v604_v1  ;;  %v557_v40 = vadd.f32 %v556_v37, %v107_v30  ;;  %v608_v42 = vadd.f32 %v607_v23, %v555_v36 }
 0x10a   :  { %v560_v41 = vpop.f32.mrf.mxu0 }
 0x10b   :  { %776 = vst [vmem:[%s1317_s3] sm:$0xff] %v878_v39  ;;  %v610_v43 = vadd.f32 %v609_v24, %v557_v40  ;;  %v561_v44 = vadd.f32 %v560_v41, %v112_v13  ;;  %v656_v46 = vpop.f32.mrf.mxu1 }
 0x10c   :  { %v562_v47 = vpop.f32.mrf.mxu0  ;;  %v657_v57 = vadd.f32 %v656_v46, %v102_v26 }
 0x10d   :  { %v880_v48 = vpack.c.bf16 %v610_v43, %v608_v42  ;;  %v563_v49 = vadd.f32 %v562_v47, %v112_v13  ;;  %v658_v50 = vpop.f32.mrf.mxu1  ;;  %v614_v52 = vadd.f32 %v613_v25, %v561_v44 }
 0x10e   :  { %v564_v51 = vpop.f32.mrf.mxu0  ;;  %v659_v62 = vadd.f32 %v658_v50, %v102_v26 }
 0x10f   :  { %778 = vst [vmem:[%s1317_s3 + $0x10] sm:$0xff] %v880_v48  ;;  %v616_v53 = vadd.f32 %v615_v27, %v563_v49  ;;  %v565_v54 = vadd.f32 %v564_v51, %v117_v45  ;;  %v660_v55 = vpop.f32.mrf.mxu1 }
 0x110   :  { %v566_v56 = vpop.f32.mrf.mxu0  ;;  %v661_v9 = vadd.f32 %v660_v55, %v107_v30 }
 0x111   :  { %v882_v58 = vpack.c.bf16 %v616_v53, %v614_v52  ;;  %v567_v59 = vadd.f32 %v566_v56, %v117_v45  ;;  %v662_v60 = vpop.f32.mrf.mxu1  ;;  %v618_v63 = vadd.f32 %v617_v32, %v565_v54 }
 0x112   :  { %v709_v61 = vpop.f32.mrf.mxu0  ;;  %v663_v10 = vadd.f32 %v662_v60, %v107_v30 }
 0x113   :  { %780 = vst [vmem:[%s1317_s3 + $0x20] sm:$0xff] %v882_v58  ;;  %v620_v0 = vadd.f32 %v619_v38, %v567_v59  ;;  %v666_v2 = vpop.f32.mrf.mxu1  ;;  %v710_v5 = vadd.f32 %v709_v61, %v657_v57 }
 0x114   :  { %v711_v3 = vpop.f32.mrf.mxu0  ;;  %v667_v15 = vadd.f32 %v666_v2, %v112_v13 }
 0x115   :  { %v884_v4 = vpack.c.bf16 %v620_v0, %v618_v63  ;;  %v712_v6 = vadd.f32 %v711_v3, %v659_v62  ;;  %v668_v7 = vpop.f32.mrf.mxu1 }
 0x116   :  { %v713_v8 = vpop.f32.mrf.mxu0  ;;  %v669_v19 = vadd.f32 %v668_v7, %v112_v13 }
 0x117   :  { %782 = vst [vmem:[%s1317_s3 + $0x30] sm:$0xff] %v884_v4  ;;  %v879_v11 = vpack.c.bf16 %v712_v6, %v710_v5  ;;  %v670_v12 = vpop.f32.mrf.mxu1  ;;  %v714_v16 = vadd.f32 %v713_v8, %v661_v9 }
 0x118   :  { %v715_v14 = vpop.f32.mrf.mxu0  ;;  %v671_v26 = vadd.f32 %v670_v12, %v117_v45 }
 0x119   :  { %777 = vst [vmem:[%s1317_s3 + $0x8] sm:$0xff] %v879_v11  ;;  %v716_v17 = vadd.f32 %v715_v14, %v663_v10  ;;  %v672_v21 = vpop.f32.mrf.mxu1 }
 0x11a   :  { %v719_v18 = vpop.f32.mrf.mxu0  ;;  %v673_v27 = vadd.f32 %v672_v21, %v117_v45 }
 0x11b   :  { %v881_v20 = vpack.c.bf16 %v716_v17, %v714_v16  ;;  %v720_v23 = vadd.f32 %v719_v18, %v667_v15 }
 0x11c   :  { %v721_v22 = vpop.f32.mrf.mxu0 }
 0x11d   :  { %779 = vst [vmem:[%s1317_s3 + $0x18] sm:$0xff] %v881_v20  ;;  %v722_v24 = vadd.f32 %v721_v22, %v669_v19 }
 0x11e   :  { %v723_v25 = vpop.f32.mrf.mxu0 }
 0x11f   :  { %v883_v28 = vpack.c.bf16 %v722_v24, %v720_v23  ;;  %v724_v30 = vadd.f32 %v723_v25, %v671_v26 }
 0x120   :  { %v725_v29 = vpop.f32.mrf.mxu0 }
 0x121   :  { %781 = vst [vmem:[%s1317_s3 + $0x28] sm:$0xff] %v883_v28  ;;  %v726_v31 = vadd.f32 %v725_v29, %v673_v27 }
 0x123   :  { %v885_v32 = vpack.c.bf16 %v726_v31, %v724_v30 }
 0x125   :  { %783 = vst [vmem:[%s1317_s3 + $0x38] sm:$0xff] %v885_v32 }

// kernel: generator_forward.11
= control target key start
LH: loop header
LB: loop body
LE: loop exit
PB: predicated region body
PF: predicated region fallthrough
CT: control target
= control target key end

     0   :  { %v873_v1 = vmov 0   ;;  %vm641_vm0 = vcmask 535552   ;;  %s1109_s1 = inlined_call_operand.vmem [shape: bf16[128,578], index: 1, kind: input, shape index: {}]   ;;  %s1110_s0 = inlined_call_operand.vmem [shape: bf16[64,128], index: 0, kind: input, shape index: {}]   ;;  %s1111_s2 = inlined_call_operand.vmem [shape: bf16[64,578], index: 2, kind: output, shape index: {}]  }
   0x1   :  { %v813_v0 = vld [vmem:[%s1109_s1 + $0x11c] ss:$20 sps:$4 sm:$0xff]   ;;  %332 = vmatprep.mubr.bf16.mxu0 %v873_v1  ;;  %405 = vmatprep.mubr.bf16.mxu1 %v873_v1  ;;  %v815_v2 = vld [vmem:[%s1109_s1 + $0x124] ss:$20 sps:$4 sm:$0xff]   ;;  %v818_v4 = vld [vmem:[%s1109_s1 + $0x120] ss:$20 sps:$4 sm:$0xff]  }
   0x2   :  { %300 = vmatprep.subr.bf16.mxu0 %v813_v0  ;;  %v817_v3 = vld [vmem:[%s1109_s1 + $0x118] ss:$20 sps:$4 sm:$0xff]   ;;  %373 = vmatprep.subr.bf16.mxu1 %v815_v2  ;;  %v819_v5 = vld [vmem:[%s1109_s1 + $0xf4] ss:$20 sps:$4 sm:$0xff]   ;;  %v821_v6 = vld [vmem:[%s1109_s1 + $0xfc] ss:$20 sps:$4 sm:$0xff]  }
   0x3   :  { %301 = vmatpush1.bf16.msra.mxu0 %v817_v3  ;;  %374 = vmatpush1.bf16.msra.mxu1 %v818_v4  ;;  %v823_v7 = vld [vmem:[%s1109_s1 + $0xf0] ss:$20 sps:$4 sm:$0xff]   ;;  %v824_v8 = vld [vmem:[%s1109_s1 + $0xf8] ss:$20 sps:$4 sm:$0xff]   ;;  %v827_v10 = vld [vmem:[%s1109_s1 + $0xd4] ss:$20 sps:$4 sm:$0xff]  }
   0x4   :  { %302 = vmatprep.subr.bf16.mxu0 %v819_v5  ;;  %375 = vmatprep.subr.bf16.mxu1 %v821_v6  ;;  %v825_v9 = vld [vmem:[%s1109_s1 + $0xcc] ss:$20 sps:$4 sm:$0xff]   ;;  %v829_v11 = vld [vmem:[%s1109_s1 + $0xc8] ss:$20 sps:$4 sm:$0xff]   ;;  %v830_v12 = vld [vmem:[%s1109_s1 + $0xd0] ss:$20 sps:$4 sm:$0xff]  }
   0x5   :  { %v831_v13 = vld [vmem:[%s1109_s1 + $0xa4] ss:$20 sps:$4 sm:$0xff]   ;;  %v833_v14 = vld [vmem:[%s1109_s1 + $0xac] ss:$20 sps:$4 sm:$0xff]   ;;  %v836_v16 = vld [vmem:[%s1109_s1 + $0xa8] ss:$20 sps:$4 sm:$0xff]  }
   0x6   :  { %v835_v15 = vld [vmem:[%s1109_s1 + $0xa0] ss:$20 sps:$4 sm:$0xff]   ;;  %v837_v17 = vld [vmem:[%s1109_s1 + $0x7c] ss:$20 sps:$4 sm:$0xff]   ;;  %v839_v18 = vld [vmem:[%s1109_s1 + $0x84] ss:$20 sps:$4 sm:$0xff]  }
   0x7   :  { %303 = vmatpush1.bf16.msra.mxu0 %v823_v7  ;;  %376 = vmatpush1.bf16.msra.mxu1 %v824_v8  ;;  %v841_v19 = vld [vmem:[%s1109_s1 + $0x78] ss:$20 sps:$4 sm:$0xff]   ;;  %v842_v20 = vld [vmem:[%s1109_s1 + $0x80] ss:$20 sps:$4 sm:$0xff]   ;;  %v845_v22 = vld [vmem:[%s1109_s1 + $0x5c] ss:$20 sps:$4 sm:$0xff]  }
   0x8   :  { %304 = vmatprep.subr.bf16.mxu0 %v825_v9  ;;  %377 = vmatprep.subr.bf16.mxu1 %v827_v10  ;;  %v843_v21 = vld [vmem:[%s1109_s1 + $0x54] ss:$20 sps:$4 sm:$0xff]   ;;  %v847_v23 = vld [vmem:[%s1109_s1 + $0x50] ss:$20 sps:$4 sm:$0xff]   ;;  %v848_v24 = vld [vmem:[%s1109_s1 + $0x58] ss:$20 sps:$4 sm:$0xff]  }
   0x9   :  { %v849_v25 = vld [vmem:[%s1109_s1 + $0x2c] ss:$20 sps:$4 sm:$0xff]   ;;  %v851_v26 = vld [vmem:[%s1109_s1 + $0x34] ss:$20 sps:$4 sm:$0xff]   ;;  %v854_v28 = vld [vmem:[%s1109_s1 + $0x30] ss:$20 sps:$4 sm:$0xff]  }
   0xa   :  { %v853_v27 = vld [vmem:[%s1109_s1 + $0x28] ss:$20 sps:$4 sm:$0xff]   ;;  %v855_v29 = vld [vmem:[%s1109_s1 + $0x4] ss:$20 sps:$4 sm:$0xff]   ;;  %v857_v30 = vld [vmem:[%s1109_s1 + $0xc] ss:$20 sps:$4 sm:$0xff]  }
   0xb   :  { %305 = vmatpush1.bf16.msra.mxu0 %v829_v11  ;;  %378 = vmatpush1.bf16.msra.mxu1 %v830_v12  ;;  %v859_v31 = vld [vmem:[%s1109_s1] ss:$20 sps:$4 sm:$0xff]   ;;  %v860_v32 = vld [vmem:[%s1109_s1 + $0x8] ss:$20 sps:$4 sm:$0xff]   ;;  %v865_v36 = vld [vmem:[%s1109_s1 + $0xd8] ss:$20 sps:$4 sm:$0xff]  }
   0xc   :  { %306 = vmatprep.subr.bf16.mxu0 %v831_v13  ;;  %379 = vmatprep.subr.bf16.mxu1 %v833_v14  ;;  %v862_v33 = vld [vmem:[%s1109_s1 + $0x128] ss:$20 sps:$4 sm:$0xff]   ;;  %v861_v34 = vld [vmem:[%s1110_s0] sm:$0xff]   ;;  %v867_v40 = vld [vmem:[%s1110_s0 + $0x10] sm:$0xff]  }
   0xd   :  { %v863_v35 = vld [vmem:[%s1109_s1 + $0x100] ss:$20 sps:$4 sm:$0xff]   ;;  %v864_v37 = vld [vmem:[%s1110_s0 + $0x8] sm:$0xff]   ;;  %v866_v38 = vld [vmem:[%s1109_s1 + $0xb0] ss:$20 sps:$4 sm:$0xff]  }
   0xe   :  { %v868_v39 = vld [vmem:[%s1109_s1 + $0x88] ss:$20 sps:$4 sm:$0xff]   ;;  %v869_v41 = vld [vmem:[%s1109_s1 + $0x60] ss:$20 sps:$4 sm:$0xff]   ;;  %v871_v42 = vld [vmem:[%s1109_s1 + $0x38] ss:$20 sps:$4 sm:$0xff]  }
   0xf   :  { %307 = vmatpush1.bf16.msra.mxu0 %v835_v15  ;;  %380 = vmatpush1.bf16.msra.mxu1 %v836_v16  ;;  %v870_v43 = vld [vmem:[%s1110_s0 + $0x18] sm:$0xff]   ;;  %v872_v44 = vld [vmem:[%s1109_s1 + $0x10] ss:$20 sps:$4 sm:$0xff]  }
  0x10   :  { %308 = vmatprep.subr.bf16.mxu0 %v837_v17  ;;  %381 = vmatprep.subr.bf16.mxu1 %v839_v18 }
  0x13   :  { %309 = vmatpush1.bf16.msra.mxu0 %v841_v19  ;;  %382 = vmatpush1.bf16.msra.mxu1 %v842_v20 }
  0x14   :  { %310 = vmatprep.subr.bf16.mxu0 %v843_v21  ;;  %383 = vmatprep.subr.bf16.mxu1 %v845_v22 }
  0x17   :  { %311 = vmatpush1.bf16.msra.mxu0 %v847_v23  ;;  %384 = vmatpush1.bf16.msra.mxu1 %v848_v24 }
  0x18   :  { %312 = vmatprep.subr.bf16.mxu0 %v849_v25  ;;  %385 = vmatprep.subr.bf16.mxu1 %v851_v26 }
  0x1b   :  { %313 = vmatpush1.bf16.msra.mxu0 %v853_v27  ;;  %386 = vmatpush1.bf16.msra.mxu1 %v854_v28 }
  0x1c   :  { %314 = vmatprep.subr.bf16.mxu0 %v855_v29  ;;  %387 = vmatprep.subr.bf16.mxu1 %v857_v30 }
  0x1f   :  { %315 = vmatpush1.bf16.msra.mxu0 %v859_v31  ;;  %388 = vmatpush1.bf16.msra.mxu1 %v860_v32 }
  0x20   :  { %772 = vmatprep.subr.bf16.mxu0 %v862_v33  ;;  %796 = vmatprep.subr.bf16.mxu1 %v862_v33 }
  0x22   :  { %333 = vmatmul.mubr.bf16.vlgmr.msra.gmra.mxu0 %v861_v34  ;;  %406 = vmatmul.mubr.bf16.vlgmr.msra.gmra.mxu1 %v861_v34 }
  0x23   :  { %773 = vmatpush3.bf16.msra.mxu0 %v862_v33  ;;  %804 = vmatpush3.bf16.msra.mxu1 %v862_v33 }
  0x24   :  { %774 = vmatprep.subr.bf16.mxu0 %v863_v35  ;;  %797 = vmatprep.subr.bf16.mxu1 %v863_v35 }
  0x25   :  { %342 = vmatprep.mubr.bf16.mxu0 %v873_v1  ;;  %415 = vmatprep.mubr.bf16.mxu1 %v873_v1 }
  0x27   :  { %775 = vmatpush3.bf16.msra.mxu0 %v863_v35  ;;  %805 = vmatpush3.bf16.msra.mxu1 %v863_v35 }
  0x28   :  { %776 = vmatprep.subr.bf16.mxu0 %v865_v36  ;;  %798 = vmatprep.subr.bf16.mxu1 %v865_v36 }
  0x2a   :  { %343 = vmatmul.mubr.bf16.gmra.mxu0 %v864_v37  ;;  %416 = vmatmul.mubr.bf16.gmra.mxu1 %v864_v37 }
  0x2b   :  { %777 = vmatpush3.bf16.msra.mxu0 %v865_v36  ;;  %806 = vmatpush3.bf16.msra.mxu1 %v865_v36 }
  0x2c   :  { %778 = vmatprep.subr.bf16.mxu0 %v866_v38  ;;  %799 = vmatprep.subr.bf16.mxu1 %v866_v38 }
  0x2d   :  { %352 = vmatprep.mubr.bf16.mxu0 %v873_v1  ;;  %425 = vmatprep.mubr.bf16.mxu1 %v873_v1 }
  0x2f   :  { %779 = vmatpush3.bf16.msra.mxu0 %v866_v38  ;;  %807 = vmatpush3.bf16.msra.mxu1 %v866_v38 }
  0x30   :  { %780 = vmatprep.subr.bf16.mxu0 %v868_v39  ;;  %800 = vmatprep.subr.bf16.mxu1 %v868_v39 }
  0x32   :  { %353 = vmatmul.mubr.bf16.gmra.mxu0 %v867_v40  ;;  %426 = vmatmul.mubr.bf16.gmra.mxu1 %v867_v40 }
  0x33   :  { %781 = vmatpush3.bf16.msra.mxu0 %v868_v39  ;;  %808 = vmatpush3.bf16.msra.mxu1 %v868_v39 }
  0x34   :  { %782 = vmatprep.subr.bf16.mxu0 %v869_v41  ;;  %801 = vmatprep.subr.bf16.mxu1 %v869_v41 }
  0x35   :  { %362 = vmatprep.mubr.bf16.mxu0 %v873_v1  ;;  %435 = vmatprep.mubr.bf16.mxu1 %v873_v1 }
  0x37   :  { %783 = vmatpush3.bf16.msra.mxu0 %v869_v41  ;;  %809 = vmatpush3.bf16.msra.mxu1 %v869_v41 }
  0x38   :  { %784 = vmatprep.subr.bf16.mxu0 %v871_v42  ;;  %802 = vmatprep.subr.bf16.mxu1 %v871_v42 }
  0x3a   :  { %363 = vmatmul.mubr.bf16.gmra.mxu0 %v870_v43  ;;  %436 = vmatmul.mubr.bf16.gmra.mxu1 %v870_v43 }
  0x3b   :  { %785 = vmatpush3.bf16.msra.mxu0 %v871_v42  ;;  %810 = vmatpush3.bf16.msra.mxu1 %v871_v42 }
  0x3c   :  { %786 = vmatprep.subr.bf16.mxu0 %v872_v44  ;;  %803 = vmatprep.subr.bf16.mxu1 %v872_v44 }
  0x3d   :  { %788 = vmatprep.mubr.bf16.mxu0 %v861_v34  ;;  %792 = vmatprep.mubr.bf16.mxu1 %v867_v40 }
  0x3f   :  { %787 = vmatpush3.bf16.msra.mxu0 %v872_v44  ;;  %811 = vmatpush3.bf16.msra.mxu1 %v872_v44 }
  0x42   :  { %789 = vmatmul.mubr.bf16.vlgmr.msra.gmra.mxu0 %v864_v37  ;;  %793 = vmatmul.mubr.bf16.vlgmr.msra.gmra.mxu1 %v870_v43 }
  0xe2   :  { %v334_v45 = vpop.f32.mrf.mxu0  ;;  %v407_v46 = vpop.f32.mrf.mxu1 }
  0xe4   :  { %v336_v47 = vpop.f32.mrf.mxu0  ;;  %v409_v48 = vpop.f32.mrf.mxu1 }
  0xe5   :  { %v736_v49 = vpack.c.bf16 %v336_v47, %v334_v45  ;;  %v737_v50 = vpack.c.bf16 %v409_v48, %v407_v46 }
  0xe6   :  { %v338_v51 = vpop.f32.mrf.mxu0  ;;  %v411_v52 = vpop.f32.mrf.mxu1 }
  0xe7   :  { %639 = vst [vmem:[%s1111_s2] sm:$0xff] %v736_v49  ;;  %640 = vst [vmem:[%s1111_s2 + $0x8] sm:$0xff] %v737_v50 }
  0xe8   :  { %v340_v53 = vpop.f32.mrf.mxu0  ;;  %v413_v54 = vpop.f32.mrf.mxu1 }
  0xe9   :  { %v739_v55 = vpack.c.bf16 %v340_v53, %v338_v51  ;;  %v740_v56 = vpack.c.bf16 %v413_v54, %v411_v52 }
  0xea   :  { %v344_v57 = vpop.f32.mrf.mxu0  ;;  %v417_v58 = vpop.f32.mrf.mxu1 }
  0xeb   :  { %643 = vst [vmem:[%s1111_s2 + $0x14] sm:$0xff] %v739_v55  ;;  %644 = vst [vmem:[%s1111_s2 + $0x1c] sm:$0xff] %v740_v56 }
  0xec   :  { %v346_v59 = vpop.f32.mrf.mxu0  ;;  %v419_v60 = vpop.f32.mrf.mxu1 }
  0xed   :  { %v742_v61 = vpack.c.bf16 %v346_v59, %v344_v57  ;;  %v743_v62 = vpack.c.bf16 %v419_v60, %v417_v58 }
  0xee   :  { %v348_v63 = vpop.f32.mrf.mxu0  ;;  %v421_v0 = vpop.f32.mrf.mxu1 }
  0xef   :  { %646 = vst [vmem:[%s1111_s2 + $0x28] sm:$0xff] %v742_v61  ;;  %647 = vst [vmem:[%s1111_s2 + $0x30] sm:$0xff] %v743_v62 }
  0xf0   :  { %v350_v1 = vpop.f32.mrf.mxu0  ;;  %v423_v2 = vpop.f32.mrf.mxu1 }
  0xf1   :  { %v745_v3 = vpack.c.bf16 %v350_v1, %v348_v63  ;;  %v746_v4 = vpack.c.bf16 %v423_v2, %v421_v0 }
  0xf2   :  { %v354_v5 = vpop.f32.mrf.mxu0  ;;  %v427_v6 = vpop.f32.mrf.mxu1 }
  0xf3   :  { %649 = vst [vmem:[%s1111_s2 + $0x3c] sm:$0xff] %v745_v3  ;;  %650 = vst [vmem:[%s1111_s2 + $0x44] sm:$0xff] %v746_v4 }
  0xf4   :  { %v356_v7 = vpop.f32.mrf.mxu0  ;;  %v429_v8 = vpop.f32.mrf.mxu1 }
  0xf5   :  { %v748_v9 = vpack.c.bf16 %v356_v7, %v354_v5  ;;  %v749_v10 = vpack.c.bf16 %v429_v8, %v427_v6 }
  0xf6   :  { %v358_v11 = vpop.f32.mrf.mxu0  ;;  %v431_v12 = vpop.f32.mrf.mxu1 }
  0xf7   :  { %652 = vst [vmem:[%s1111_s2 + $0x50] sm:$0xff] %v748_v9  ;;  %653 = vst [vmem:[%s1111_s2 + $0x58] sm:$0xff] %v749_v10 }
  0xf8   :  { %v360_v13 = vpop.f32.mrf.mxu0  ;;  %v433_v14 = vpop.f32.mrf.mxu1 }
  0xf9   :  { %v751_v15 = vpack.c.bf16 %v360_v13, %v358_v11  ;;  %v752_v16 = vpack.c.bf16 %v433_v14, %v431_v12 }
  0xfa   :  { %v364_v17 = vpop.f32.mrf.mxu0  ;;  %v437_v18 = vpop.f32.mrf.mxu1 }
  0xfb   :  { %655 = vst [vmem:[%s1111_s2 + $0x64] sm:$0xff] %v751_v15  ;;  %656 = vst [vmem:[%s1111_s2 + $0x6c] sm:$0xff] %v752_v16 }
  0xfc   :  { %v366_v19 = vpop.f32.mrf.mxu0  ;;  %v439_v20 = vpop.f32.mrf.mxu1 }
  0xfd   :  { %v754_v21 = vpack.c.bf16 %v366_v19, %v364_v17  ;;  %v755_v22 = vpack.c.bf16 %v439_v20, %v437_v18 }
  0xfe   :  { %v368_v23 = vpop.f32.mrf.mxu0  ;;  %v441_v24 = vpop.f32.mrf.mxu1 }
  0xff   :  { %658 = vst [vmem:[%s1111_s2 + $0x78] sm:$0xff] %v754_v21  ;;  %659 = vst [vmem:[%s1111_s2 + $0x80] sm:$0xff] %v755_v22 }
 0x100   :  { %v370_v25 = vpop.f32.mrf.mxu0  ;;  %v443_v26 = vpop.f32.mrf.mxu1 }
 0x101   :  { %v757_v27 = vpack.c.bf16 %v370_v25, %v368_v23  ;;  %v758_v28 = vpack.c.bf16 %v443_v26, %v441_v24 }
 0x102   :  { %v790_v29 = vpop.f32.mrf.mxu0  ;;  %v794_v30 = vpop.f32.mrf.mxu1 }
 0x103   :  { %661 = vst [vmem:[%s1111_s2 + $0x8c] sm:$0xff] %v757_v27  ;;  %662 = vst [vmem:[%s1111_s2 + $0x94] sm:$0xff] %v758_v28  ;;  %v744_v31 = vpack.c.bf16 %v790_v29, %v790_v29  ;;  %v756_v32 = vpack.c.bf16 %v794_v30, %v794_v30 }
 0x104   :  { %v480_v33 = vpop.f32.mrf.mxu0  ;;  %v496_v34 = vpop.f32.mrf.mxu1 }
 0x105   :  { %648 = vst.msk [vmem:[%s1111_s2 + $0x38] sm:$0xf] %vm641_vm0, %v744_v31  ;;  %660 = vst.msk [vmem:[%s1111_s2 + $0x88] sm:$0xf] %vm641_vm0, %v756_v32  ;;  %v738_v35 = vpack.c.bf16 %v480_v33, %v480_v33  ;;  %v750_v36 = vpack.c.bf16 %v496_v34, %v496_v34 }
 0x106   :  { %v791_v37 = vpop.f32.mrf.mxu0  ;;  %v795_v38 = vpop.f32.mrf.mxu1 }
 0x107   :  { %642 = vst.msk [vmem:[%s1111_s2 + $0x10] sm:$0xf] %vm641_vm0, %v738_v35  ;;  %654 = vst.msk [vmem:[%s1111_s2 + $0x60] sm:$0xf] %vm641_vm0, %v750_v36  ;;  %v747_v39 = vpack.c.bf16 %v791_v37, %v791_v37  ;;  %v759_v40 = vpack.c.bf16 %v795_v38, %v795_v38 }
 0x108   :  { %v483_v41 = vpop.f32.mrf.mxu0  ;;  %v499_v42 = vpop.f32.mrf.mxu1 }
 0x109   :  { %651 = vst.msk [vmem:[%s1111_s2 + $0x4c] sm:$0xf] %vm641_vm0, %v747_v39  ;;  %663 = vst.msk [vmem:[%s1111_s2 + $0x9c] sm:$0xf] %vm641_vm0, %v759_v40  ;;  %v741_v43 = vpack.c.bf16 %v483_v41, %v483_v41  ;;  %v753_v44 = vpack.c.bf16 %v499_v42, %v499_v42 }
 0x10b   :  { %645 = vst.msk [vmem:[%s1111_s2 + $0x24] sm:$0xf] %vm641_vm0, %v741_v43  ;;  %657 = vst.msk [vmem:[%s1111_s2 + $0x74] sm:$0xf] %vm641_vm0, %v753_v44 }

// kernel: generator_forward.12
= control target key start
LH: loop header
LB: loop body
LE: loop exit
PB: predicated region body
PF: predicated region fallthrough
CT: control target
= control target key end

     0   :  { %s1299_s12 = smov 0   ;;  %s1301_s13 = smov 0   ;;  %s1631_s0 = inlined_call_operand.vmem [shape: bf16[16,144], index: 0, kind: input, shape index: {}]   ;;  %s1632_s1 = inlined_call_operand.vmem [shape: bf16[144,2048], index: 1, kind: input, shape index: {}]   ;;  %s1633_s2 = inlined_call_operand.vmem [shape: f32[16,1], index: 2, kind: input, shape index: {}]   ;;  %s1634_s3 = inlined_call_operand.vmem [shape: bf16[16,2048], index: 3, kind: output, shape index: {}]  }
   0x1   :  { %s1303_s14 = smov 0  }
   0x2 LB: > { %s1114_s15 = sadd.s32 4294967295, %s1276_s14   ;;  %s1316_s16 = sadd.s32 1, %s1276_s14   ;;  %s1276_s14 = sphi %s1303_s14, %s1638_s14   ;;  %s1272_s13 = sphi %s1301_s13, %s1637_s13   ;;  %s1268_s12 = sphi %s1299_s12, %s1636_s12  }
   0x3   : > { %s38_s17 = ssub.s32 %s1276_s14, %s1316_s16  ;;  %s41_s18 = sadd.s32 1, %s1272_s13 }
   0x4   : > { %p39_p0 = scmp.eq.s32.totalorder %s38_s17, 0  ;;  %p48_p1 = scmp.ne.s32.totalorder %s1272_s13, %s1268_s12 }
   0x5   : > { %p49_p2 = scmp.eq.s32.totalorder %s1276_s14, 0  ;;  %p99_p3 = scmp.eq.s32.totalorder %s1114_s15, 1 }
   0x6   : > { %s1327_s19 = scalar_select %p39_p0, %s1272_s13, %s41_s18  }
   0x7   : > { %p50_p4 = por %p49_p2, %p48_p1  ;;  %p1329_p5 = por %p99_p3, %p48_p1 }
   0x8   : > { %p1117_p6 = scmp.ge.s32.totalorder %s1276_s14, 2 }
   0xa   : > { %127 = sbr.rel (%p1117_p6) target bundleno = 56 (0x38), region = 24 }
   0xf   : > { %130 = sbr.rel (!%p50_p4) target bundleno = 56 (0x38), region = 28  ;;  %s132_s21 = sand.u32 (%p50_p4), 1, %s1272_s13  }
  0x10   : > { %s1213_s22 = sshll.u32 (%p50_p4), %s1276_s14, 5  ;;  %s1223_s23 = smul.u32 (%p50_p4), 576, %s132_s21 }
  0x11   : > { %s1339_s26 = scalar_lea.vmem (%p50_p4), %s1632_s1, %s1213_s22 }
  0x12   : > { %v150_v0 = vld [vmem:[%s1339_s26] sm:$0xff] (%p50_p4)  ;;  %v152_v1 = vld [vmem:[%s1339_s26 + $0x8] sm:$0xff] (%p50_p4)  ;;  %v154_v2 = vld [vmem:[%s1339_s26 + $0x10] sm:$0xff] (%p50_p4)  ;;  %s1347_s27 = scalar_lea.vmem (%p50_p4), [#allocation2], %s1223_s23 }
  0x13   : > { %v156_v3 = vld [vmem:[%s1339_s26 + $0x18] sm:$0xff] (%p50_p4)  ;;  %v158_v4 = vld [vmem:[%s1339_s26 + $0x40] sm:$0xff] (%p50_p4)  ;;  %v160_v5 = vld [vmem:[%s1339_s26 + $0x48] sm:$0xff] (%p50_p4)  ;;  %151 = vst [vmem:[%s1347_s27] sm:$0xff] (%p50_p4), %v150_v0 }
  0x14   : > { %153 = vst [vmem:[%s1347_s27 + $0x8] sm:$0xff] %v152_v1  ;;  %155 = vst [vmem:[%s1347_s27 + $0x10] sm:$0xff] %v154_v2  ;;  %v162_v6 = vld [vmem:[%s1339_s26 + $0x50] sm:$0xff]  ;;  %v164_v7 = vld [vmem:[%s1339_s26 + $0x58] sm:$0xff] }
  0x15   : > { %157 = vst [vmem:[%s1347_s27 + $0x18] sm:$0xff] %v156_v3  ;;  %159 = vst [vmem:[%s1347_s27 + $0x20] sm:$0xff] %v158_v4  ;;  %v166_v8 = vld [vmem:[%s1339_s26 + $0x80] sm:$0xff]  ;;  %v168_v9 = vld [vmem:[%s1339_s26 + $0x88] sm:$0xff] }
  0x16   : > { %161 = vst [vmem:[%s1347_s27 + $0x28] sm:$0xff] %v160_v5  ;;  %163 = vst [vmem:[%s1347_s27 + $0x30] sm:$0xff] %v162_v6  ;;  %v170_v10 = vld [vmem:[%s1339_s26 + $0x90] sm:$0xff]  ;;  %v172_v11 = vld [vmem:[%s1339_s26 + $0x98] sm:$0xff] }
  0x17   : > { %165 = vst [vmem:[%s1347_s27 + $0x38] sm:$0xff] %v164_v7  ;;  %167 = vst [vmem:[%s1347_s27 + $0x40] sm:$0xff] %v166_v8  ;;  %v174_v12 = vld [vmem:[%s1339_s26 + $0xc0] sm:$0xff]  ;;  %v176_v13 = vld [vmem:[%s1339_s26 + $0xc8] sm:$0xff] }
  0x18   : > { %169 = vst [vmem:[%s1347_s27 + $0x48] sm:$0xff] %v168_v9  ;;  %171 = vst [vmem:[%s1347_s27 + $0x50] sm:$0xff] %v170_v10  ;;  %v178_v14 = vld [vmem:[%s1339_s26 + $0xd0] sm:$0xff]  ;;  %v180_v15 = vld [vmem:[%s1339_s26 + $0xd8] sm:$0xff] }
  0x19   : > { %173 = vst [vmem:[%s1347_s27 + $0x58] sm:$0xff] %v172_v11  ;;  %175 = vst [vmem:[%s1347_s27 + $0x60] sm:$0xff] %v174_v12  ;;  %v182_v16 = vld [vmem:[%s1339_s26 + $0x100] sm:$0xff]  ;;  %v184_v17 = vld [vmem:[%s1339_s26 + $0x108] sm:$0xff] }
  0x1a   : > { %177 = vst [vmem:[%s1347_s27 + $0x68] sm:$0xff] %v176_v13  ;;  %179 = vst [vmem:[%s1347_s27 + $0x70] sm:$0xff] %v178_v14  ;;  %v186_v18 = vld [vmem:[%s1339_s26 + $0x110] sm:$0xff]  ;;  %v188_v19 = vld [vmem:[%s1339_s26 + $0x118] sm:$0xff] }
  0x1b   : > { %181 = vst [vmem:[%s1347_s27 + $0x78] sm:$0xff] %v180_v15  ;;  %183 = vst [vmem:[%s1347_s27 + $0x80] sm:$0xff] %v182_v16  ;;  %v190_v20 = vld [vmem:[%s1339_s26 + $0x140] sm:$0xff]  ;;  %v192_v21 = vld [vmem:[%s1339_s26 + $0x148] sm:$0xff] }
  0x1c   : > { %185 = vst [vmem:[%s1347_s27 + $0x88] sm:$0xff] %v184_v17  ;;  %187 = vst [vmem:[%s1347_s27 + $0x90] sm:$0xff] %v186_v18  ;;  %v194_v22 = vld [vmem:[%s1339_s26 + $0x150] sm:$0xff]  ;;  %v196_v23 = vld [vmem:[%s1339_s26 + $0x158] sm:$0xff] }
  0x1d   : > { %189 = vst [vmem:[%s1347_s27 + $0x98] sm:$0xff] %v188_v19  ;;  %191 = vst [vmem:[%s1347_s27 + $0xa0] sm:$0xff] %v190_v20  ;;  %v198_v24 = vld [vmem:[%s1339_s26 + $0x180] sm:$0xff]  ;;  %v200_v25 = vld [vmem:[%s1339_s26 + $0x188] sm:$0xff] }
  0x1e   : > { %193 = vst [vmem:[%s1347_s27 + $0xa8] sm:$0xff] %v192_v21  ;;  %195 = vst [vmem:[%s1347_s27 + $0xb0] sm:$0xff] %v194_v22  ;;  %v202_v26 = vld [vmem:[%s1339_s26 + $0x190] sm:$0xff]  ;;  %v204_v27 = vld [vmem:[%s1339_s26 + $0x198] sm:$0xff] }
  0x1f   : > { %197 = vst [vmem:[%s1347_s27 + $0xb8] sm:$0xff] %v196_v23  ;;  %199 = vst [vmem:[%s1347_s27 + $0xc0] sm:$0xff] %v198_v24  ;;  %v206_v28 = vld [vmem:[%s1339_s26 + $0x1c0] sm:$0xff]  ;;  %v208_v29 = vld [vmem:[%s1339_s26 + $0x1c8] sm:$0xff] }
  0x20   : > { %201 = vst [vmem:[%s1347_s27 + $0xc8] sm:$0xff] %v200_v25  ;;  %203 = vst [vmem:[%s1347_s27 + $0xd0] sm:$0xff] %v202_v26  ;;  %v210_v30 = vld [vmem:[%s1339_s26 + $0x1d0] sm:$0xff]  ;;  %v212_v31 = vld [vmem:[%s1339_s26 + $0x1d8] sm:$0xff] }
  0x21   : > { %205 = vst [vmem:[%s1347_s27 + $0xd8] sm:$0xff] %v204_v27  ;;  %207 = vst [vmem:[%s1347_s27 + $0xe0] sm:$0xff] %v206_v28  ;;  %v214_v32 = vld [vmem:[%s1339_s26 + $0x200] sm:$0xff]  ;;  %v216_v33 = vld [vmem:[%s1339_s26 + $0x208] sm:$0xff] }
  0x22   : > { %209 = vst [vmem:[%s1347_s27 + $0xe8] sm:$0xff] %v208_v29  ;;  %211 = vst [vmem:[%s1347_s27 + $0xf0] sm:$0xff] %v210_v30  ;;  %v218_v34 = vld [vmem:[%s1339_s26 + $0x210] sm:$0xff]  ;;  %v220_v35 = vld [vmem:[%s1339_s26 + $0x218] sm:$0xff] }
  0x23   : > { %213 = vst [vmem:[%s1347_s27 + $0xf8] sm:$0xff] %v212_v31  ;;  %215 = vst [vmem:[%s1347_s27 + $0x100] sm:$0xff] %v214_v32  ;;  %v222_v36 = vld [vmem:[%s1339_s26 + $0x240] sm:$0xff]  ;;  %v224_v37 = vld [vmem:[%s1339_s26 + $0x248] sm:$0xff] }
  0x24   : > { %217 = vst [vmem:[%s1347_s27 + $0x108] sm:$0xff] %v216_v33  ;;  %219 = vst [vmem:[%s1347_s27 + $0x110] sm:$0xff] %v218_v34  ;;  %v226_v38 = vld [vmem:[%s1339_s26 + $0x250] sm:$0xff]  ;;  %v228_v39 = vld [vmem:[%s1339_s26 + $0x258] sm:$0xff] }
  0x25   : > { %221 = vst [vmem:[%s1347_s27 + $0x118] sm:$0xff] %v220_v35  ;;  %223 = vst [vmem:[%s1347_s27 + $0x120] sm:$0xff] %v222_v36  ;;  %v230_v40 = vld [vmem:[%s1339_s26 + $0x280] sm:$0xff]  ;;  %v232_v41 = vld [vmem:[%s1339_s26 + $0x288] sm:$0xff] }
  0x26   : > { %225 = vst [vmem:[%s1347_s27 + $0x128] sm:$0xff] %v224_v37  ;;  %227 = vst [vmem:[%s1347_s27 + $0x130] sm:$0xff] %v226_v38  ;;  %v234_v42 = vld [vmem:[%s1339_s26 + $0x290] sm:$0xff]  ;;  %v236_v43 = vld [vmem:[%s1339_s26 + $0x298] sm:$0xff] }
  0x27   : > { %229 = vst [vmem:[%s1347_s27 + $0x138] sm:$0xff] %v228_v39  ;;  %231 = vst [vmem:[%s1347_s27 + $0x140] sm:$0xff] %v230_v40  ;;  %v238_v44 = vld [vmem:[%s1339_s26 + $0x2c0] sm:$0xff]  ;;  %v240_v45 = vld [vmem:[%s1339_s26 + $0x2c8] sm:$0xff] }
  0x28   : > { %233 = vst [vmem:[%s1347_s27 + $0x148] sm:$0xff] %v232_v41  ;;  %235 = vst [vmem:[%s1347_s27 + $0x150] sm:$0xff] %v234_v42  ;;  %v242_v46 = vld [vmem:[%s1339_s26 + $0x2d0] sm:$0xff]  ;;  %v244_v47 = vld [vmem:[%s1339_s26 + $0x2d8] sm:$0xff] }
  0x29   : > { %237 = vst [vmem:[%s1347_s27 + $0x158] sm:$0xff] %v236_v43  ;;  %239 = vst [vmem:[%s1347_s27 + $0x160] sm:$0xff] %v238_v44  ;;  %v246_v48 = vld [vmem:[%s1339_s26 + $0x300] sm:$0xff]  ;;  %v248_v49 = vld [vmem:[%s1339_s26 + $0x308] sm:$0xff] }
  0x2a   : > { %241 = vst [vmem:[%s1347_s27 + $0x168] sm:$0xff] %v240_v45  ;;  %243 = vst [vmem:[%s1347_s27 + $0x170] sm:$0xff] %v242_v46  ;;  %v250_v50 = vld [vmem:[%s1339_s26 + $0x310] sm:$0xff]  ;;  %v252_v51 = vld [vmem:[%s1339_s26 + $0x318] sm:$0xff] }
  0x2b   : > { %245 = vst [vmem:[%s1347_s27 + $0x178] sm:$0xff] %v244_v47  ;;  %247 = vst [vmem:[%s1347_s27 + $0x180] sm:$0xff] %v246_v48  ;;  %v254_v52 = vld [vmem:[%s1339_s26 + $0x340] sm:$0xff]  ;;  %v256_v53 = vld [vmem:[%s1339_s26 + $0x348] sm:$0xff] }
  0x2c   : > { %249 = vst [vmem:[%s1347_s27 + $0x188] sm:$0xff] %v248_v49  ;;  %251 = vst [vmem:[%s1347_s27 + $0x190] sm:$0xff] %v250_v50  ;;  %v258_v54 = vld [vmem:[%s1339_s26 + $0x350] sm:$0xff]  ;;  %v260_v55 = vld [vmem:[%s1339_s26 + $0x358] sm:$0xff] }
  0x2d   : > { %253 = vst [vmem:[%s1347_s27 + $0x198] sm:$0xff] %v252_v51  ;;  %255 = vst [vmem:[%s1347_s27 + $0x1a0] sm:$0xff] %v254_v52  ;;  %v262_v56 = vld [vmem:[%s1339_s26 + $0x380] sm:$0xff]  ;;  %v264_v57 = vld [vmem:[%s1339_s26 + $0x388] sm:$0xff] }
  0x2e   : > { %257 = vst [vmem:[%s1347_s27 + $0x1a8] sm:$0xff] %v256_v53  ;;  %259 = vst [vmem:[%s1347_s27 + $0x1b0] sm:$0xff] %v258_v54  ;;  %v266_v58 = vld [vmem:[%s1339_s26 + $0x390] sm:$0xff]  ;;  %v268_v59 = vld [vmem:[%s1339_s26 + $0x398] sm:$0xff] }
  0x2f   : > { %261 = vst [vmem:[%s1347_s27 + $0x1b8] sm:$0xff] %v260_v55  ;;  %263 = vst [vmem:[%s1347_s27 + $0x1c0] sm:$0xff] %v262_v56  ;;  %v270_v60 = vld [vmem:[%s1339_s26 + $0x3c0] sm:$0xff]  ;;  %v272_v61 = vld [vmem:[%s1339_s26 + $0x3c8] sm:$0xff] }
  0x30   : > { %265 = vst [vmem:[%s1347_s27 + $0x1c8] sm:$0xff] %v264_v57  ;;  %267 = vst [vmem:[%s1347_s27 + $0x1d0] sm:$0xff] %v266_v58  ;;  %v274_v62 = vld [vmem:[%s1339_s26 + $0x3d0] sm:$0xff]  ;;  %v276_v63 = vld [vmem:[%s1339_s26 + $0x3d8] sm:$0xff] }
  0x31   : > { %269 = vst [vmem:[%s1347_s27 + $0x1d8] sm:$0xff] %v268_v59  ;;  %271 = vst [vmem:[%s1347_s27 + $0x1e0] sm:$0xff] %v270_v60  ;;  %v278_v0 = vld [vmem:[%s1339_s26 + $0x400] sm:$0xff]  ;;  %v280_v1 = vld [vmem:[%s1339_s26 + $0x408] sm:$0xff] }
  0x32   : > { %273 = vst [vmem:[%s1347_s27 + $0x1e8] sm:$0xff] %v272_v61  ;;  %275 = vst [vmem:[%s1347_s27 + $0x1f0] sm:$0xff] %v274_v62  ;;  %v282_v2 = vld [vmem:[%s1339_s26 + $0x410] sm:$0xff]  ;;  %v284_v3 = vld [vmem:[%s1339_s26 + $0x418] sm:$0xff] }
  0x33   : > { %277 = vst [vmem:[%s1347_s27 + $0x1f8] sm:$0xff] %v276_v63  ;;  %279 = vst [vmem:[%s1347_s27 + $0x200] sm:$0xff] %v278_v0  ;;  %v286_v4 = vld [vmem:[%s1339_s26 + $0x440] sm:$0xff]  ;;  %v288_v5 = vld [vmem:[%s1339_s26 + $0x448] sm:$0xff] }
  0x34   : > { %281 = vst [vmem:[%s1347_s27 + $0x208] sm:$0xff] %v280_v1  ;;  %283 = vst [vmem:[%s1347_s27 + $0x210] sm:$0xff] %v282_v2  ;;  %v290_v6 = vld [vmem:[%s1339_s26 + $0x450] sm:$0xff]  ;;  %v292_v7 = vld [vmem:[%s1339_s26 + $0x458] sm:$0xff] }
  0x35   : > { %285 = vst [vmem:[%s1347_s27 + $0x218] sm:$0xff] %v284_v3  ;;  %287 = vst [vmem:[%s1347_s27 + $0x220] sm:$0xff] %v286_v4 }
  0x36   : > { %289 = vst [vmem:[%s1347_s27 + $0x228] sm:$0xff] %v288_v5  ;;  %291 = vst [vmem:[%s1347_s27 + $0x230] sm:$0xff] %v290_v6 }
  0x37   : > { %293 = vst [vmem:[%s1347_s27 + $0x238] sm:$0xff] %v292_v7 }
  0x38 PF: > { %p1120_p7 = scmp.ge.s32.totalorder %s1276_s14, 1  ;;  %p298_p8 = scmp.lt.s32.totalorder %s1276_s14, 3 }
  0x3a   : > { %p299_p9 = pnand %p1120_p7, %p298_p8 }
  0x3b   : > { %s305_s28 = sand.u32 (!%p299_p9), 1, %s1268_s12  }
  0x3c   : > { %302 = sbr.rel (%p299_p9) target bundleno = 355 (0x163), region = 51  ;;  %s1121_s17 = sshll.u32 (!%p299_p9), %s305_s28, 6 }
  0x3d   : > { %s1224_s4 = smul.u32 (!%p299_p9), 576, %s305_s28  ;;  %s1596_s18 = scalar_lea.vmem (!%p299_p9), [#allocation3], %s1121_s17 }
  0x3f   : > { %s1504_s7 = scalar_lea.vmem (!%p299_p9), [#allocation2], %s1224_s4 }
  0x41   : > { %v1493_v8 = vld [vmem:[%s1631_s0 + $0x4] ss:$8 sps:$4 sm:$0xff]   ;;  %vm785_vm0 = vcmask 130048   ;;  %v1278_v10 = vmov 0   ;;  %s1222_s12 = sshll.u32 (%p1329_p5), %s1114_s15, 5 }
  0x42   : > { %v404_v9 = vld [vmem:[%s1633_s2] sm:$0xff]  ;;  %1196 = vmatprep.mubr.msk.bf16.mxu0 %vm785_vm0, %v1493_v8  ;;  %1197 = vmatprep.mubr.msk.bf16.mxu1 %vm785_vm0, %v1493_v8  ;;  %v389_v13 = vld [vmem:[%s1504_s7 + $0x1c8] sm:$0xff]  ;;  %s1026_s23 = scalar_lea.vmem (%p1329_p5), %s1634_s3, %s1222_s12 }
  0x43   : > { %1250 = vset.pattern.permute.xlu0 %v1278_v10  ;;  %v388_v11 = vld [vmem:[%s1504_s7 + $0x1c0] sm:$0xff]  ;;  %v393_v15 = vld [vmem:[%s1504_s7 + $0x1e8] sm:$0xff] }
  0x44   : > { %v392_v12 = vld [vmem:[%s1504_s7 + $0x1e0] sm:$0xff]  ;;  %408 = vperm.xlu0 %1250, %v404_v9   ;;  %v1183_v19 = vcombine.high %v389_v13, %v393_v15  ;;  %v1182_v20 = vcombine.low %v389_v13, %v393_v15  ;;  %v381_v22 = vld [vmem:[%s1504_s7 + $0x188] sm:$0xff] }
  0x45   : > { %v1181_v14 = vcombine.high %v388_v11, %v392_v12  ;;  %v1180_v16 = vcombine.low %v388_v11, %v392_v12  ;;  %v380_v17 = vld [vmem:[%s1504_s7 + $0x180] sm:$0xff]  ;;  %v385_v23 = vld [vmem:[%s1504_s7 + $0x1a8] sm:$0xff] }
  0x46   : > { %v384_v18 = vld [vmem:[%s1504_s7 + $0x1a0] sm:$0xff]  ;;  %v1175_v25 = vcombine.high %v381_v22, %v385_v23  ;;  %v373_v27 = vld [vmem:[%s1504_s7 + $0x148] sm:$0xff]  ;;  %832 = vmatprep.subr.bf16.mxu1 %v1183_v19  ;;  %v1174_v31 = vcombine.low %v381_v22, %v385_v23  ;;  %v390_v19 = vld [vmem:[%s1504_s7 + $0x1d0] sm:$0xff] }
  0x47   : > { %v1173_v21 = vcombine.high %v380_v17, %v384_v18  ;;  %v372_v24 = vld [vmem:[%s1504_s7 + $0x140] sm:$0xff]  ;;  %789 = vmatprep.subr.bf16.mxu0 %v1181_v14  ;;  %v377_v28 = vld [vmem:[%s1504_s7 + $0x168] sm:$0xff]  ;;  %v1172_v29 = vcombine.low %v380_v17, %v384_v18  ;;  %833 = vmatpush1.bf16.msra.mxu1 %v1182_v20  ;;  %v394_v20 = vld [vmem:[%s1504_s7 + $0x1f0] sm:$0xff] }
  0x48   : > { %v376_v26 = vld [vmem:[%s1504_s7 + $0x160] sm:$0xff]  ;;  %790 = vmatpush1.bf16.msra.mxu0 %v1180_v16  ;;  %v405_v30 = vld [vmem:[%s1633_s2 + $0x8] sm:$0xff]  ;;  %834 = vmatprep.subr.bf16.mxu1 %v1175_v25  ;;  %v1167_v33 = vcombine.high %v373_v27, %v377_v28  ;;  %v1166_v39 = vcombine.low %v373_v27, %v377_v28  ;;  %v395_v22 = vld [vmem:[%s1504_s7 + $0x1f8] sm:$0xff]  ;;  %v1185_v25 = vcombine.high %v390_v19, %v394_v20 }
  0x49   : > { %791 = vmatprep.subr.bf16.mxu0 %v1173_v21  ;;  %v1165_v32 = vcombine.high %v372_v24, %v376_v26  ;;  %v364_v34 = vld [vmem:[%s1504_s7 + $0x100] sm:$0xff]  ;;  %v365_v36 = vld [vmem:[%s1504_s7 + $0x108] sm:$0xff]  ;;  %413 = vperm.xlu0 %1250, %v405_v30   ;;  %v1164_v38 = vcombine.low %v372_v24, %v376_v26  ;;  %v391_v21 = vld [vmem:[%s1504_s7 + $0x1d8] sm:$0xff] }
  0x4a   : > { %v368_v35 = vld [vmem:[%s1504_s7 + $0x120] sm:$0xff]  ;;  %v369_v37 = vld [vmem:[%s1504_s7 + $0x128] sm:$0xff]  ;;  %v1187_v26 = vcombine.high %v391_v21, %v395_v22  ;;  %v382_v27 = vld [vmem:[%s1504_s7 + $0x190] sm:$0xff] }
  0x4b   : > { %835 = vmatpush1.bf16.msra.mxu1 %v1174_v31  ;;  %v1157_v40 = vcombine.high %v364_v34, %v368_v35  ;;  %v1159_v41 = vcombine.high %v365_v36, %v369_v37  ;;  %v356_v42 = vld [vmem:[%s1504_s7 + $0xc0] sm:$0xff]  ;;  %v357_v44 = vld [vmem:[%s1504_s7 + $0xc8] sm:$0xff]  ;;  %v1156_v46 = vcombine.low %v364_v34, %v368_v35  ;;  %v1158_v47 = vcombine.low %v365_v36, %v369_v37  ;;  %v386_v28 = vld [vmem:[%s1504_s7 + $0x1b0] sm:$0xff] }
  0x4c   : > { %792 = vmatpush1.bf16.msra.mxu0 %v1172_v29  ;;  %836 = vmatprep.subr.bf16.mxu1 %v1167_v33  ;;  %v360_v43 = vld [vmem:[%s1504_s7 + $0xe0] sm:$0xff]  ;;  %v361_v45 = vld [vmem:[%s1504_s7 + $0xe8] sm:$0xff]  ;;  %v383_v30 = vld [vmem:[%s1504_s7 + $0x198] sm:$0xff]  ;;  %v1186_v33 = vcombine.low %v391_v21, %v395_v22  ;;  %v1177_v34 = vcombine.high %v382_v27, %v386_v28 }
  0x4d   : > { %793 = vmatprep.subr.bf16.mxu0 %v1165_v32  ;;  %v1149_v48 = vcombine.high %v356_v42, %v360_v43  ;;  %v1151_v49 = vcombine.high %v357_v44, %v361_v45  ;;  %v348_v50 = vld [vmem:[%s1504_s7 + $0x80] sm:$0xff]  ;;  %v349_v52 = vld [vmem:[%s1504_s7 + $0x88] sm:$0xff]  ;;  %v1148_v54 = vcombine.low %v356_v42, %v360_v43  ;;  %v1150_v55 = vcombine.low %v357_v44, %v361_v45  ;;  %v387_v31 = vld [vmem:[%s1504_s7 + $0x1b8] sm:$0xff] }
  0x4e   : > { %v352_v51 = vld [vmem:[%s1504_s7 + $0xa0] sm:$0xff]  ;;  %v353_v53 = vld [vmem:[%s1504_s7 + $0xa8] sm:$0xff]  ;;  %v1184_v32 = vcombine.low %v390_v19, %v394_v20  ;;  %v1179_v35 = vcombine.high %v383_v30, %v387_v31  ;;  %v374_v36 = vld [vmem:[%s1504_s7 + $0x150] sm:$0xff] }
  0x4f   : > { %837 = vmatpush1.bf16.msra.mxu1 %v1166_v39  ;;  %v1141_v56 = vcombine.high %v348_v50, %v352_v51  ;;  %v1143_v57 = vcombine.high %v349_v52, %v353_v53  ;;  %v340_v58 = vld [vmem:[%s1504_s7 + $0x40] sm:$0xff]  ;;  %v341_v60 = vld [vmem:[%s1504_s7 + $0x48] sm:$0xff]  ;;  %v1140_v62 = vcombine.low %v348_v50, %v352_v51  ;;  %v1142_v63 = vcombine.low %v349_v52, %v353_v53  ;;  %v378_v37 = vld [vmem:[%s1504_s7 + $0x170] sm:$0xff] }
  0x50   : > { %794 = vmatpush1.bf16.msra.mxu0 %v1164_v38  ;;  %838 = vmatprep.subr.bf16.mxu1 %v1159_v41  ;;  %v344_v59 = vld [vmem:[%s1504_s7 + $0x60] sm:$0xff]  ;;  %v345_v61 = vld [vmem:[%s1504_s7 + $0x68] sm:$0xff]  ;;  %v375_v38 = vld [vmem:[%s1504_s7 + $0x158] sm:$0xff]  ;;  %v1178_v41 = vcombine.low %v383_v30, %v387_v31  ;;  %v1169_v42 = vcombine.high %v374_v36, %v378_v37 }
  0x51   : > { %795 = vmatprep.subr.bf16.mxu0 %v1157_v40  ;;  %v1133_v0 = vcombine.high %v340_v58, %v344_v59  ;;  %v1135_v1 = vcombine.high %v341_v60, %v345_v61  ;;  %v332_v2 = vld [vmem:[%s1504_s7] sm:$0xff]  ;;  %v333_v4 = vld [vmem:[%s1504_s7 + $0x8] sm:$0xff]  ;;  %v1132_v6 = vcombine.low %v340_v58, %v344_v59  ;;  %v1134_v7 = vcombine.low %v341_v60, %v345_v61  ;;  %v379_v39 = vld [vmem:[%s1504_s7 + $0x178] sm:$0xff] }
  0x52   : > { %v336_v3 = vld [vmem:[%s1504_s7 + $0x20] sm:$0xff]  ;;  %v337_v5 = vld [vmem:[%s1504_s7 + $0x28] sm:$0xff]  ;;  %v1176_v40 = vcombine.low %v382_v27, %v386_v28  ;;  %v1171_v43 = vcombine.high %v375_v38, %v379_v39  ;;  %v366_v44 = vld [vmem:[%s1504_s7 + $0x110] sm:$0xff] }
  0x53   : > { %839 = vmatpush1.bf16.msra.mxu1 %v1158_v47  ;;  %v1125_v9 = vcombine.high %v332_v2, %v336_v3  ;;  %v1127_v10 = vcombine.high %v333_v4, %v337_v5  ;;  %v396_v11 = vld [vmem:[%s1504_s7 + $0x200] sm:$0xff]  ;;  %v397_v13 = vld [vmem:[%s1504_s7 + $0x208] sm:$0xff]  ;;  %v1124_v15 = vcombine.low %v332_v2, %v336_v3  ;;  %v1126_v16 = vcombine.low %v333_v4, %v337_v5  ;;  %v370_v45 = vld [vmem:[%s1504_s7 + $0x130] sm:$0xff] }
  0x54   : > { %796 = vmatpush1.bf16.msra.mxu0 %v1156_v46  ;;  %840 = vmatprep.subr.bf16.mxu1 %v1151_v49  ;;  %v400_v12 = vld [vmem:[%s1504_s7 + $0x220] sm:$0xff]  ;;  %v401_v14 = vld [vmem:[%s1504_s7 + $0x228] sm:$0xff]  ;;  %v367_v46 = vld [vmem:[%s1504_s7 + $0x118] sm:$0xff]  ;;  %v1170_v49 = vcombine.low %v375_v38, %v379_v39  ;;  %v1161_v50 = vcombine.high %v366_v44, %v370_v45 }
  0x55   : > { %797 = vmatprep.subr.bf16.mxu0 %v1149_v48  ;;  %v1189_v17 = vcombine.high %v396_v11, %v400_v12  ;;  %v1191_v18 = vcombine.high %v397_v13, %v401_v14  ;;  %v1188_v23 = vcombine.low %v396_v11, %v400_v12  ;;  %v1190_v24 = vcombine.low %v397_v13, %v401_v14  ;;  %v1554_v29 = vld [vmem:[%s1631_s0] ss:$8 sps:$4 sm:$0xff]   ;;  %v371_v47 = vld [vmem:[%s1504_s7 + $0x138] sm:$0xff]  ;;  %v358_v52 = vld [vmem:[%s1504_s7 + $0xd0] sm:$0xff] }
  0x56   : > { %v1168_v48 = vcombine.low %v374_v36, %v378_v37  ;;  %v1163_v51 = vcombine.high %v367_v46, %v371_v47  ;;  %v362_v53 = vld [vmem:[%s1504_s7 + $0xf0] sm:$0xff]  ;;  %v351_v61 = vld [vmem:[%s1504_s7 + $0x98] sm:$0xff] }
  0x57   : > { %841 = vmatpush1.bf16.msra.mxu1 %v1150_v55  ;;  %v363_v55 = vld [vmem:[%s1504_s7 + $0xf8] sm:$0xff]  ;;  %v350_v59 = vld [vmem:[%s1504_s7 + $0x90] sm:$0xff] }
  0x58   : > { %798 = vmatpush1.bf16.msra.mxu0 %v1148_v54  ;;  %842 = vmatprep.subr.bf16.mxu1 %v1143_v57  ;;  %v359_v54 = vld [vmem:[%s1504_s7 + $0xd8] sm:$0xff]  ;;  %v1153_v57 = vcombine.high %v358_v52, %v362_v53  ;;  %v354_v60 = vld [vmem:[%s1504_s7 + $0xb0] sm:$0xff] }
  0x59   : > { %799 = vmatprep.subr.bf16.mxu0 %v1141_v56  ;;  %v1160_v56 = vcombine.low %v366_v44, %v370_v45  ;;  %v1155_v58 = vcombine.high %v359_v54, %v363_v55  ;;  %v342_v3 = vld [vmem:[%s1504_s7 + $0x50] sm:$0xff]  ;;  %v343_v5 = vld [vmem:[%s1504_s7 + $0x58] sm:$0xff] }
  0x5a   : > { %v346_v4 = vld [vmem:[%s1504_s7 + $0x70] sm:$0xff]  ;;  %v335_v14 = vld [vmem:[%s1504_s7 + $0x18] sm:$0xff] }
  0x5b   : > { %843 = vmatpush1.bf16.msra.mxu1 %v1142_v63  ;;  %v1152_v63 = vcombine.low %v358_v52, %v362_v53  ;;  %v334_v12 = vld [vmem:[%s1504_s7 + $0x10] sm:$0xff]  ;;  %v399_v22 = vld [vmem:[%s1504_s7 + $0x218] sm:$0xff] }
  0x5c   : > { %800 = vmatpush1.bf16.msra.mxu0 %v1140_v62  ;;  %844 = vmatprep.subr.bf16.mxu1 %v1135_v1  ;;  %v355_v62 = vld [vmem:[%s1504_s7 + $0xb8] sm:$0xff]  ;;  %v1145_v1 = vcombine.high %v350_v59, %v354_v60  ;;  %v338_v13 = vld [vmem:[%s1504_s7 + $0x30] sm:$0xff] }
  0x5d   : > { %801 = vmatprep.subr.bf16.mxu0 %v1133_v0  ;;  %v1154_v0 = vcombine.low %v359_v54, %v363_v55  ;;  %v1147_v2 = vcombine.high %v351_v61, %v355_v62  ;;  %v398_v20 = vld [vmem:[%s1504_s7 + $0x210] sm:$0xff] }
  0x5e   : > { %v402_v21 = vld [vmem:[%s1504_s7 + $0x230] sm:$0xff] }
  0x5f   : > { %845 = vmatpush1.bf16.msra.mxu1 %v1134_v7  ;;  %v1144_v7 = vcombine.low %v350_v59, %v354_v60  ;;  %v1192_v28 = vcombine.low %v398_v20, %v402_v21 }
  0x60   : > { %802 = vmatpush1.bf16.msra.mxu0 %v1132_v6  ;;  %846 = vmatprep.subr.bf16.mxu1 %v1127_v10  ;;  %v347_v6 = vld [vmem:[%s1504_s7 + $0x78] sm:$0xff]  ;;  %v1137_v10 = vcombine.high %v342_v3, %v346_v4 }
  0x61   : > { %803 = vmatprep.subr.bf16.mxu0 %v1125_v9  ;;  %v1146_v9 = vcombine.low %v351_v61, %v355_v62  ;;  %v1139_v11 = vcombine.high %v343_v5, %v347_v6 }
  0x63   : > { %847 = vmatpush1.bf16.msra.mxu1 %v1126_v16  ;;  %v1136_v16 = vcombine.low %v342_v3, %v346_v4 }
  0x64   : > { %804 = vmatpush1.bf16.msra.mxu0 %v1124_v15  ;;  %862 = vmatprep.subr.bf16.mxu1 %v1191_v18  ;;  %v339_v15 = vld [vmem:[%s1504_s7 + $0x38] sm:$0xff]  ;;  %v1129_v18 = vcombine.high %v334_v12, %v338_v13 }
  0x65   : > { %819 = vmatprep.subr.bf16.mxu0 %v1189_v17  ;;  %v1138_v17 = vcombine.low %v343_v5, %v347_v6  ;;  %v1131_v19 = vcombine.high %v335_v14, %v339_v15 }
  0x67   : > { %863 = vmatpush2.bf16.msra.mxu1 %v1190_v24  ;;  %v1128_v24 = vcombine.low %v334_v12, %v338_v13 }
  0x68   : > { %820 = vmatpush2.bf16.msra.mxu0 %v1188_v23  ;;  %918 = vmatprep.subr.bf16.mxu1 %v1187_v26  ;;  %v403_v23 = vld [vmem:[%s1504_s7 + $0x238] sm:$0xff]  ;;  %v1193_v26 = vcombine.high %v398_v20, %v402_v21 }
  0x69   : > { %875 = vmatprep.subr.bf16.mxu0 %v1185_v25  ;;  %v1130_v25 = vcombine.low %v335_v14, %v339_v15  ;;  %v1195_v27 = vcombine.high %v399_v22, %v403_v23  ;;  %v1194_v30 = vcombine.low %v399_v22, %v403_v23 }
  0x6a   : > { %865 = vmatmul.mubr.bf16.vlgmr.msra.gmra.mxu1 %v1554_v29 }
  0x6b   : > { %822 = vmatmul.mubr.bf16.vlgmr.msra.gmra.mxu0 %v1554_v29  ;;  %919 = vmatpush1.bf16.msra.mxu1 %v1186_v33 }
  0x6c   : > { %876 = vmatpush1.bf16.msra.mxu0 %v1184_v32  ;;  %920 = vmatprep.subr.bf16.mxu1 %v1179_v35 }
  0x6d   : > { %877 = vmatprep.subr.bf16.mxu0 %v1177_v34  ;;  %1198 = vmatprep.mubr.msk.bf16.mxu0 %vm785_vm0, %v1493_v8 }
  0x6e   : > { %1199 = vmatprep.mubr.msk.bf16.mxu1 %vm785_vm0, %v1493_v8  ;;  %v1162_v8 = vcombine.low %v367_v46, %v371_v47 }
  0x6f   : > { %921 = vmatpush1.bf16.msra.mxu1 %v1178_v41 }
  0x70   : > { %878 = vmatpush1.bf16.msra.mxu0 %v1176_v40  ;;  %922 = vmatprep.subr.bf16.mxu1 %v1171_v43 }
  0x71   : > { %879 = vmatprep.subr.bf16.mxu0 %v1169_v42 }
  0x73   : > { %923 = vmatpush1.bf16.msra.mxu1 %v1170_v49 }
  0x74   : > { %880 = vmatpush1.bf16.msra.mxu0 %v1168_v48  ;;  %924 = vmatprep.subr.bf16.mxu1 %v1163_v51 }
  0x75   : > { %881 = vmatprep.subr.bf16.mxu0 %v1161_v50 }
  0x77   : > { %925 = vmatpush1.bf16.msra.mxu1 %v1162_v8 }
  0x78   : > { %882 = vmatpush1.bf16.msra.mxu0 %v1160_v56  ;;  %926 = vmatprep.subr.bf16.mxu1 %v1155_v58 }
  0x79   : > { %883 = vmatprep.subr.bf16.mxu0 %v1153_v57 }
  0x7b   : > { %927 = vmatpush1.bf16.msra.mxu1 %v1154_v0 }
  0x7c   : > { %884 = vmatpush1.bf16.msra.mxu0 %v1152_v63  ;;  %928 = vmatprep.subr.bf16.mxu1 %v1147_v2 }
  0x7d   : > { %885 = vmatprep.subr.bf16.mxu0 %v1145_v1 }
  0x7f   : > { %929 = vmatpush1.bf16.msra.mxu1 %v1146_v9 }
  0x80   : > { %886 = vmatpush1.bf16.msra.mxu0 %v1144_v7  ;;  %930 = vmatprep.subr.bf16.mxu1 %v1139_v11 }
  0x81   : > { %887 = vmatprep.subr.bf16.mxu0 %v1137_v10 }
  0x83   : > { %931 = vmatpush1.bf16.msra.mxu1 %v1138_v17 }
  0x84   : > { %888 = vmatpush1.bf16.msra.mxu0 %v1136_v16  ;;  %932 = vmatprep.subr.bf16.mxu1 %v1131_v19 }
  0x85   : > { %889 = vmatprep.subr.bf16.mxu0 %v1129_v18 }
  0x87   : > { %933 = vmatpush1.bf16.msra.mxu1 %v1130_v25 }
  0x88   : > { %890 = vmatpush1.bf16.msra.mxu0 %v1128_v24  ;;  %948 = vmatprep.subr.bf16.mxu1 %v1195_v27 }
  0x89   : > { %905 = vmatprep.subr.bf16.mxu0 %v1193_v26 }
  0x8b   : > { %949 = vmatpush2.bf16.msra.mxu1 %v1194_v30 }
  0x8c   : > { %906 = vmatpush2.bf16.msra.mxu0 %v1192_v28 }
  0x8e   : > { %951 = vmatmul.mubr.bf16.vlgmr.msra.gmra.mxu1 %v1554_v29 }
  0x8f   : > { %908 = vmatmul.mubr.bf16.vlgmr.msra.gmra.mxu0 %v1554_v29 }
  0xbf   : > { %v409_v31 = vpop.permute.xlu0 %408 }
  0xc4   : > { %v414_v40 = vpop.permute.xlu0 %413 }
 0x12a   : > { %v866_v34 = vpop.f32.mrf.mxu1 }
 0x12b   : > { %v823_v32 = vpop.f32.mrf.mxu0  ;;  %v867_v35 = vadd.f32 %v866_v34, %v409_v31 }
 0x12c   : > { %v824_v33 = vadd.f32 %v823_v32, %v409_v31  ;;  %v868_v38 = vpop.f32.mrf.mxu1 }
 0x12d   : > { %v825_v36 = vpop.f32.mrf.mxu0  ;;  %v869_v39 = vadd.f32 %v868_v38, %v409_v31 }
 0x12e   : > { %v826_v37 = vadd.f32 %v825_v36, %v409_v31  ;;  %v870_v43 = vpop.f32.mrf.mxu1 }
 0x12f   : > { %v827_v41 = vpop.f32.mrf.mxu0  ;;  %v1215_v44 = vpack.c.bf16 %v869_v39, %v867_v35  ;;  %v871_v48 = vadd.f32 %v870_v43, %v414_v40 }
 0x130   : > { %v1214_v42 = vpack.c.bf16 %v826_v37, %v824_v33  ;;  %v828_v29 = vadd.f32 %v827_v41, %v414_v40  ;;  %v872_v47 = vpop.f32.mrf.mxu1 }
 0x131   : > { %v829_v45 = vpop.f32.mrf.mxu0  ;;  %1010 = vst [vmem:[%s1596_s18 + $0x8] sm:$0xff] %v1215_v44  ;;  %v873_v49 = vadd.f32 %v872_v47, %v414_v40 }
 0x132   : > { %1009 = vst [vmem:[%s1596_s18] sm:$0xff] %v1214_v42  ;;  %v830_v46 = vadd.f32 %v829_v45, %v414_v40 }
 0x133   : > { %v1219_v51 = vpack.c.bf16 %v873_v49, %v871_v48 }
 0x134   : > { %v1218_v50 = vpack.c.bf16 %v830_v46, %v828_v29 }
 0x135   : > { %1014 = vst [vmem:[%s1596_s18 + $0x28] sm:$0xff] %v1219_v51 }
 0x136   : > { %1013 = vst [vmem:[%s1596_s18 + $0x20] sm:$0xff] %v1218_v50 }
 0x138   : > { %v1041_v9 = vld [vmem:[%s1596_s18 + $0x8] sm:$0xff] (%p1329_p5) }
 0x139   : > { %v1039_v7 = vld [vmem:[%s1596_s18] sm:$0xff] (%p1329_p5)  ;;  %1042 = vst [vmem:[%s1026_s23 + $0x8] sm:$0xff] (%p1329_p5), %v1041_v9 }
 0x13a   : > { %1040 = vst [vmem:[%s1026_s23] sm:$0xff] (%p1329_p5), %v1039_v7 }
 0x13c   : > { %v1049_v13 = vld [vmem:[%s1596_s18 + $0x28] sm:$0xff] (%p1329_p5) }
 0x13d   : > { %v1047_v12 = vld [vmem:[%s1596_s18 + $0x20] sm:$0xff] (%p1329_p5)  ;;  %1050 = vst [vmem:[%s1026_s23 + $0x48] sm:$0xff] (%p1329_p5), %v1049_v13 }
 0x13e   : > { %1048 = vst [vmem:[%s1026_s23 + $0x40] sm:$0xff] (%p1329_p5), %v1047_v12 }
 0x14e   : > { %v952_v53 = vpop.f32.mrf.mxu1 }
 0x14f   : > { %v909_v52 = vpop.f32.mrf.mxu0  ;;  %v953_v57 = vadd.f32 %v952_v53, %v409_v31 }
 0x150   : > { %v910_v55 = vadd.f32 %v909_v52, %v409_v31  ;;  %v954_v8 = vpop.f32.mrf.mxu1 }
 0x151   : > { %v911_v54 = vpop.f32.mrf.mxu0  ;;  %v955_v58 = vadd.f32 %v954_v8, %v409_v31 }
 0x152   : > { %v912_v56 = vadd.f32 %v911_v54, %v409_v31  ;;  %v956_v61 = vpop.f32.mrf.mxu1 }
 0x153   : > { %v913_v59 = vpop.f32.mrf.mxu0  ;;  %v1217_v62 = vpack.c.bf16 %v955_v58, %v953_v57  ;;  %v957_v3 = vadd.f32 %v956_v61, %v414_v40 }
 0x154   : > { %v1216_v60 = vpack.c.bf16 %v912_v56, %v910_v55  ;;  %v914_v0 = vadd.f32 %v913_v59, %v414_v40  ;;  %v958_v2 = vpop.f32.mrf.mxu1 }
 0x155   : > { %v915_v63 = vpop.f32.mrf.mxu0  ;;  %1012 = vst [vmem:[%s1596_s18 + $0x18] sm:$0xff] %v1217_v62  ;;  %v959_v4 = vadd.f32 %v958_v2, %v414_v40 }
 0x156   : > { %1011 = vst [vmem:[%s1596_s18 + $0x10] sm:$0xff] %v1216_v60  ;;  %v916_v1 = vadd.f32 %v915_v63, %v414_v40  ;;  %1023 = sbr.rel (!%p1329_p5) target bundleno = 355 (0x163), region = 59 }
 0x157   : > { %v1221_v6 = vpack.c.bf16 %v959_v4, %v957_v3 }
 0x158   : > { %v1220_v5 = vpack.c.bf16 %v916_v1, %v914_v0 }
 0x159   : > { %1016 = vst [vmem:[%s1596_s18 + $0x38] sm:$0xff] %v1221_v6 }
 0x15a   : > { %1015 = vst [vmem:[%s1596_s18 + $0x30] sm:$0xff] %v1220_v5 }
 0x15c   : > { %v1045_v11 = vld [vmem:[%s1596_s18 + $0x18] sm:$0xff] }
 0x15d   : > { %v1043_v10 = vld [vmem:[%s1596_s18 + $0x10] sm:$0xff]  ;;  %1046 = vst [vmem:[%s1026_s23 + $0x18] sm:$0xff] %v1045_v11 }
 0x15e   : > { %1044 = vst [vmem:[%s1026_s23 + $0x10] sm:$0xff] %v1043_v10 }
 0x160   : > { %v1053_v15 = vld [vmem:[%s1596_s18 + $0x38] sm:$0xff] }
 0x161   : > { %v1051_v14 = vld [vmem:[%s1596_s18 + $0x30] sm:$0xff]  ;;  %1054 = vst [vmem:[%s1026_s23 + $0x58] sm:$0xff] %v1053_v15 }
 0x162   : > { %1052 = vst [vmem:[%s1026_s23 + $0x50] sm:$0xff] %v1051_v14 }
 0x163 PF: > { %p10_p10 = scmp.ge.s32.totalorder %s1316_s16, 4   ;;  %s1636_s12 = smov %s1272_s13 }
 0x164   : > { %s1637_s13 = smov %s1327_s19  ;;  %s1638_s14 = smov %s1316_s16 }
 0x165   :  { %12 = sbr.rel (!%p10_p10) target bundleno = 2 (0x2), region = 113 }

// kernel: generator_forward.13
= control target key start
LH: loop header
LB: loop body
LE: loop exit
PB: predicated region body
PF: predicated region fallthrough
CT: control target
= control target key end

     0   :  { %v1484_v1 = vmov 0   ;;  %vm458_vm0 = vcmask 523264   ;;  %vm1166_vm1 = vcmask 1043456   ;;  %vm1167_vm2 = vcmask 15364   ;;  %s1888_s1 = inlined_call_operand.vmem [shape: bf16[64,2178], index: 1, kind: input, shape index: {}]   ;;  %s1889_s0 = inlined_call_operand.vmem [shape: bf16[32,64], index: 0, kind: input, shape index: {}]   ;;  %s1890_s2 = inlined_call_operand.vmem [shape: bf16[32,2178], index: 2, kind: output, shape index: {}]  }
   0x1   :  { %v1374_v0 = vld [vmem:[%s1888_s1 + $0x1b4] ss:$72 sps:$4 sm:$0xff]   ;;  %497 = vmatprep.mubr.bf16.mxu0 %v1484_v1  ;;  %550 = vmatprep.mubr.bf16.mxu1 %v1484_v1  ;;  %v1378_v3 = vld [vmem:[%s1888_s1 + $0x1b0] ss:$72 sps:$4 sm:$0xff]   ;;  %v1380_v5 = vld [vmem:[%s1888_s1 + $0x124] ss:$72 sps:$4 sm:$0xff]  }
   0x2   :  { %v1376_v2 = vld [vmem:[%s1888_s1 + $0x1bc] ss:$72 sps:$4 sm:$0xff]   ;;  %473 = vmatprep.subr.bf16.mxu0 %v1374_v0  ;;  %v1379_v4 = vld [vmem:[%s1888_s1 + $0x1b8] ss:$72 sps:$4 sm:$0xff]   ;;  %v1382_v6 = vld [vmem:[%s1888_s1 + $0x12c] ss:$72 sps:$4 sm:$0xff]  }
   0x3   :  { %526 = vmatprep.subr.bf16.mxu1 %v1376_v2  ;;  %474 = vmatpush1.bf16.msra.mxu0 %v1378_v3  ;;  %v1384_v7 = vld [vmem:[%s1888_s1 + $0x120] ss:$72 sps:$4 sm:$0xff]   ;;  %v1386_v9 = vld [vmem:[%s1888_s1 + $0x94] ss:$72 sps:$4 sm:$0xff]   ;;  %v1390_v11 = vld [vmem:[%s1888_s1 + $0x90] ss:$72 sps:$4 sm:$0xff]  }
   0x4   :  { %527 = vmatpush1.bf16.msra.mxu1 %v1379_v4  ;;  %475 = vmatprep.subr.bf16.mxu0 %v1380_v5  ;;  %v1385_v8 = vld [vmem:[%s1888_s1 + $0x128] ss:$72 sps:$4 sm:$0xff]   ;;  %v1388_v10 = vld [vmem:[%s1888_s1 + $0x9c] ss:$72 sps:$4 sm:$0xff]   ;;  %v1391_v12 = vld [vmem:[%s1888_s1 + $0x98] ss:$72 sps:$4 sm:$0xff]  }
   0x5   :  { %528 = vmatprep.subr.bf16.mxu1 %v1382_v6  ;;  %v1392_v13 = vld [vmem:[%s1888_s1 + $0x4] ss:$72 sps:$4 sm:$0xff]   ;;  %v1396_v15 = vld [vmem:[%s1888_s1] ss:$72 sps:$4 sm:$0xff]   ;;  %v1407_v22 = vld [vmem:[%s1888_s1 + $0x134] ss:$72 sps:$4 sm:$0xff]  }
   0x6   :  { %v1394_v14 = vld [vmem:[%s1888_s1 + $0xc] ss:$72 sps:$4 sm:$0xff]   ;;  %v1397_v16 = vld [vmem:[%s1888_s1 + $0x8] ss:$72 sps:$4 sm:$0xff]   ;;  %v1559_v19 = vld [vmem:[%s1889_s0] sm:$0xff]  }
   0x7   :  { %476 = vmatpush1.bf16.msra.mxu0 %v1384_v7  ;;  %v1401_v17 = vld [vmem:[%s1888_s1 + $0x1c4] ss:$72 sps:$4 sm:$0xff]   ;;  %v1399_v20 = vld [vmem:[%s1888_s1 + $0x1c0] ss:$72 sps:$4 sm:$0xff]   ;;  %v1405_v24 = vld [vmem:[%s1888_s1 + $0x130] ss:$72 sps:$4 sm:$0xff]  }
   0x8   :  { %529 = vmatpush1.bf16.msra.mxu1 %v1385_v8  ;;  %477 = vmatprep.subr.bf16.mxu0 %v1386_v9  ;;  %v1404_v18 = vld [vmem:[%s1888_s1 + $0x1cc] ss:$72 sps:$4 sm:$0xff]   ;;  %v1402_v21 = vld [vmem:[%s1888_s1 + $0x1c8] ss:$72 sps:$4 sm:$0xff]   ;;  %v1410_v23 = vld [vmem:[%s1888_s1 + $0x13c] ss:$72 sps:$4 sm:$0xff]  }
   0x9   :  { %530 = vmatprep.subr.bf16.mxu1 %v1388_v10  ;;  %v1408_v25 = vld [vmem:[%s1888_s1 + $0x138] ss:$72 sps:$4 sm:$0xff]   ;;  %v1414_v26 = vld [vmem:[%s1888_s1 + $0xa4] ss:$72 sps:$4 sm:$0xff]   ;;  %v1415_v30 = vld [vmem:[%s1888_s1 + $0xa8] ss:$72 sps:$4 sm:$0xff]  }
   0xa   :  { %v1417_v27 = vld [vmem:[%s1888_s1 + $0xac] ss:$72 sps:$4 sm:$0xff]   ;;  %v1412_v29 = vld [vmem:[%s1888_s1 + $0xa0] ss:$72 sps:$4 sm:$0xff]   ;;  %v1423_v32 = vld [vmem:[%s1888_s1 + $0x1c] ss:$72 sps:$4 sm:$0xff]  }
   0xb   :  { %478 = vmatpush1.bf16.msra.mxu0 %v1390_v11  ;;  %v1594_v28 = vld [vmem:[%s1889_s0 + $0x8] sm:$0xff]   ;;  %v1420_v31 = vld [vmem:[%s1888_s1 + $0x14] ss:$72 sps:$4 sm:$0xff]   ;;  %v1418_v33 = vld [vmem:[%s1888_s1 + $0x10] ss:$72 sps:$4 sm:$0xff]  }
   0xc   :  { %531 = vmatpush1.bf16.msra.mxu1 %v1391_v12  ;;  %479 = vmatprep.subr.bf16.mxu0 %v1392_v13  ;;  %v1421_v34 = vld [vmem:[%s1888_s1 + $0x18] ss:$72 sps:$4 sm:$0xff]   ;;  %v1426_v35 = vld [vmem:[%s1888_s1 + $0x1d4] ss:$72 sps:$4 sm:$0xff]   ;;  %v1432_v39 = vld [vmem:[%s1888_s1 + $0x144] ss:$72 sps:$4 sm:$0xff]  }
   0xd   :  { %532 = vmatprep.subr.bf16.mxu1 %v1394_v14  ;;  %v1429_v36 = vld [vmem:[%s1888_s1 + $0x1dc] ss:$72 sps:$4 sm:$0xff]   ;;  %v1424_v37 = vld [vmem:[%s1888_s1 + $0x1d0] ss:$72 sps:$4 sm:$0xff]   ;;  %v1435_v40 = vld [vmem:[%s1888_s1 + $0x14c] ss:$72 sps:$4 sm:$0xff]  }
   0xe   :  { %v1427_v38 = vld [vmem:[%s1888_s1 + $0x1d8] ss:$72 sps:$4 sm:$0xff]   ;;  %v1433_v42 = vld [vmem:[%s1888_s1 + $0x148] ss:$72 sps:$4 sm:$0xff]   ;;  %v1438_v43 = vld [vmem:[%s1888_s1 + $0xb4] ss:$72 sps:$4 sm:$0xff]  }
   0xf   :  { %480 = vmatpush1.bf16.msra.mxu0 %v1396_v15  ;;  %v1430_v41 = vld [vmem:[%s1888_s1 + $0x140] ss:$72 sps:$4 sm:$0xff]   ;;  %v1441_v44 = vld [vmem:[%s1888_s1 + $0xbc] ss:$72 sps:$4 sm:$0xff]   ;;  %v1436_v45 = vld [vmem:[%s1888_s1 + $0xb0] ss:$72 sps:$4 sm:$0xff]  }
  0x10   :  { %533 = vmatpush1.bf16.msra.mxu1 %v1397_v16  ;;  %579 = vmatprep.subr.bf16.mxu0 %v1401_v17  ;;  %v1439_v46 = vld [vmem:[%s1888_s1 + $0xb8] ss:$72 sps:$4 sm:$0xff]   ;;  %v1444_v47 = vld [vmem:[%s1888_s1 + $0x24] ss:$72 sps:$4 sm:$0xff]   ;;  %v1445_v50 = vld [vmem:[%s1888_s1 + $0x28] ss:$72 sps:$4 sm:$0xff]  }
  0x11   :  { %632 = vmatprep.subr.bf16.mxu1 %v1404_v18  ;;  %v1447_v48 = vld [vmem:[%s1888_s1 + $0x2c] ss:$72 sps:$4 sm:$0xff]   ;;  %v1442_v49 = vld [vmem:[%s1888_s1 + $0x20] ss:$72 sps:$4 sm:$0xff]   ;;  %v1459_v56 = vld [vmem:[%s1888_s1 + $0x15c] ss:$72 sps:$4 sm:$0xff]  }
  0x12   :  { %1275 = vmatmul.mubr.msk.bf16.vlgmr.msra.gmra.mxu0 %vm458_vm0, %v1559_v19  ;;  %v1450_v51 = vld [vmem:[%s1888_s1 + $0x1e4] ss:$72 sps:$4 sm:$0xff]   ;;  %v1448_v53 = vld [vmem:[%s1888_s1 + $0x1e0] ss:$72 sps:$4 sm:$0xff]   ;;  %v1456_v55 = vld [vmem:[%s1888_s1 + $0x154] ss:$72 sps:$4 sm:$0xff]  }
  0x13   :  { %1277 = vmatmul.mubr.msk.bf16.vlgmr.msra.gmra.mxu1 %vm458_vm0, %v1559_v19  ;;  %580 = vmatpush1.bf16.msra.mxu0 %v1399_v20  ;;  %v1453_v52 = vld [vmem:[%s1888_s1 + $0x1ec] ss:$72 sps:$4 sm:$0xff]   ;;  %v1451_v54 = vld [vmem:[%s1888_s1 + $0x1e8] ss:$72 sps:$4 sm:$0xff]   ;;  %v1457_v58 = vld [vmem:[%s1888_s1 + $0x158] ss:$72 sps:$4 sm:$0xff]  }
  0x14   :  { %633 = vmatpush1.bf16.msra.mxu1 %v1402_v21  ;;  %581 = vmatprep.subr.bf16.mxu0 %v1407_v22  ;;  %v1454_v57 = vld [vmem:[%s1888_s1 + $0x150] ss:$72 sps:$4 sm:$0xff]   ;;  %v1462_v59 = vld [vmem:[%s1888_s1 + $0xc4] ss:$72 sps:$4 sm:$0xff]   ;;  %v1460_v61 = vld [vmem:[%s1888_s1 + $0xc0] ss:$72 sps:$4 sm:$0xff]  }
  0x15   :  { %634 = vmatprep.subr.bf16.mxu1 %v1410_v23  ;;  %507 = vmatprep.mubr.bf16.mxu0 %v1484_v1  ;;  %v1465_v60 = vld [vmem:[%s1888_s1 + $0xcc] ss:$72 sps:$4 sm:$0xff]   ;;  %v1463_v62 = vld [vmem:[%s1888_s1 + $0xc8] ss:$72 sps:$4 sm:$0xff]   ;;  %v1471_v0 = vld [vmem:[%s1888_s1 + $0x3c] ss:$72 sps:$4 sm:$0xff]  }
  0x16   :  { %560 = vmatprep.mubr.bf16.mxu1 %v1484_v1  ;;  %v1468_v63 = vld [vmem:[%s1888_s1 + $0x34] ss:$72 sps:$4 sm:$0xff]   ;;  %v1466_v2 = vld [vmem:[%s1888_s1 + $0x30] ss:$72 sps:$4 sm:$0xff]   ;;  %v1477_v6 = vld [vmem:[%s1888_s1 + $0x164] ss:$72 sps:$4 sm:$0xff]  }
  0x17   :  { %582 = vmatpush1.bf16.msra.mxu0 %v1405_v24  ;;  %v1469_v3 = vld [vmem:[%s1888_s1 + $0x38] ss:$72 sps:$4 sm:$0xff]   ;;  %v1474_v4 = vld [vmem:[%s1888_s1 + $0x1f4] ss:$72 sps:$4 sm:$0xff]   ;;  %v1483_v10 = vld [vmem:[%s1888_s1 + $0x44] ss:$72 sps:$4 sm:$0xff]  }
  0x18   :  { %635 = vmatpush1.bf16.msra.mxu1 %v1408_v25  ;;  %583 = vmatprep.subr.bf16.mxu0 %v1414_v26  ;;  %v1472_v5 = vld [vmem:[%s1888_s1 + $0x1f0] ss:$72 sps:$4 sm:$0xff]   ;;  %v1475_v7 = vld [vmem:[%s1888_s1 + $0x160] ss:$72 sps:$4 sm:$0xff]   ;;  %v1480_v8 = vld [vmem:[%s1888_s1 + $0xd4] ss:$72 sps:$4 sm:$0xff]  }
  0x19   :  { %636 = vmatprep.subr.bf16.mxu1 %v1417_v27  ;;  %v1478_v9 = vld [vmem:[%s1888_s1 + $0xd0] ss:$72 sps:$4 sm:$0xff]   ;;  %v1481_v11 = vld [vmem:[%s1888_s1 + $0x40] ss:$72 sps:$4 sm:$0xff]   ;;  %vm1168_vm3 = vmor %vm1167_vm2, %vm1166_vm1 }
  0x1a   :  { %1276 = vmatmul.mubr.msk.bf16.gmra.mxu0 %vm458_vm0, %v1594_v28 }
  0x1b   :  { %1278 = vmatmul.mubr.msk.bf16.gmra.mxu1 %vm458_vm0, %v1594_v28  ;;  %584 = vmatpush1.bf16.msra.mxu0 %v1412_v29 }
  0x1c   :  { %637 = vmatpush1.bf16.msra.mxu1 %v1415_v30  ;;  %585 = vmatprep.subr.bf16.mxu0 %v1420_v31 }
  0x1d   :  { %638 = vmatprep.subr.bf16.mxu1 %v1423_v32  ;;  %603 = vmatprep.mubr.bf16.mxu0 %v1484_v1 }
  0x1e   :  { %656 = vmatprep.mubr.bf16.mxu1 %v1484_v1 }
  0x1f   :  { %586 = vmatpush1.bf16.msra.mxu0 %v1418_v33 }
  0x20   :  { %639 = vmatpush1.bf16.msra.mxu1 %v1421_v34  ;;  %685 = vmatprep.subr.bf16.mxu0 %v1426_v35 }
  0x21   :  { %738 = vmatprep.subr.bf16.mxu1 %v1429_v36 }
  0x22   :  { %1279 = vmatmul.mubr.msk.bf16.vlgmr.msra.gmra.mxu0 %vm458_vm0, %v1559_v19 }
  0x23   :  { %1281 = vmatmul.mubr.msk.bf16.vlgmr.msra.gmra.mxu1 %vm458_vm0, %v1559_v19  ;;  %686 = vmatpush1.bf16.msra.mxu0 %v1424_v37 }
  0x24   :  { %739 = vmatpush1.bf16.msra.mxu1 %v1427_v38  ;;  %687 = vmatprep.subr.bf16.mxu0 %v1432_v39 }
  0x25   :  { %740 = vmatprep.subr.bf16.mxu1 %v1435_v40  ;;  %613 = vmatprep.mubr.bf16.mxu0 %v1484_v1 }
  0x26   :  { %666 = vmatprep.mubr.bf16.mxu1 %v1484_v1 }
  0x27   :  { %688 = vmatpush1.bf16.msra.mxu0 %v1430_v41 }
  0x28   :  { %741 = vmatpush1.bf16.msra.mxu1 %v1433_v42  ;;  %689 = vmatprep.subr.bf16.mxu0 %v1438_v43 }
  0x29   :  { %742 = vmatprep.subr.bf16.mxu1 %v1441_v44 }
  0x2a   :  { %1280 = vmatmul.mubr.msk.bf16.gmra.mxu0 %vm458_vm0, %v1594_v28 }
  0x2b   :  { %1282 = vmatmul.mubr.msk.bf16.gmra.mxu1 %vm458_vm0, %v1594_v28  ;;  %690 = vmatpush1.bf16.msra.mxu0 %v1436_v45 }
  0x2c   :  { %743 = vmatpush1.bf16.msra.mxu1 %v1439_v46  ;;  %691 = vmatprep.subr.bf16.mxu0 %v1444_v47 }
  0x2d   :  { %744 = vmatprep.subr.bf16.mxu1 %v1447_v48  ;;  %709 = vmatprep.mubr.bf16.mxu0 %v1484_v1 }
  0x2e   :  { %762 = vmatprep.mubr.bf16.mxu1 %v1484_v1 }
  0x2f   :  { %692 = vmatpush1.bf16.msra.mxu0 %v1442_v49 }
  0x30   :  { %745 = vmatpush1.bf16.msra.mxu1 %v1445_v50  ;;  %791 = vmatprep.subr.bf16.mxu0 %v1450_v51 }
  0x31   :  { %844 = vmatprep.subr.bf16.mxu1 %v1453_v52 }
  0x32   :  { %1283 = vmatmul.mubr.msk.bf16.vlgmr.msra.gmra.mxu0 %vm458_vm0, %v1559_v19 }
  0x33   :  { %1285 = vmatmul.mubr.msk.bf16.vlgmr.msra.gmra.mxu1 %vm458_vm0, %v1559_v19  ;;  %792 = vmatpush1.bf16.msra.mxu0 %v1448_v53 }
  0x34   :  { %845 = vmatpush1.bf16.msra.mxu1 %v1451_v54  ;;  %793 = vmatprep.subr.bf16.mxu0 %v1456_v55 }
  0x35   :  { %846 = vmatprep.subr.bf16.mxu1 %v1459_v56  ;;  %719 = vmatprep.mubr.bf16.mxu0 %v1484_v1 }
  0x36   :  { %772 = vmatprep.mubr.bf16.mxu1 %v1484_v1 }
  0x37   :  { %794 = vmatpush1.bf16.msra.mxu0 %v1454_v57 }
  0x38   :  { %847 = vmatpush1.bf16.msra.mxu1 %v1457_v58  ;;  %795 = vmatprep.subr.bf16.mxu0 %v1462_v59 }
  0x39   :  { %848 = vmatprep.subr.bf16.mxu1 %v1465_v60 }
  0x3a   :  { %1284 = vmatmul.mubr.msk.bf16.gmra.mxu0 %vm458_vm0, %v1594_v28 }
  0x3b   :  { %1286 = vmatmul.mubr.msk.bf16.gmra.mxu1 %vm458_vm0, %v1594_v28  ;;  %796 = vmatpush1.bf16.msra.mxu0 %v1460_v61 }
  0x3c   :  { %849 = vmatpush1.bf16.msra.mxu1 %v1463_v62  ;;  %797 = vmatprep.subr.bf16.mxu0 %v1468_v63 }
  0x3d   :  { %850 = vmatprep.subr.bf16.mxu1 %v1471_v0  ;;  %815 = vmatprep.mubr.bf16.mxu0 %v1484_v1 }
  0x3e   :  { %868 = vmatprep.mubr.bf16.mxu1 %v1484_v1 }
  0x3f   :  { %798 = vmatpush1.bf16.msra.mxu0 %v1466_v2 }
  0x40   :  { %851 = vmatpush1.bf16.msra.mxu1 %v1469_v3  ;;  %897 = vmatprep.subr.bf16.mxu0 %v1474_v4 }
  0x41   :  { %1365 = vmatprep.subr.bf16.mxu1 %v1474_v4 }
  0x42   :  { %1287 = vmatmul.mubr.msk.bf16.vlgmr.msra.gmra.mxu0 %vm458_vm0, %v1559_v19 }
  0x43   :  { %1289 = vmatmul.mubr.msk.bf16.vlgmr.msra.gmra.mxu1 %vm458_vm0, %v1559_v19  ;;  %898 = vmatpush1.bf16.msra.mxu0 %v1472_v5 }
  0x44   :  { %1369 = vmatpush1.bf16.msra.mxu1 %v1472_v5  ;;  %899 = vmatprep.subr.bf16.mxu0 %v1477_v6 }
  0x45   :  { %1366 = vmatprep.subr.bf16.mxu1 %v1477_v6  ;;  %825 = vmatprep.mubr.bf16.mxu0 %v1484_v1 }
  0x46   :  { %878 = vmatprep.mubr.bf16.mxu1 %v1484_v1 }
  0x47   :  { %900 = vmatpush1.bf16.msra.mxu0 %v1475_v7 }
  0x48   :  { %1370 = vmatpush1.bf16.msra.mxu1 %v1475_v7  ;;  %901 = vmatprep.subr.bf16.mxu0 %v1480_v8 }
  0x49   :  { %1367 = vmatprep.subr.bf16.mxu1 %v1480_v8 }
  0x4a   :  { %1288 = vmatmul.mubr.msk.bf16.gmra.mxu0 %vm458_vm0, %v1594_v28 }
  0x4b   :  { %1290 = vmatmul.mubr.msk.bf16.gmra.mxu1 %vm458_vm0, %v1594_v28  ;;  %902 = vmatpush1.bf16.msra.mxu0 %v1478_v9 }
  0x4c   :  { %1371 = vmatpush1.bf16.msra.mxu1 %v1478_v9  ;;  %903 = vmatprep.subr.bf16.mxu0 %v1483_v10 }
  0x4d   :  { %1368 = vmatprep.subr.bf16.mxu1 %v1483_v10  ;;  %921 = vmatprep.mubr.bf16.mxu0 %v1484_v1 }
  0x4e   :  { %931 = vmatprep.mubr.bf16.mxu1 %v1484_v1 }
  0x4f   :  { %904 = vmatpush1.bf16.msra.mxu0 %v1481_v11 }
  0x50   :  { %1372 = vmatpush1.bf16.msra.mxu1 %v1481_v11 }
  0x52   :  { %1291 = vmatmul.mubr.msk.bf16.vlgmr.msra.gmra.mxu0 %vm458_vm0, %v1559_v19 }
  0x53   :  { %1292 = vmatmul.mubr.msk.bf16.vlgmr.msra.gmra.mxu1 %vm458_vm0, %v1594_v28 }
  0xd2   :  { %v499_v12 = vpop.f32.mrf.mxu0 }
  0xd3   :  { %v552_v13 = vpop.f32.mrf.mxu1 }
  0xd4   :  { %v501_v14 = vpop.f32.mrf.mxu0 }
  0xd5   :  { %v554_v15 = vpop.f32.mrf.mxu1  ;;  %v1329_v16 = vpack.c.bf16 %v501_v14, %v499_v12 }
  0xd6   :  { %v1330_v17 = vpack.c.bf16 %v554_v15, %v552_v13  ;;  %v503_v18 = vpop.f32.mrf.mxu0 }
  0xd7   :  { %v556_v20 = vpop.f32.mrf.mxu1  ;;  %1158 = vst [vmem:[%s1890_s2] sm:$0xff] %v1329_v16 }
  0xd8   :  { %1159 = vst [vmem:[%s1890_s2 + $0x8] sm:$0xff] %v1330_v17  ;;  %v505_v1 = vpop.f32.mrf.mxu0 }
  0xd9   :  { %v558_v19 = vpop.f32.mrf.mxu1  ;;  %v1338_v21 = vpack.c.bf16 %v505_v1, %v503_v18 }
  0xda   :  { %v1339_v22 = vpack.c.bf16 %v558_v19, %v556_v20  ;;  %v509_v23 = vpop.f32.mrf.mxu0 }
  0xdb   :  { %v562_v24 = vpop.f32.mrf.mxu1  ;;  %1170 = vst [vmem:[%s1890_s2 + $0x48] sm:$0xff] %v1338_v21 }
  0xdc   :  { %1171 = vst [vmem:[%s1890_s2 + $0x50] sm:$0xff] %v1339_v22  ;;  %v511_v25 = vpop.f32.mrf.mxu0 }
  0xdd   :  { %v564_v26 = vpop.f32.mrf.mxu1  ;;  %v1347_v27 = vpack.c.bf16 %v511_v25, %v509_v23 }
  0xde   :  { %v1348_v28 = vpack.c.bf16 %v564_v26, %v562_v24  ;;  %v513_v29 = vpop.f32.mrf.mxu0 }
  0xdf   :  { %v566_v30 = vpop.f32.mrf.mxu1  ;;  %1179 = vst [vmem:[%s1890_s2 + $0x90] sm:$0xff] %v1347_v27 }
  0xe0   :  { %1180 = vst [vmem:[%s1890_s2 + $0x98] sm:$0xff] %v1348_v28  ;;  %v515_v31 = vpop.f32.mrf.mxu0 }
  0xe1   :  { %v568_v32 = vpop.f32.mrf.mxu1  ;;  %v1356_v33 = vpack.c.bf16 %v515_v31, %v513_v29 }
  0xe2   :  { %v1357_v34 = vpack.c.bf16 %v568_v32, %v566_v30  ;;  %v605_v35 = vpop.f32.mrf.mxu0 }
  0xe3   :  { %v658_v36 = vpop.f32.mrf.mxu1  ;;  %1188 = vst [vmem:[%s1890_s2 + $0xd8] sm:$0xff] %v1356_v33 }
  0xe4   :  { %1189 = vst [vmem:[%s1890_s2 + $0xe0] sm:$0xff] %v1357_v34  ;;  %v607_v37 = vpop.f32.mrf.mxu0 }
  0xe5   :  { %v660_v38 = vpop.f32.mrf.mxu1  ;;  %v1331_v39 = vpack.c.bf16 %v607_v37, %v605_v35 }
  0xe6   :  { %v1332_v40 = vpack.c.bf16 %v660_v38, %v658_v36  ;;  %v609_v41 = vpop.f32.mrf.mxu0 }
  0xe7   :  { %v662_v42 = vpop.f32.mrf.mxu1  ;;  %1160 = vst [vmem:[%s1890_s2 + $0x10] sm:$0xff] %v1331_v39 }
  0xe8   :  { %1161 = vst [vmem:[%s1890_s2 + $0x18] sm:$0xff] %v1332_v40  ;;  %v611_v43 = vpop.f32.mrf.mxu0 }
  0xe9   :  { %v664_v44 = vpop.f32.mrf.mxu1  ;;  %v1340_v45 = vpack.c.bf16 %v611_v43, %v609_v41 }
  0xea   :  { %v1341_v46 = vpack.c.bf16 %v664_v44, %v662_v42  ;;  %v615_v47 = vpop.f32.mrf.mxu0 }
  0xeb   :  { %v668_v48 = vpop.f32.mrf.mxu1  ;;  %1172 = vst [vmem:[%s1890_s2 + $0x58] sm:$0xff] %v1340_v45 }
  0xec   :  { %1173 = vst [vmem:[%s1890_s2 + $0x60] sm:$0xff] %v1341_v46  ;;  %v617_v49 = vpop.f32.mrf.mxu0 }
  0xed   :  { %v670_v50 = vpop.f32.mrf.mxu1  ;;  %v1349_v51 = vpack.c.bf16 %v617_v49, %v615_v47 }
  0xee   :  { %v1350_v52 = vpack.c.bf16 %v670_v50, %v668_v48  ;;  %v619_v53 = vpop.f32.mrf.mxu0 }
  0xef   :  { %v672_v54 = vpop.f32.mrf.mxu1  ;;  %1181 = vst [vmem:[%s1890_s2 + $0xa0] sm:$0xff] %v1349_v51 }
  0xf0   :  { %1182 = vst [vmem:[%s1890_s2 + $0xa8] sm:$0xff] %v1350_v52  ;;  %v621_v55 = vpop.f32.mrf.mxu0 }
  0xf1   :  { %v674_v56 = vpop.f32.mrf.mxu1  ;;  %v1358_v57 = vpack.c.bf16 %v621_v55, %v619_v53 }
  0xf2   :  { %v1359_v58 = vpack.c.bf16 %v674_v56, %v672_v54  ;;  %v711_v59 = vpop.f32.mrf.mxu0 }
  0xf3   :  { %v764_v60 = vpop.f32.mrf.mxu1  ;;  %1190 = vst [vmem:[%s1890_s2 + $0xe8] sm:$0xff] %v1358_v57 }
  0xf4   :  { %1191 = vst [vmem:[%s1890_s2 + $0xf0] sm:$0xff] %v1359_v58  ;;  %v713_v61 = vpop.f32.mrf.mxu0 }
  0xf5   :  { %v766_v62 = vpop.f32.mrf.mxu1  ;;  %v1333_v63 = vpack.c.bf16 %v713_v61, %v711_v59 }
  0xf6   :  { %v1334_v0 = vpack.c.bf16 %v766_v62, %v764_v60  ;;  %v715_v2 = vpop.f32.mrf.mxu0 }
  0xf7   :  { %v768_v3 = vpop.f32.mrf.mxu1  ;;  %1162 = vst [vmem:[%s1890_s2 + $0x20] sm:$0xff] %v1333_v63 }
  0xf8   :  { %1163 = vst [vmem:[%s1890_s2 + $0x28] sm:$0xff] %v1334_v0  ;;  %v717_v4 = vpop.f32.mrf.mxu0 }
  0xf9   :  { %v770_v5 = vpop.f32.mrf.mxu1  ;;  %v1342_v6 = vpack.c.bf16 %v717_v4, %v715_v2 }
  0xfa   :  { %v1343_v7 = vpack.c.bf16 %v770_v5, %v768_v3  ;;  %v721_v8 = vpop.f32.mrf.mxu0 }
  0xfb   :  { %v774_v9 = vpop.f32.mrf.mxu1  ;;  %1174 = vst [vmem:[%s1890_s2 + $0x68] sm:$0xff] %v1342_v6 }
  0xfc   :  { %1175 = vst [vmem:[%s1890_s2 + $0x70] sm:$0xff] %v1343_v7  ;;  %v723_v10 = vpop.f32.mrf.mxu0 }
  0xfd   :  { %v776_v11 = vpop.f32.mrf.mxu1  ;;  %v1351_v12 = vpack.c.bf16 %v723_v10, %v721_v8 }
  0xfe   :  { %v1352_v13 = vpack.c.bf16 %v776_v11, %v774_v9  ;;  %v725_v14 = vpop.f32.mrf.mxu0 }
  0xff   :  { %v778_v15 = vpop.f32.mrf.mxu1  ;;  %1183 = vst [vmem:[%s1890_s2 + $0xb0] sm:$0xff] %v1351_v12 }
 0x100   :  { %1184 = vst [vmem:[%s1890_s2 + $0xb8] sm:$0xff] %v1352_v13  ;;  %v727_v16 = vpop.f32.mrf.mxu0 }
 0x101   :  { %v780_v17 = vpop.f32.mrf.mxu1  ;;  %v1360_v18 = vpack.c.bf16 %v727_v16, %v725_v14 }
 0x102   :  { %v1361_v20 = vpack.c.bf16 %v780_v17, %v778_v15  ;;  %v817_v1 = vpop.f32.mrf.mxu0 }
 0x103   :  { %v870_v19 = vpop.f32.mrf.mxu1  ;;  %1192 = vst [vmem:[%s1890_s2 + $0xf8] sm:$0xff] %v1360_v18 }
 0x104   :  { %1193 = vst [vmem:[%s1890_s2 + $0x100] sm:$0xff] %v1361_v20  ;;  %v819_v21 = vpop.f32.mrf.mxu0 }
 0x105   :  { %v872_v22 = vpop.f32.mrf.mxu1  ;;  %v1335_v23 = vpack.c.bf16 %v819_v21, %v817_v1 }
 0x106   :  { %v1336_v24 = vpack.c.bf16 %v872_v22, %v870_v19  ;;  %v821_v25 = vpop.f32.mrf.mxu0 }
 0x107   :  { %v874_v26 = vpop.f32.mrf.mxu1  ;;  %1164 = vst [vmem:[%s1890_s2 + $0x30] sm:$0xff] %v1335_v23 }
 0x108   :  { %1165 = vst [vmem:[%s1890_s2 + $0x38] sm:$0xff] %v1336_v24  ;;  %v823_v27 = vpop.f32.mrf.mxu0 }
 0x109   :  { %v876_v28 = vpop.f32.mrf.mxu1  ;;  %v1344_v29 = vpack.c.bf16 %v823_v27, %v821_v25 }
 0x10a   :  { %v1345_v30 = vpack.c.bf16 %v876_v28, %v874_v26  ;;  %v827_v31 = vpop.f32.mrf.mxu0 }
 0x10b   :  { %v880_v32 = vpop.f32.mrf.mxu1  ;;  %1176 = vst [vmem:[%s1890_s2 + $0x78] sm:$0xff] %v1344_v29 }
 0x10c   :  { %1177 = vst [vmem:[%s1890_s2 + $0x80] sm:$0xff] %v1345_v30  ;;  %v829_v33 = vpop.f32.mrf.mxu0 }
 0x10d   :  { %v882_v34 = vpop.f32.mrf.mxu1  ;;  %v1353_v35 = vpack.c.bf16 %v829_v33, %v827_v31 }
 0x10e   :  { %v1354_v36 = vpack.c.bf16 %v882_v34, %v880_v32  ;;  %v831_v37 = vpop.f32.mrf.mxu0 }
 0x10f   :  { %v884_v38 = vpop.f32.mrf.mxu1  ;;  %1185 = vst [vmem:[%s1890_s2 + $0xc0] sm:$0xff] %v1353_v35 }
 0x110   :  { %1186 = vst [vmem:[%s1890_s2 + $0xc8] sm:$0xff] %v1354_v36  ;;  %v833_v39 = vpop.f32.mrf.mxu0 }
 0x111   :  { %v886_v40 = vpop.f32.mrf.mxu1  ;;  %v1362_v41 = vpack.c.bf16 %v833_v39, %v831_v37 }
 0x112   :  { %v1363_v42 = vpack.c.bf16 %v886_v40, %v884_v38  ;;  %v923_v43 = vpop.f32.mrf.mxu0 }
 0x113   :  { %v933_v44 = vpop.f32.mrf.mxu1  ;;  %1194 = vst [vmem:[%s1890_s2 + $0x108] sm:$0xff] %v1362_v41 }
 0x114   :  { %1195 = vst [vmem:[%s1890_s2 + $0x110] sm:$0xff] %v1363_v42  ;;  %v925_v45 = vpop.f32.mrf.mxu0 }
 0x115   :  { %v935_v46 = vpop.f32.mrf.mxu1  ;;  %v1337_v47 = vpack.c.bf16 %v925_v45, %v923_v43 }
 0x116   :  { %v1355_v48 = vpack.c.bf16 %v935_v46, %v933_v44  ;;  %v927_v49 = vpop.f32.mrf.mxu0 }
 0x117   :  { %v937_v50 = vpop.f32.mrf.mxu1  ;;  %1169 = vst.msk [vmem:[%s1890_s2 + $0x40] sm:$0xff] %vm1168_vm3, %v1337_v47 }
 0x118   :  { %1187 = vst.msk [vmem:[%s1890_s2 + $0xd0] sm:$0xff] %vm1168_vm3, %v1355_v48  ;;  %v929_v51 = vpop.f32.mrf.mxu0 }
 0x119   :  { %v939_v52 = vpop.f32.mrf.mxu1  ;;  %v1346_v53 = vpack.c.bf16 %v929_v51, %v927_v49 }
 0x11a   :  { %v1364_v54 = vpack.c.bf16 %v939_v52, %v937_v50 }
 0x11b   :  { %1178 = vst.msk [vmem:[%s1890_s2 + $0x88] sm:$0xff] %vm1168_vm3, %v1346_v53 }
 0x11c   :  { %1196 = vst.msk [vmem:[%s1890_s2 + $0x118] sm:$0xff] %vm1168_vm3, %v1364_v54 }

// kernel: generator_forward.14
= control target key start
LH: loop header
LB: loop body
LE: loop exit
PB: predicated region body
PF: predicated region fallthrough
CT: control target
= control target key end

     0   :  { %s2655_s12 = smov 0   ;;  %s2657_s13 = smov 0   ;;  %s3286_s0 = inlined_call_operand.vmem [shape: bf16[8,72], index: 0, kind: input, shape index: {}]   ;;  %s3287_s1 = inlined_call_operand.vmem [shape: bf16[72,8192], index: 1, kind: input, shape index: {}]   ;;  %s3288_s2 = inlined_call_operand.vmem [shape: f32[8,1], index: 2, kind: input, shape index: {}]   ;;  %s3289_s3 = inlined_call_operand.vmem [shape: bf16[8,8192], index: 3, kind: output, shape index: {}]  }
   0x1   :  { %s2659_s14 = smov 0  }
   0x2 LB: > { %s2314_s15 = sadd.s32 4294967295, %s2632_s14   ;;  %s2672_s16 = sadd.s32 1, %s2632_s14   ;;  %s2632_s14 = sphi %s2659_s14, %s3292_s14   ;;  %s2628_s13 = sphi %s2657_s13, %s3291_s13   ;;  %s2624_s12 = sphi %s2655_s12, %s3290_s12  }
   0x3   : > { %s38_s17 = ssub.s32 %s2632_s14, %s2672_s16  ;;  %s41_s18 = sadd.s32 1, %s2628_s13 }
   0x4   : > { %p39_p0 = scmp.eq.s32.totalorder %s38_s17, 0  ;;  %p48_p1 = scmp.ne.s32.totalorder %s2628_s13, %s2624_s12 }
   0x5   : > { %p49_p2 = scmp.eq.s32.totalorder %s2632_s14, 0  ;;  %p2317_p4 = scmp.ge.s32.totalorder %s2632_s14, 2 }
   0x6   : > { %s2681_s19 = scalar_select %p39_p0, %s2628_s13, %s41_s18  }
   0x7   : > { %p50_p3 = por %p49_p2, %p48_p1  ;;  %127 = sbr.rel (%p2317_p4) target bundleno = 89 (0x59), region = 24 }
   0xc   : > { %130 = sbr.rel (!%p50_p3) target bundleno = 89 (0x59), region = 28  ;;  %s132_s20 = sand.u32 (%p50_p3), 1, %s2628_s13  }
   0xd   : > { %s2533_s21 = sshll.u32 (%p50_p3), %s2632_s14, 7  ;;  %s2550_s22 = smul.u32 (%p50_p3), 1152, %s132_s20 }
   0xe   : > { %s2689_s25 = scalar_lea.vmem (%p50_p3), %s3287_s1, %s2533_s21 }
   0xf   : > { %v150_v0 = vld [vmem:[%s2689_s25] sm:$0xff] (%p50_p3)  ;;  %v152_v1 = vld [vmem:[%s2689_s25 + $0x8] sm:$0xff] (%p50_p3)  ;;  %v154_v2 = vld [vmem:[%s2689_s25 + $0x10] sm:$0xff] (%p50_p3)  ;;  %s2697_s26 = scalar_lea.vmem (%p50_p3), [#allocation2], %s2550_s22 }
  0x10   : > { %v156_v3 = vld [vmem:[%s2689_s25 + $0x18] sm:$0xff] (%p50_p3)  ;;  %v158_v4 = vld [vmem:[%s2689_s25 + $0x20] sm:$0xff] (%p50_p3)  ;;  %v160_v5 = vld [vmem:[%s2689_s25 + $0x28] sm:$0xff] (%p50_p3)  ;;  %151 = vst [vmem:[%s2697_s26] sm:$0xff] (%p50_p3), %v150_v0 }
  0x11   : > { %153 = vst [vmem:[%s2697_s26 + $0x8] sm:$0xff] %v152_v1  ;;  %155 = vst [vmem:[%s2697_s26 + $0x10] sm:$0xff] %v154_v2  ;;  %v162_v6 = vld [vmem:[%s2689_s25 + $0x30] sm:$0xff]  ;;  %v164_v7 = vld [vmem:[%s2689_s25 + $0x38] sm:$0xff] }
  0x12   : > { %157 = vst [vmem:[%s2697_s26 + $0x18] sm:$0xff] %v156_v3  ;;  %159 = vst [vmem:[%s2697_s26 + $0x20] sm:$0xff] %v158_v4  ;;  %v166_v8 = vld [vmem:[%s2689_s25 + $0x40] sm:$0xff]  ;;  %v168_v9 = vld [vmem:[%s2689_s25 + $0x48] sm:$0xff] }
  0x13   : > { %161 = vst [vmem:[%s2697_s26 + $0x28] sm:$0xff] %v160_v5  ;;  %163 = vst [vmem:[%s2697_s26 + $0x30] sm:$0xff] %v162_v6  ;;  %v170_v10 = vld [vmem:[%s2689_s25 + $0x50] sm:$0xff]  ;;  %v172_v11 = vld [vmem:[%s2689_s25 + $0x58] sm:$0xff] }
  0x14   : > { %165 = vst [vmem:[%s2697_s26 + $0x38] sm:$0xff] %v164_v7  ;;  %167 = vst [vmem:[%s2697_s26 + $0x40] sm:$0xff] %v166_v8  ;;  %v174_v12 = vld [vmem:[%s2689_s25 + $0x60] sm:$0xff]  ;;  %v176_v13 = vld [vmem:[%s2689_s25 + $0x68] sm:$0xff] }
  0x15   : > { %169 = vst [vmem:[%s2697_s26 + $0x48] sm:$0xff] %v168_v9  ;;  %171 = vst [vmem:[%s2697_s26 + $0x50] sm:$0xff] %v170_v10  ;;  %v178_v14 = vld [vmem:[%s2689_s25 + $0x70] sm:$0xff]  ;;  %v180_v15 = vld [vmem:[%s2689_s25 + $0x78] sm:$0xff] }
  0x16   : > { %173 = vst [vmem:[%s2697_s26 + $0x58] sm:$0xff] %v172_v11  ;;  %175 = vst [vmem:[%s2697_s26 + $0x60] sm:$0xff] %v174_v12  ;;  %v182_v16 = vld [vmem:[%s2689_s25 + $0x100] sm:$0xff]  ;;  %v184_v17 = vld [vmem:[%s2689_s25 + $0x108] sm:$0xff] }
  0x17   : > { %177 = vst [vmem:[%s2697_s26 + $0x68] sm:$0xff] %v176_v13  ;;  %179 = vst [vmem:[%s2697_s26 + $0x70] sm:$0xff] %v178_v14  ;;  %v186_v18 = vld [vmem:[%s2689_s25 + $0x110] sm:$0xff]  ;;  %v188_v19 = vld [vmem:[%s2689_s25 + $0x118] sm:$0xff] }
  0x18   : > { %181 = vst [vmem:[%s2697_s26 + $0x78] sm:$0xff] %v180_v15  ;;  %183 = vst [vmem:[%s2697_s26 + $0x80] sm:$0xff] %v182_v16  ;;  %v190_v20 = vld [vmem:[%s2689_s25 + $0x120] sm:$0xff]  ;;  %v192_v21 = vld [vmem:[%s2689_s25 + $0x128] sm:$0xff] }
  0x19   : > { %185 = vst [vmem:[%s2697_s26 + $0x88] sm:$0xff] %v184_v17  ;;  %187 = vst [vmem:[%s2697_s26 + $0x90] sm:$0xff] %v186_v18  ;;  %v194_v22 = vld [vmem:[%s2689_s25 + $0x130] sm:$0xff]  ;;  %v196_v23 = vld [vmem:[%s2689_s25 + $0x138] sm:$0xff] }
  0x1a   : > { %189 = vst [vmem:[%s2697_s26 + $0x98] sm:$0xff] %v188_v19  ;;  %191 = vst [vmem:[%s2697_s26 + $0xa0] sm:$0xff] %v190_v20  ;;  %v198_v24 = vld [vmem:[%s2689_s25 + $0x140] sm:$0xff]  ;;  %v200_v25 = vld [vmem:[%s2689_s25 + $0x148] sm:$0xff] }
  0x1b   : > { %193 = vst [vmem:[%s2697_s26 + $0xa8] sm:$0xff] %v192_v21  ;;  %195 = vst [vmem:[%s2697_s26 + $0xb0] sm:$0xff] %v194_v22  ;;  %v202_v26 = vld [vmem:[%s2689_s25 + $0x150] sm:$0xff]  ;;  %v204_v27 = vld [vmem:[%s2689_s25 + $0x158] sm:$0xff] }
  0x1c   : > { %197 = vst [vmem:[%s2697_s26 + $0xb8] sm:$0xff] %v196_v23  ;;  %199 = vst [vmem:[%s2697_s26 + $0xc0] sm:$0xff] %v198_v24  ;;  %v206_v28 = vld [vmem:[%s2689_s25 + $0x160] sm:$0xff]  ;;  %v208_v29 = vld [vmem:[%s2689_s25 + $0x168] sm:$0xff] }
  0x1d   : > { %201 = vst [vmem:[%s2697_s26 + $0xc8] sm:$0xff] %v200_v25  ;;  %203 = vst [vmem:[%s2697_s26 + $0xd0] sm:$0xff] %v202_v26  ;;  %v210_v30 = vld [vmem:[%s2689_s25 + $0x170] sm:$0xff]  ;;  %v212_v31 = vld [vmem:[%s2689_s25 + $0x178] sm:$0xff] }
  0x1e   : > { %205 = vst [vmem:[%s2697_s26 + $0xd8] sm:$0xff] %v204_v27  ;;  %207 = vst [vmem:[%s2697_s26 + $0xe0] sm:$0xff] %v206_v28  ;;  %v214_v32 = vld [vmem:[%s2689_s25 + $0x200] sm:$0xff]  ;;  %v216_v33 = vld [vmem:[%s2689_s25 + $0x208] sm:$0xff] }
  0x1f   : > { %209 = vst [vmem:[%s2697_s26 + $0xe8] sm:$0xff] %v208_v29  ;;  %211 = vst [vmem:[%s2697_s26 + $0xf0] sm:$0xff] %v210_v30  ;;  %v218_v34 = vld [vmem:[%s2689_s25 + $0x210] sm:$0xff]  ;;  %v220_v35 = vld [vmem:[%s2689_s25 + $0x218] sm:$0xff] }
  0x20   : > { %213 = vst [vmem:[%s2697_s26 + $0xf8] sm:$0xff] %v212_v31  ;;  %215 = vst [vmem:[%s2697_s26 + $0x100] sm:$0xff] %v214_v32  ;;  %v222_v36 = vld [vmem:[%s2689_s25 + $0x220] sm:$0xff]  ;;  %v224_v37 = vld [vmem:[%s2689_s25 + $0x228] sm:$0xff] }
  0x21   : > { %217 = vst [vmem:[%s2697_s26 + $0x108] sm:$0xff] %v216_v33  ;;  %219 = vst [vmem:[%s2697_s26 + $0x110] sm:$0xff] %v218_v34  ;;  %v226_v38 = vld [vmem:[%s2689_s25 + $0x230] sm:$0xff]  ;;  %v228_v39 = vld [vmem:[%s2689_s25 + $0x238] sm:$0xff] }
  0x22   : > { %221 = vst [vmem:[%s2697_s26 + $0x118] sm:$0xff] %v220_v35  ;;  %223 = vst [vmem:[%s2697_s26 + $0x120] sm:$0xff] %v222_v36  ;;  %v230_v40 = vld [vmem:[%s2689_s25 + $0x240] sm:$0xff]  ;;  %v232_v41 = vld [vmem:[%s2689_s25 + $0x248] sm:$0xff] }
  0x23   : > { %225 = vst [vmem:[%s2697_s26 + $0x128] sm:$0xff] %v224_v37  ;;  %227 = vst [vmem:[%s2697_s26 + $0x130] sm:$0xff] %v226_v38  ;;  %v234_v42 = vld [vmem:[%s2689_s25 + $0x250] sm:$0xff]  ;;  %v236_v43 = vld [vmem:[%s2689_s25 + $0x258] sm:$0xff] }
  0x24   : > { %229 = vst [vmem:[%s2697_s26 + $0x138] sm:$0xff] %v228_v39  ;;  %231 = vst [vmem:[%s2697_s26 + $0x140] sm:$0xff] %v230_v40  ;;  %v238_v44 = vld [vmem:[%s2689_s25 + $0x260] sm:$0xff]  ;;  %v240_v45 = vld [vmem:[%s2689_s25 + $0x268] sm:$0xff] }
  0x25   : > { %233 = vst [vmem:[%s2697_s26 + $0x148] sm:$0xff] %v232_v41  ;;  %235 = vst [vmem:[%s2697_s26 + $0x150] sm:$0xff] %v234_v42  ;;  %v242_v46 = vld [vmem:[%s2689_s25 + $0x270] sm:$0xff]  ;;  %v244_v47 = vld [vmem:[%s2689_s25 + $0x278] sm:$0xff] }
  0x26   : > { %237 = vst [vmem:[%s2697_s26 + $0x158] sm:$0xff] %v236_v43  ;;  %239 = vst [vmem:[%s2697_s26 + $0x160] sm:$0xff] %v238_v44  ;;  %v246_v48 = vld [vmem:[%s2689_s25 + $0x300] sm:$0xff]  ;;  %v248_v49 = vld [vmem:[%s2689_s25 + $0x308] sm:$0xff] }
  0x27   : > { %241 = vst [vmem:[%s2697_s26 + $0x168] sm:$0xff] %v240_v45  ;;  %243 = vst [vmem:[%s2697_s26 + $0x170] sm:$0xff] %v242_v46  ;;  %v250_v50 = vld [vmem:[%s2689_s25 + $0x310] sm:$0xff]  ;;  %v252_v51 = vld [vmem:[%s2689_s25 + $0x318] sm:$0xff] }
  0x28   : > { %245 = vst [vmem:[%s2697_s26 + $0x178] sm:$0xff] %v244_v47  ;;  %247 = vst [vmem:[%s2697_s26 + $0x180] sm:$0xff] %v246_v48  ;;  %v254_v52 = vld [vmem:[%s2689_s25 + $0x320] sm:$0xff]  ;;  %v256_v53 = vld [vmem:[%s2689_s25 + $0x328] sm:$0xff] }
  0x29   : > { %249 = vst [vmem:[%s2697_s26 + $0x188] sm:$0xff] %v248_v49  ;;  %251 = vst [vmem:[%s2697_s26 + $0x190] sm:$0xff] %v250_v50  ;;  %v258_v54 = vld [vmem:[%s2689_s25 + $0x330] sm:$0xff]  ;;  %v260_v55 = vld [vmem:[%s2689_s25 + $0x338] sm:$0xff] }
  0x2a   : > { %253 = vst [vmem:[%s2697_s26 + $0x198] sm:$0xff] %v252_v51  ;;  %255 = vst [vmem:[%s2697_s26 + $0x1a0] sm:$0xff] %v254_v52  ;;  %v262_v56 = vld [vmem:[%s2689_s25 + $0x340] sm:$0xff]  ;;  %v264_v57 = vld [vmem:[%s2689_s25 + $0x348] sm:$0xff] }
  0x2b   : > { %257 = vst [vmem:[%s2697_s26 + $0x1a8] sm:$0xff] %v256_v53  ;;  %259 = vst [vmem:[%s2697_s26 + $0x1b0] sm:$0xff] %v258_v54  ;;  %v266_v58 = vld [vmem:[%s2689_s25 + $0x350] sm:$0xff]  ;;  %v268_v59 = vld [vmem:[%s2689_s25 + $0x358] sm:$0xff] }
  0x2c   : > { %261 = vst [vmem:[%s2697_s26 + $0x1b8] sm:$0xff] %v260_v55  ;;  %263 = vst [vmem:[%s2697_s26 + $0x1c0] sm:$0xff] %v262_v56  ;;  %v270_v60 = vld [vmem:[%s2689_s25 + $0x360] sm:$0xff]  ;;  %v272_v61 = vld [vmem:[%s2689_s25 + $0x368] sm:$0xff] }
  0x2d   : > { %265 = vst [vmem:[%s2697_s26 + $0x1c8] sm:$0xff] %v264_v57  ;;  %267 = vst [vmem:[%s2697_s26 + $0x1d0] sm:$0xff] %v266_v58  ;;  %v274_v62 = vld [vmem:[%s2689_s25 + $0x370] sm:$0xff]  ;;  %v276_v63 = vld [vmem:[%s2689_s25 + $0x378] sm:$0xff] }
  0x2e   : > { %269 = vst [vmem:[%s2697_s26 + $0x1d8] sm:$0xff] %v268_v59  ;;  %271 = vst [vmem:[%s2697_s26 + $0x1e0] sm:$0xff] %v270_v60  ;;  %v278_v0 = vld [vmem:[%s2689_s25 + $0x400] sm:$0xff]  ;;  %v280_v1 = vld [vmem:[%s2689_s25 + $0x408] sm:$0xff] }
  0x2f   : > { %273 = vst [vmem:[%s2697_s26 + $0x1e8] sm:$0xff] %v272_v61  ;;  %275 = vst [vmem:[%s2697_s26 + $0x1f0] sm:$0xff] %v274_v62  ;;  %v282_v2 = vld [vmem:[%s2689_s25 + $0x410] sm:$0xff]  ;;  %v284_v3 = vld [vmem:[%s2689_s25 + $0x418] sm:$0xff] }
  0x30   : > { %277 = vst [vmem:[%s2697_s26 + $0x1f8] sm:$0xff] %v276_v63  ;;  %279 = vst [vmem:[%s2697_s26 + $0x200] sm:$0xff] %v278_v0  ;;  %v286_v4 = vld [vmem:[%s2689_s25 + $0x420] sm:$0xff]  ;;  %v288_v5 = vld [vmem:[%s2689_s25 + $0x428] sm:$0xff] }
  0x31   : > { %281 = vst [vmem:[%s2697_s26 + $0x208] sm:$0xff] %v280_v1  ;;  %283 = vst [vmem:[%s2697_s26 + $0x210] sm:$0xff] %v282_v2  ;;  %v290_v6 = vld [vmem:[%s2689_s25 + $0x430] sm:$0xff]  ;;  %v292_v7 = vld [vmem:[%s2689_s25 + $0x438] sm:$0xff] }
  0x32   : > { %285 = vst [vmem:[%s2697_s26 + $0x218] sm:$0xff] %v284_v3  ;;  %287 = vst [vmem:[%s2697_s26 + $0x220] sm:$0xff] %v286_v4  ;;  %v294_v8 = vld [vmem:[%s2689_s25 + $0x440] sm:$0xff]  ;;  %v296_v9 = vld [vmem:[%s2689_s25 + $0x448] sm:$0xff] }
  0x33   : > { %289 = vst [vmem:[%s2697_s26 + $0x228] sm:$0xff] %v288_v5  ;;  %291 = vst [vmem:[%s2697_s26 + $0x230] sm:$0xff] %v290_v6  ;;  %v298_v10 = vld [vmem:[%s2689_s25 + $0x450] sm:$0xff]  ;;  %v300_v11 = vld [vmem:[%s2689_s25 + $0x458] sm:$0xff] }
  0x34   : > { %293 = vst [vmem:[%s2697_s26 + $0x238] sm:$0xff] %v292_v7  ;;  %295 = vst [vmem:[%s2697_s26 + $0x240] sm:$0xff] %v294_v8  ;;  %v302_v12 = vld [vmem:[%s2689_s25 + $0x460] sm:$0xff]  ;;  %v304_v13 = vld [vmem:[%s2689_s25 + $0x468] sm:$0xff] }
  0x35   : > { %297 = vst [vmem:[%s2697_s26 + $0x248] sm:$0xff] %v296_v9  ;;  %299 = vst [vmem:[%s2697_s26 + $0x250] sm:$0xff] %v298_v10  ;;  %v306_v14 = vld [vmem:[%s2689_s25 + $0x470] sm:$0xff]  ;;  %v308_v15 = vld [vmem:[%s2689_s25 + $0x478] sm:$0xff] }
  0x36   : > { %301 = vst [vmem:[%s2697_s26 + $0x258] sm:$0xff] %v300_v11  ;;  %303 = vst [vmem:[%s2697_s26 + $0x260] sm:$0xff] %v302_v12  ;;  %v310_v16 = vld [vmem:[%s2689_s25 + $0x500] sm:$0xff]  ;;  %v312_v17 = vld [vmem:[%s2689_s25 + $0x508] sm:$0xff] }
  0x37   : > { %305 = vst [vmem:[%s2697_s26 + $0x268] sm:$0xff] %v304_v13  ;;  %307 = vst [vmem:[%s2697_s26 + $0x270] sm:$0xff] %v306_v14  ;;  %v314_v18 = vld [vmem:[%s2689_s25 + $0x510] sm:$0xff]  ;;  %v316_v19 = vld [vmem:[%s2689_s25 + $0x518] sm:$0xff] }
  0x38   : > { %309 = vst [vmem:[%s2697_s26 + $0x278] sm:$0xff] %v308_v15  ;;  %311 = vst [vmem:[%s2697_s26 + $0x280] sm:$0xff] %v310_v16  ;;  %v318_v20 = vld [vmem:[%s2689_s25 + $0x520] sm:$0xff]  ;;  %v320_v21 = vld [vmem:[%s2689_s25 + $0x528] sm:$0xff] }
  0x39   : > { %313 = vst [vmem:[%s2697_s26 + $0x288] sm:$0xff] %v312_v17  ;;  %315 = vst [vmem:[%s2697_s26 + $0x290] sm:$0xff] %v314_v18  ;;  %v322_v22 = vld [vmem:[%s2689_s25 + $0x530] sm:$0xff]  ;;  %v324_v23 = vld [vmem:[%s2689_s25 + $0x538] sm:$0xff] }
  0x3a   : > { %317 = vst [vmem:[%s2697_s26 + $0x298] sm:$0xff] %v316_v19  ;;  %319 = vst [vmem:[%s2697_s26 + $0x2a0] sm:$0xff] %v318_v20  ;;  %v326_v24 = vld [vmem:[%s2689_s25 + $0x540] sm:$0xff]  ;;  %v328_v25 = vld [vmem:[%s2689_s25 + $0x548] sm:$0xff] }
  0x3b   : > { %321 = vst [vmem:[%s2697_s26 + $0x2a8] sm:$0xff] %v320_v21  ;;  %323 = vst [vmem:[%s2697_s26 + $0x2b0] sm:$0xff] %v322_v22  ;;  %v330_v26 = vld [vmem:[%s2689_s25 + $0x550] sm:$0xff]  ;;  %v332_v27 = vld [vmem:[%s2689_s25 + $0x558] sm:$0xff] }
  0x3c   : > { %325 = vst [vmem:[%s2697_s26 + $0x2b8] sm:$0xff] %v324_v23  ;;  %327 = vst [vmem:[%s2697_s26 + $0x2c0] sm:$0xff] %v326_v24  ;;  %v334_v28 = vld [vmem:[%s2689_s25 + $0x560] sm:$0xff]  ;;  %v336_v29 = vld [vmem:[%s2689_s25 + $0x568] sm:$0xff] }
  0x3d   : > { %329 = vst [vmem:[%s2697_s26 + $0x2c8] sm:$0xff] %v328_v25  ;;  %331 = vst [vmem:[%s2697_s26 + $0x2d0] sm:$0xff] %v330_v26  ;;  %v338_v30 = vld [vmem:[%s2689_s25 + $0x570] sm:$0xff]  ;;  %v340_v31 = vld [vmem:[%s2689_s25 + $0x578] sm:$0xff] }
  0x3e   : > { %333 = vst [vmem:[%s2697_s26 + $0x2d8] sm:$0xff] %v332_v27  ;;  %335 = vst [vmem:[%s2697_s26 + $0x2e0] sm:$0xff] %v334_v28  ;;  %v342_v32 = vld [vmem:[%s2689_s25 + $0x600] sm:$0xff]  ;;  %v344_v33 = vld [vmem:[%s2689_s25 + $0x608] sm:$0xff] }
  0x3f   : > { %337 = vst [vmem:[%s2697_s26 + $0x2e8] sm:$0xff] %v336_v29  ;;  %339 = vst [vmem:[%s2697_s26 + $0x2f0] sm:$0xff] %v338_v30  ;;  %v346_v34 = vld [vmem:[%s2689_s25 + $0x610] sm:$0xff]  ;;  %v348_v35 = vld [vmem:[%s2689_s25 + $0x618] sm:$0xff] }
  0x40   : > { %341 = vst [vmem:[%s2697_s26 + $0x2f8] sm:$0xff] %v340_v31  ;;  %343 = vst [vmem:[%s2697_s26 + $0x300] sm:$0xff] %v342_v32  ;;  %v350_v36 = vld [vmem:[%s2689_s25 + $0x620] sm:$0xff]  ;;  %v352_v37 = vld [vmem:[%s2689_s25 + $0x628] sm:$0xff] }
  0x41   : > { %345 = vst [vmem:[%s2697_s26 + $0x308] sm:$0xff] %v344_v33  ;;  %347 = vst [vmem:[%s2697_s26 + $0x310] sm:$0xff] %v346_v34  ;;  %v354_v38 = vld [vmem:[%s2689_s25 + $0x630] sm:$0xff]  ;;  %v356_v39 = vld [vmem:[%s2689_s25 + $0x638] sm:$0xff] }
  0x42   : > { %349 = vst [vmem:[%s2697_s26 + $0x318] sm:$0xff] %v348_v35  ;;  %351 = vst [vmem:[%s2697_s26 + $0x320] sm:$0xff] %v350_v36  ;;  %v358_v40 = vld [vmem:[%s2689_s25 + $0x640] sm:$0xff]  ;;  %v360_v41 = vld [vmem:[%s2689_s25 + $0x648] sm:$0xff] }
  0x43   : > { %353 = vst [vmem:[%s2697_s26 + $0x328] sm:$0xff] %v352_v37  ;;  %355 = vst [vmem:[%s2697_s26 + $0x330] sm:$0xff] %v354_v38  ;;  %v362_v42 = vld [vmem:[%s2689_s25 + $0x650] sm:$0xff]  ;;  %v364_v43 = vld [vmem:[%s2689_s25 + $0x658] sm:$0xff] }
  0x44   : > { %357 = vst [vmem:[%s2697_s26 + $0x338] sm:$0xff] %v356_v39  ;;  %359 = vst [vmem:[%s2697_s26 + $0x340] sm:$0xff] %v358_v40  ;;  %v366_v44 = vld [vmem:[%s2689_s25 + $0x660] sm:$0xff]  ;;  %v368_v45 = vld [vmem:[%s2689_s25 + $0x668] sm:$0xff] }
  0x45   : > { %361 = vst [vmem:[%s2697_s26 + $0x348] sm:$0xff] %v360_v41  ;;  %363 = vst [vmem:[%s2697_s26 + $0x350] sm:$0xff] %v362_v42  ;;  %v370_v46 = vld [vmem:[%s2689_s25 + $0x670] sm:$0xff]  ;;  %v372_v47 = vld [vmem:[%s2689_s25 + $0x678] sm:$0xff] }
  0x46   : > { %365 = vst [vmem:[%s2697_s26 + $0x358] sm:$0xff] %v364_v43  ;;  %367 = vst [vmem:[%s2697_s26 + $0x360] sm:$0xff] %v366_v44  ;;  %v374_v48 = vld [vmem:[%s2689_s25 + $0x700] sm:$0xff]  ;;  %v376_v49 = vld [vmem:[%s2689_s25 + $0x708] sm:$0xff] }
  0x47   : > { %369 = vst [vmem:[%s2697_s26 + $0x368] sm:$0xff] %v368_v45  ;;  %371 = vst [vmem:[%s2697_s26 + $0x370] sm:$0xff] %v370_v46  ;;  %v378_v50 = vld [vmem:[%s2689_s25 + $0x710] sm:$0xff]  ;;  %v380_v51 = vld [vmem:[%s2689_s25 + $0x718] sm:$0xff] }
  0x48   : > { %373 = vst [vmem:[%s2697_s26 + $0x378] sm:$0xff] %v372_v47  ;;  %375 = vst [vmem:[%s2697_s26 + $0x380] sm:$0xff] %v374_v48  ;;  %v382_v52 = vld [vmem:[%s2689_s25 + $0x720] sm:$0xff]  ;;  %v384_v53 = vld [vmem:[%s2689_s25 + $0x728] sm:$0xff] }
  0x49   : > { %377 = vst [vmem:[%s2697_s26 + $0x388] sm:$0xff] %v376_v49  ;;  %379 = vst [vmem:[%s2697_s26 + $0x390] sm:$0xff] %v378_v50  ;;  %v386_v54 = vld [vmem:[%s2689_s25 + $0x730] sm:$0xff]  ;;  %v388_v55 = vld [vmem:[%s2689_s25 + $0x738] sm:$0xff] }
  0x4a   : > { %381 = vst [vmem:[%s2697_s26 + $0x398] sm:$0xff] %v380_v51  ;;  %383 = vst [vmem:[%s2697_s26 + $0x3a0] sm:$0xff] %v382_v52  ;;  %v390_v56 = vld [vmem:[%s2689_s25 + $0x740] sm:$0xff]  ;;  %v392_v57 = vld [vmem:[%s2689_s25 + $0x748] sm:$0xff] }
  0x4b   : > { %385 = vst [vmem:[%s2697_s26 + $0x3a8] sm:$0xff] %v384_v53  ;;  %387 = vst [vmem:[%s2697_s26 + $0x3b0] sm:$0xff] %v386_v54  ;;  %v394_v58 = vld [vmem:[%s2689_s25 + $0x750] sm:$0xff]  ;;  %v396_v59 = vld [vmem:[%s2689_s25 + $0x758] sm:$0xff] }
  0x4c   : > { %389 = vst [vmem:[%s2697_s26 + $0x3b8] sm:$0xff] %v388_v55  ;;  %391 = vst [vmem:[%s2697_s26 + $0x3c0] sm:$0xff] %v390_v56  ;;  %v398_v60 = vld [vmem:[%s2689_s25 + $0x760] sm:$0xff]  ;;  %v400_v61 = vld [vmem:[%s2689_s25 + $0x768] sm:$0xff] }
  0x4d   : > { %393 = vst [vmem:[%s2697_s26 + $0x3c8] sm:$0xff] %v392_v57  ;;  %395 = vst [vmem:[%s2697_s26 + $0x3d0] sm:$0xff] %v394_v58  ;;  %v402_v62 = vld [vmem:[%s2689_s25 + $0x770] sm:$0xff]  ;;  %v404_v63 = vld [vmem:[%s2689_s25 + $0x778] sm:$0xff] }
  0x4e   : > { %397 = vst [vmem:[%s2697_s26 + $0x3d8] sm:$0xff] %v396_v59  ;;  %399 = vst [vmem:[%s2697_s26 + $0x3e0] sm:$0xff] %v398_v60  ;;  %v406_v0 = vld [vmem:[%s2689_s25 + $0x800] sm:$0xff]  ;;  %v408_v1 = vld [vmem:[%s2689_s25 + $0x808] sm:$0xff] }
  0x4f   : > { %401 = vst [vmem:[%s2697_s26 + $0x3e8] sm:$0xff] %v400_v61  ;;  %403 = vst [vmem:[%s2697_s26 + $0x3f0] sm:$0xff] %v402_v62  ;;  %v410_v2 = vld [vmem:[%s2689_s25 + $0x810] sm:$0xff]  ;;  %v412_v3 = vld [vmem:[%s2689_s25 + $0x818] sm:$0xff] }
  0x50   : > { %405 = vst [vmem:[%s2697_s26 + $0x3f8] sm:$0xff] %v404_v63  ;;  %407 = vst [vmem:[%s2697_s26 + $0x400] sm:$0xff] %v406_v0  ;;  %v414_v4 = vld [vmem:[%s2689_s25 + $0x820] sm:$0xff]  ;;  %v416_v5 = vld [vmem:[%s2689_s25 + $0x828] sm:$0xff] }
  0x51   : > { %409 = vst [vmem:[%s2697_s26 + $0x408] sm:$0xff] %v408_v1  ;;  %411 = vst [vmem:[%s2697_s26 + $0x410] sm:$0xff] %v410_v2  ;;  %v418_v6 = vld [vmem:[%s2689_s25 + $0x830] sm:$0xff]  ;;  %v420_v7 = vld [vmem:[%s2689_s25 + $0x838] sm:$0xff] }
  0x52   : > { %413 = vst [vmem:[%s2697_s26 + $0x418] sm:$0xff] %v412_v3  ;;  %415 = vst [vmem:[%s2697_s26 + $0x420] sm:$0xff] %v414_v4  ;;  %v422_v8 = vld [vmem:[%s2689_s25 + $0x840] sm:$0xff]  ;;  %v424_v9 = vld [vmem:[%s2689_s25 + $0x848] sm:$0xff] }
  0x53   : > { %417 = vst [vmem:[%s2697_s26 + $0x428] sm:$0xff] %v416_v5  ;;  %419 = vst [vmem:[%s2697_s26 + $0x430] sm:$0xff] %v418_v6  ;;  %v426_v10 = vld [vmem:[%s2689_s25 + $0x850] sm:$0xff]  ;;  %v428_v11 = vld [vmem:[%s2689_s25 + $0x858] sm:$0xff] }
  0x54   : > { %421 = vst [vmem:[%s2697_s26 + $0x438] sm:$0xff] %v420_v7  ;;  %423 = vst [vmem:[%s2697_s26 + $0x440] sm:$0xff] %v422_v8  ;;  %v430_v12 = vld [vmem:[%s2689_s25 + $0x860] sm:$0xff]  ;;  %v432_v13 = vld [vmem:[%s2689_s25 + $0x868] sm:$0xff] }
  0x55   : > { %425 = vst [vmem:[%s2697_s26 + $0x448] sm:$0xff] %v424_v9  ;;  %427 = vst [vmem:[%s2697_s26 + $0x450] sm:$0xff] %v426_v10  ;;  %v434_v14 = vld [vmem:[%s2689_s25 + $0x870] sm:$0xff]  ;;  %v436_v15 = vld [vmem:[%s2689_s25 + $0x878] sm:$0xff] }
  0x56   : > { %429 = vst [vmem:[%s2697_s26 + $0x458] sm:$0xff] %v428_v11  ;;  %431 = vst [vmem:[%s2697_s26 + $0x460] sm:$0xff] %v430_v12 }
  0x57   : > { %433 = vst [vmem:[%s2697_s26 + $0x468] sm:$0xff] %v432_v13  ;;  %435 = vst [vmem:[%s2697_s26 + $0x470] sm:$0xff] %v434_v14 }
  0x58   : > { %437 = vst [vmem:[%s2697_s26 + $0x478] sm:$0xff] %v436_v15 }
  0x59 PF: > { %p2320_p5 = scmp.ge.s32.totalorder %s2632_s14, 1  ;;  %p442_p6 = scmp.lt.s32.totalorder %s2632_s14, 3 }
  0x5b   : > { %p443_p7 = pnand %p2320_p5, %p442_p6 }
  0x5c   : > { %s449_s27 = sand.u32 (!%p443_p7), 1, %s2624_s12   ;;  %s2321_s7 = sshll.u32 (!%p443_p7), %s2314_s15, 5 }
  0x5d   : > { %446 = sbr.rel (%p443_p7) target bundleno = 462 (0x1ce), region = 51  ;;  %p474_p8 = scmp.lt.s32.totalorder (!%p443_p7), %s2321_s7, 63 }
  0x5e   : > { %s2551_s28 = smul.u32 (!%p443_p7), 1152, %s449_s27 }
  0x60   : > { %s2990_s4 = scalar_lea.vmem (!%p443_p7), [#allocation2], %s2551_s28 }
  0x62   : > { %v2634_v16 = vmov 0   ;;  %v625_v17 = vld [vmem:[%s3288_s2] sm:$0xff]  ;;  %vm1355_vm0 = vcmask 1043456   ;;  %v610_v19 = vld [vmem:[%s2990_s4 + $0x408] sm:$0xff]  ;;  %v611_v56 = vld [vmem:[%s2990_s4 + $0x410] sm:$0xff]  ;;  %vm1351_vm1 = vcmask 588800  }
  0x63   : > { %1484 = vmatprep.mubr.bf16.mxu0 %v2634_v16  ;;  %1525 = vmatprep.mubr.bf16.mxu1 %v2634_v16  ;;  %v609_v18 = vld [vmem:[%s2990_s4 + $0x400] sm:$0xff]  ;;  %v2454_v22 = vcombine.high %v610_v19, %v610_v19  ;;  %v2453_v24 = vcombine.low %v610_v19, %v610_v19  ;;  %v578_v26 = vld [vmem:[%s2990_s4 + $0x308] sm:$0xff]  ;;  %v612_v57 = vld [vmem:[%s2990_s4 + $0x418] sm:$0xff]  ;;  %v2456_v60 = vcombine.high %v611_v56, %v611_v56  ;;  %s3294_s7 = smov (!%p474_p8, %s2321_s7), 63 }
  0x64   : > { %2577 = vset.pattern.permute.xlu0 %v2634_v16  ;;  %v577_v20 = vld [vmem:[%s2990_s4 + $0x300] sm:$0xff]  ;;  %v2452_v21 = vcombine.high %v609_v18, %v609_v18  ;;  %v2451_v23 = vcombine.low %v609_v18, %v609_v18  ;;  %v594_v27 = vld [vmem:[%s2990_s4 + $0x388] sm:$0xff]  ;;  %v2458_v61 = vcombine.high %v612_v57, %v612_v57  ;;  %v2455_v62 = vcombine.low %v611_v56, %v611_v56  ;;  %v579_v0 = vld [vmem:[%s2990_s4 + $0x310] sm:$0xff]  ;;  %s2322_s8 = sshll.u32 %s3294_s7, 2 }
  0x65   : > { %628 = vperm.xlu0 %2577, %v625_v17   ;;  %v593_v25 = vld [vmem:[%s2990_s4 + $0x380] sm:$0xff]  ;;  %v2422_v29 = vcombine.high %v578_v26, %v594_v27  ;;  %v546_v32 = vld [vmem:[%s2990_s4 + $0x208] sm:$0xff]  ;;  %2485 = vmatprep.subr.msk.bf16.mxu1 %vm1355_vm0, %v2454_v22  ;;  %v1363_v34 = vsel %vm1355_vm0, %v2453_v24, 0  ;;  %v2421_v37 = vcombine.low %v578_v26, %v594_v27  ;;  %v2457_v63 = vcombine.low %v612_v57, %v612_v57  ;;  %v595_v1 = vld [vmem:[%s2990_s4 + $0x390] sm:$0xff]  ;;  %s3230_s11 = scalar_lea.vmem %s3289_s3, %s2322_s8 }
  0x66   : > { %v2420_v28 = vcombine.high %v577_v20, %v593_v25  ;;  %v545_v30 = vld [vmem:[%s2990_s4 + $0x200] sm:$0xff]  ;;  %2483 = vmatprep.subr.msk.bf16.mxu0 %vm1355_vm0, %v2452_v21  ;;  %v1357_v33 = vsel %vm1355_vm0, %v2451_v23, 0  ;;  %v562_v35 = vld [vmem:[%s2990_s4 + $0x288] sm:$0xff]  ;;  %1500 = vmatpush1.bf16.msra.mxu1 %v1363_v34  ;;  %v2419_v36 = vcombine.low %v577_v20, %v593_v25  ;;  %v580_v2 = vld [vmem:[%s2990_s4 + $0x318] sm:$0xff]  ;;  %v1369_v5 = vsel %vm1355_vm0, %v2455_v62, 0 }
  0x67   : > { %v561_v31 = vld [vmem:[%s2990_s4 + $0x280] sm:$0xff]  ;;  %1459 = vmatpush1.bf16.msra.mxu0 %v1357_v33  ;;  %1501 = vmatprep.subr.bf16.mxu1 %v2422_v29  ;;  %v2390_v39 = vcombine.high %v546_v32, %v562_v35  ;;  %v514_v42 = vld [vmem:[%s2990_s4 + $0x108] sm:$0xff]  ;;  %v2389_v45 = vcombine.low %v546_v32, %v562_v35  ;;  %v596_v3 = vld [vmem:[%s2990_s4 + $0x398] sm:$0xff]  ;;  %v1375_v6 = vsel %vm1355_vm0, %v2457_v63, 0  ;;  %v2424_v7 = vcombine.high %v579_v0, %v595_v1 }
  0x68   : > { %1460 = vmatprep.subr.bf16.mxu0 %v2420_v28  ;;  %v2388_v38 = vcombine.high %v545_v30, %v561_v31  ;;  %v513_v40 = vld [vmem:[%s2990_s4 + $0x100] sm:$0xff]  ;;  %v530_v43 = vld [vmem:[%s2990_s4 + $0x188] sm:$0xff]  ;;  %v2387_v44 = vcombine.low %v545_v30, %v561_v31  ;;  %v2426_v8 = vcombine.high %v580_v2, %v596_v3  ;;  %v547_v9 = vld [vmem:[%s2990_s4 + $0x210] sm:$0xff]  ;;  %v2423_v13 = vcombine.low %v579_v0, %v595_v1 }
  0x69   : > { %v529_v41 = vld [vmem:[%s2990_s4 + $0x180] sm:$0xff]  ;;  %v2358_v47 = vcombine.high %v514_v42, %v530_v43  ;;  %v482_v50 = vld [vmem:[%s2990_s4 + $0x8] sm:$0xff]  ;;  %v2357_v53 = vcombine.low %v514_v42, %v530_v43  ;;  %v563_v10 = vld [vmem:[%s2990_s4 + $0x290] sm:$0xff]  ;;  %v2425_v14 = vcombine.low %v580_v2, %v596_v3 }
  0x6a   : > { %1502 = vmatpush1.bf16.msra.mxu1 %v2421_v37  ;;  %v2356_v46 = vcombine.high %v513_v40, %v529_v41  ;;  %v481_v48 = vld [vmem:[%s2990_s4] sm:$0xff]  ;;  %v498_v51 = vld [vmem:[%s2990_s4 + $0x88] sm:$0xff]  ;;  %v2355_v52 = vcombine.low %v513_v40, %v529_v41  ;;  %v548_v11 = vld [vmem:[%s2990_s4 + $0x218] sm:$0xff]  ;;  %v2392_v15 = vcombine.high %v547_v9, %v563_v10  ;;  %v2391_v22 = vcombine.low %v547_v9, %v563_v10 }
  0x6b   : > { %1461 = vmatpush1.bf16.msra.mxu0 %v2419_v36  ;;  %1503 = vmatprep.subr.bf16.mxu1 %v2390_v39  ;;  %v497_v49 = vld [vmem:[%s2990_s4 + $0x80] sm:$0xff]  ;;  %v2326_v55 = vcombine.high %v482_v50, %v498_v51  ;;  %v2325_v59 = vcombine.low %v482_v50, %v498_v51  ;;  %v564_v12 = vld [vmem:[%s2990_s4 + $0x298] sm:$0xff]  ;;  %v515_v18 = vld [vmem:[%s2990_s4 + $0x110] sm:$0xff] }
  0x6c   : > { %1462 = vmatprep.subr.bf16.mxu0 %v2388_v38  ;;  %v2324_v54 = vcombine.high %v481_v48, %v497_v49  ;;  %v2323_v58 = vcombine.low %v481_v48, %v497_v49  ;;  %v3023_v4 = vld [vmem:[%s3286_s0] sm:$0xf]  ;;  %v2394_v17 = vcombine.high %v548_v11, %v564_v12  ;;  %v531_v19 = vld [vmem:[%s2990_s4 + $0x190] sm:$0xff]  ;;  %v516_v20 = vld [vmem:[%s2990_s4 + $0x118] sm:$0xff]  ;;  %v2393_v23 = vcombine.low %v548_v11, %v564_v12 }
  0x6d   : > { %v532_v21 = vld [vmem:[%s2990_s4 + $0x198] sm:$0xff]  ;;  %v2360_v24 = vcombine.high %v515_v18, %v531_v19  ;;  %v483_v26 = vld [vmem:[%s2990_s4 + $0x10] sm:$0xff]  ;;  %v2359_v30 = vcombine.low %v515_v18, %v531_v19  ;;  %v613_v34 = vld [vmem:[%s2990_s4 + $0x420] sm:$0xff] }
  0x6e   : > { %1504 = vmatpush1.bf16.msra.mxu1 %v2389_v45  ;;  %v2362_v25 = vcombine.high %v516_v20, %v532_v21  ;;  %v499_v27 = vld [vmem:[%s2990_s4 + $0x90] sm:$0xff]  ;;  %v484_v28 = vld [vmem:[%s2990_s4 + $0x18] sm:$0xff]  ;;  %v2361_v31 = vcombine.low %v516_v20, %v532_v21  ;;  %v614_v35 = vld [vmem:[%s2990_s4 + $0x428] sm:$0xff]  ;;  %v2460_v38 = vcombine.high %v613_v34, %v613_v34  ;;  %v2459_v40 = vcombine.low %v613_v34, %v613_v34 }
  0x6f   : > { %1463 = vmatpush1.bf16.msra.mxu0 %v2387_v44  ;;  %1505 = vmatprep.subr.bf16.mxu1 %v2358_v47  ;;  %v500_v29 = vld [vmem:[%s2990_s4 + $0x98] sm:$0xff]  ;;  %v2328_v32 = vcombine.high %v483_v26, %v499_v27  ;;  %v2327_v36 = vcombine.low %v483_v26, %v499_v27  ;;  %v2462_v39 = vcombine.high %v614_v35, %v614_v35  ;;  %v581_v42 = vld [vmem:[%s2990_s4 + $0x320] sm:$0xff]  ;;  %v582_v44 = vld [vmem:[%s2990_s4 + $0x328] sm:$0xff] }
  0x70   : > { %1464 = vmatprep.subr.bf16.mxu0 %v2356_v46  ;;  %v2330_v33 = vcombine.high %v484_v28, %v500_v29  ;;  %v2329_v37 = vcombine.low %v484_v28, %v500_v29  ;;  %v2461_v41 = vcombine.low %v614_v35, %v614_v35  ;;  %v597_v43 = vld [vmem:[%s2990_s4 + $0x3a0] sm:$0xff]  ;;  %v598_v45 = vld [vmem:[%s2990_s4 + $0x3a8] sm:$0xff]  ;;  %v1381_v46 = vsel %vm1355_vm0, %v2459_v40, 0  ;;  %v615_v11 = vld [vmem:[%s2990_s4 + $0x430] sm:$0xff] }
  0x71   : > { %v2428_v48 = vcombine.high %v581_v42, %v597_v43  ;;  %v2430_v49 = vcombine.high %v582_v44, %v598_v45  ;;  %v549_v50 = vld [vmem:[%s2990_s4 + $0x220] sm:$0xff]  ;;  %v616_v12 = vld [vmem:[%s2990_s4 + $0x438] sm:$0xff]  ;;  %v2463_v18 = vcombine.low %v615_v11, %v615_v11  ;;  %v583_v20 = vld [vmem:[%s2990_s4 + $0x330] sm:$0xff] }
  0x72   : > { %1506 = vmatpush1.bf16.msra.mxu1 %v2357_v53  ;;  %v1387_v47 = vsel %vm1355_vm0, %v2461_v41, 0  ;;  %v565_v51 = vld [vmem:[%s2990_s4 + $0x2a0] sm:$0xff]  ;;  %v566_v53 = vld [vmem:[%s2990_s4 + $0x2a8] sm:$0xff]  ;;  %v2465_v19 = vcombine.low %v616_v12, %v616_v12  ;;  %v599_v21 = vld [vmem:[%s2990_s4 + $0x3b0] sm:$0xff] }
  0x73   : > { %1465 = vmatpush1.bf16.msra.mxu0 %v2355_v52  ;;  %1507 = vmatprep.subr.bf16.mxu1 %v2326_v55  ;;  %v550_v52 = vld [vmem:[%s2990_s4 + $0x228] sm:$0xff]  ;;  %v2429_v55 = vcombine.low %v582_v44, %v598_v45  ;;  %v2396_v56 = vcombine.high %v549_v50, %v565_v51  ;;  %v2395_v62 = vcombine.low %v549_v50, %v565_v51  ;;  %v485_v2 = vld [vmem:[%s2990_s4 + $0x20] sm:$0xff]  ;;  %v551_v28 = vld [vmem:[%s2990_s4 + $0x230] sm:$0xff] }
  0x74   : > { %1466 = vmatprep.subr.bf16.mxu0 %v2324_v54  ;;  %v2427_v54 = vcombine.low %v581_v42, %v597_v43  ;;  %v2398_v57 = vcombine.high %v550_v52, %v566_v53  ;;  %v2397_v63 = vcombine.low %v550_v52, %v566_v53  ;;  %v501_v3 = vld [vmem:[%s2990_s4 + $0xa0] sm:$0xff]  ;;  %v2432_v26 = vcombine.high %v583_v20, %v599_v21  ;;  %v567_v29 = vld [vmem:[%s2990_s4 + $0x2b0] sm:$0xff]  ;;  %v618_v53 = vld [vmem:[%s2990_s4 + $0x448] sm:$0xff] }
  0x75   : > { %v2332_v9 = vcombine.high %v485_v2, %v501_v3  ;;  %v2400_v34 = vcombine.high %v551_v28, %v567_v29  ;;  %v2399_v40 = vcombine.low %v551_v28, %v567_v29  ;;  %v487_v44 = vld [vmem:[%s2990_s4 + $0x30] sm:$0xff]  ;;  %v617_v52 = vld [vmem:[%s2990_s4 + $0x440] sm:$0xff] }
  0x76   : > { %1508 = vmatpush1.bf16.msra.mxu1 %v2325_v59  ;;  %v533_v59 = vld [vmem:[%s2990_s4 + $0x1a0] sm:$0xff]  ;;  %v503_v45 = vld [vmem:[%s2990_s4 + $0xb0] sm:$0xff] }
  0x77   : > { %1467 = vmatpush1.bf16.msra.mxu0 %v2323_v58  ;;  %2489 = vmatprep.subr.msk.bf16.mxu1 %vm1355_vm0, %v2458_v61  ;;  %v517_v58 = vld [vmem:[%s2990_s4 + $0x120] sm:$0xff]  ;;  %v534_v61 = vld [vmem:[%s2990_s4 + $0x1a8] sm:$0xff]  ;;  %v2336_v50 = vcombine.high %v487_v44, %v503_v45 }
  0x78   : > { %2487 = vmatprep.subr.msk.bf16.mxu0 %vm1355_vm0, %v2456_v60  ;;  %v518_v60 = vld [vmem:[%s2990_s4 + $0x128] sm:$0xff]  ;;  %v2364_v0 = vcombine.high %v517_v58, %v533_v59 }
  0x79   : > { %2486 = vmatmul.mubr.msk.bf16.vlgmr.msra.gmra.mxu1 %vm1351_vm1, %v3023_v4  ;;  %v2366_v1 = vcombine.high %v518_v60, %v534_v61 }
  0x7a   : > { %2484 = vmatmul.mubr.msk.bf16.vlgmr.msra.gmra.mxu0 %vm1351_vm1, %v3023_v4  ;;  %1582 = vmatpush1.bf16.msra.mxu1 %v1375_v6  ;;  %v502_v6 = vld [vmem:[%s2990_s4 + $0xa8] sm:$0xff] }
  0x7b   : > { %1541 = vmatpush1.bf16.msra.mxu0 %v1369_v5  ;;  %1583 = vmatprep.subr.bf16.mxu1 %v2426_v8  ;;  %v486_v5 = vld [vmem:[%s2990_s4 + $0x28] sm:$0xff]  ;;  %v2365_v8 = vcombine.low %v518_v60, %v534_v61  ;;  %v585_v60 = vld [vmem:[%s2990_s4 + $0x340] sm:$0xff] }
  0x7c   : > { %1542 = vmatprep.subr.bf16.mxu0 %v2424_v7  ;;  %1566 = vmatprep.mubr.bf16.mxu0 %v2634_v16  ;;  %v2363_v7 = vcombine.low %v517_v58, %v533_v59  ;;  %v2334_v10 = vcombine.high %v486_v5, %v502_v6  ;;  %v2467_v58 = vcombine.low %v617_v52, %v617_v52  ;;  %v601_v61 = vld [vmem:[%s2990_s4 + $0x3c0] sm:$0xff] }
  0x7d   : > { %1607 = vmatprep.mubr.bf16.mxu1 %v2634_v16  ;;  %v2469_v59 = vcombine.low %v618_v53, %v618_v53 }
  0x7e   : > { %1584 = vmatpush1.bf16.msra.mxu1 %v2425_v14  ;;  %v2333_v14 = vcombine.low %v486_v5, %v502_v6  ;;  %v553_v5 = vld [vmem:[%s2990_s4 + $0x240] sm:$0xff] }
  0x7f   : > { %1543 = vmatpush1.bf16.msra.mxu0 %v2423_v13  ;;  %1585 = vmatprep.subr.bf16.mxu1 %v2394_v17  ;;  %v2331_v13 = vcombine.low %v485_v2, %v501_v3  ;;  %v2466_v17 = vcombine.high %v616_v12, %v616_v12  ;;  %v2436_v2 = vcombine.high %v585_v60, %v601_v61  ;;  %v569_v6 = vld [vmem:[%s2990_s4 + $0x2c0] sm:$0xff] }
  0x80   : > { %1544 = vmatprep.subr.bf16.mxu0 %v2392_v15  ;;  %v2464_v15 = vcombine.high %v615_v11, %v615_v11  ;;  %v2404_v11 = vcombine.high %v553_v5, %v569_v6 }
  0x82   : > { %1586 = vmatpush1.bf16.msra.mxu1 %v2393_v23  ;;  %v600_v23 = vld [vmem:[%s2990_s4 + $0x3b8] sm:$0xff] }
  0x83   : > { %1545 = vmatpush1.bf16.msra.mxu0 %v2391_v22  ;;  %1587 = vmatprep.subr.bf16.mxu1 %v2362_v25  ;;  %v584_v22 = vld [vmem:[%s2990_s4 + $0x338] sm:$0xff]  ;;  %v1399_v25 = vsel %vm1355_vm0, %v2465_v19, 0 }
  0x84   : > { %1546 = vmatprep.subr.bf16.mxu0 %v2360_v24  ;;  %v1393_v24 = vsel %vm1355_vm0, %v2463_v18, 0  ;;  %v2434_v27 = vcombine.high %v584_v22, %v600_v23  ;;  %v2403_v18 = vcombine.low %v553_v5, %v569_v6 }
  0x86   : > { %1588 = vmatpush1.bf16.msra.mxu1 %v2361_v31  ;;  %v568_v31 = vld [vmem:[%s2990_s4 + $0x2b8] sm:$0xff] }
  0x87   : > { %1547 = vmatpush1.bf16.msra.mxu0 %v2359_v30  ;;  %1589 = vmatprep.subr.bf16.mxu1 %v2330_v33  ;;  %v552_v30 = vld [vmem:[%s2990_s4 + $0x238] sm:$0xff]  ;;  %v2433_v33 = vcombine.low %v584_v22, %v600_v23  ;;  %v489_v22 = vld [vmem:[%s2990_s4 + $0x40] sm:$0xff] }
  0x88   : > { %1548 = vmatprep.subr.bf16.mxu0 %v2328_v32  ;;  %v2431_v32 = vcombine.low %v583_v20, %v599_v21  ;;  %v2402_v35 = vcombine.high %v552_v30, %v568_v31  ;;  %v2401_v41 = vcombine.low %v552_v30, %v568_v31  ;;  %v505_v23 = vld [vmem:[%s2990_s4 + $0xc0] sm:$0xff]  ;;  %v619_v30 = vld [vmem:[%s2990_s4 + $0x450] sm:$0xff]  ;;  %v620_v31 = vld [vmem:[%s2990_s4 + $0x458] sm:$0xff] }
  0x89   : > { %v2340_v28 = vcombine.high %v489_v22, %v505_v23 }
  0x8a   : > { %1590 = vmatpush1.bf16.msra.mxu1 %v2329_v37  ;;  %v535_v37 = vld [vmem:[%s2990_s4 + $0x1b0] sm:$0xff] }
  0x8b   : > { %1549 = vmatpush1.bf16.msra.mxu0 %v2327_v36  ;;  %2493 = vmatprep.subr.msk.bf16.mxu1 %vm1355_vm0, %v2462_v39  ;;  %v519_v36 = vld [vmem:[%s2990_s4 + $0x130] sm:$0xff]  ;;  %v536_v39 = vld [vmem:[%s2990_s4 + $0x1b8] sm:$0xff] }
  0x8c   : > { %2491 = vmatprep.subr.msk.bf16.mxu0 %vm1355_vm0, %v2460_v38  ;;  %v520_v38 = vld [vmem:[%s2990_s4 + $0x138] sm:$0xff]  ;;  %v2368_v42 = vcombine.high %v519_v36, %v535_v37 }
  0x8d   : > { %2490 = vmatmul.mubr.msk.bf16.vlgmr.msra.gmra.mxu1 %vm1351_vm1, %v3023_v4  ;;  %v2370_v43 = vcombine.high %v520_v38, %v536_v39 }
  0x8e   : > { %2488 = vmatmul.mubr.msk.bf16.vlgmr.msra.gmra.mxu0 %vm1351_vm1, %v3023_v4  ;;  %1664 = vmatpush1.bf16.msra.mxu1 %v1387_v47  ;;  %v504_v47 = vld [vmem:[%s2990_s4 + $0xb8] sm:$0xff] }
  0x8f   : > { %1623 = vmatpush1.bf16.msra.mxu0 %v1381_v46  ;;  %1665 = vmatprep.subr.bf16.mxu1 %v2430_v49  ;;  %v488_v46 = vld [vmem:[%s2990_s4 + $0x38] sm:$0xff]  ;;  %v2369_v49 = vcombine.low %v520_v38, %v536_v39  ;;  %v587_v38 = vld [vmem:[%s2990_s4 + $0x350] sm:$0xff] }
  0x90   : > { %1624 = vmatprep.subr.bf16.mxu0 %v2428_v48  ;;  %1648 = vmatprep.mubr.bf16.mxu0 %v2634_v16  ;;  %v2367_v48 = vcombine.low %v519_v36, %v535_v37  ;;  %v2338_v51 = vcombine.high %v488_v46, %v504_v47  ;;  %v2471_v36 = vcombine.low %v619_v30, %v619_v30  ;;  %v603_v39 = vld [vmem:[%s2990_s4 + $0x3d0] sm:$0xff] }
  0x91   : > { %1689 = vmatprep.mubr.bf16.mxu1 %v2634_v16  ;;  %v2473_v37 = vcombine.low %v620_v31, %v620_v31 }
  0x92   : > { %1666 = vmatpush1.bf16.msra.mxu1 %v2429_v55  ;;  %v2337_v55 = vcombine.low %v488_v46, %v504_v47  ;;  %v555_v46 = vld [vmem:[%s2990_s4 + $0x250] sm:$0xff] }
  0x93   : > { %1625 = vmatpush1.bf16.msra.mxu0 %v2427_v54  ;;  %1667 = vmatprep.subr.bf16.mxu1 %v2398_v57  ;;  %v2335_v54 = vcombine.low %v487_v44, %v503_v45  ;;  %v2470_v57 = vcombine.high %v618_v53, %v618_v53  ;;  %v2440_v44 = vcombine.high %v587_v38, %v603_v39  ;;  %v571_v47 = vld [vmem:[%s2990_s4 + $0x2d0] sm:$0xff] }
  0x94   : > { %1626 = vmatprep.subr.bf16.mxu0 %v2396_v56  ;;  %v2468_v56 = vcombine.high %v617_v52, %v617_v52  ;;  %v2408_v52 = vcombine.high %v555_v46, %v571_v47 }
  0x96   : > { %1668 = vmatpush1.bf16.msra.mxu1 %v2397_v63  ;;  %v602_v63 = vld [vmem:[%s2990_s4 + $0x3c8] sm:$0xff] }
  0x97   : > { %1627 = vmatpush1.bf16.msra.mxu0 %v2395_v62  ;;  %1669 = vmatprep.subr.bf16.mxu1 %v2366_v1  ;;  %v586_v62 = vld [vmem:[%s2990_s4 + $0x348] sm:$0xff]  ;;  %v1411_v1 = vsel %vm1355_vm0, %v2469_v59, 0 }
  0x98   : > { %1628 = vmatprep.subr.bf16.mxu0 %v2364_v0  ;;  %v1405_v0 = vsel %vm1355_vm0, %v2467_v58, 0  ;;  %v2438_v3 = vcombine.high %v586_v62, %v602_v63  ;;  %v2407_v58 = vcombine.low %v555_v46, %v571_v47 }
  0x9a   : > { %1670 = vmatpush1.bf16.msra.mxu1 %v2365_v8  ;;  %v570_v8 = vld [vmem:[%s2990_s4 + $0x2c8] sm:$0xff] }
  0x9b   : > { %1629 = vmatpush1.bf16.msra.mxu0 %v2363_v7  ;;  %1671 = vmatprep.subr.bf16.mxu1 %v2334_v10  ;;  %v554_v7 = vld [vmem:[%s2990_s4 + $0x248] sm:$0xff]  ;;  %v2437_v10 = vcombine.low %v586_v62, %v602_v63  ;;  %v491_v62 = vld [vmem:[%s2990_s4 + $0x50] sm:$0xff] }
  0x9c   : > { %1630 = vmatprep.subr.bf16.mxu0 %v2332_v9  ;;  %v2435_v9 = vcombine.low %v585_v60, %v601_v61  ;;  %v2406_v12 = vcombine.high %v554_v7, %v570_v8  ;;  %v2405_v19 = vcombine.low %v554_v7, %v570_v8  ;;  %v507_v63 = vld [vmem:[%s2990_s4 + $0xd0] sm:$0xff]  ;;  %v621_v7 = vld [vmem:[%s2990_s4 + $0x460] sm:$0xff]  ;;  %v622_v8 = vld [vmem:[%s2990_s4 + $0x468] sm:$0xff] }
  0x9d   : > { %v2344_v5 = vcombine.high %v491_v62, %v507_v63 }
  0x9e   : > { %1672 = vmatpush1.bf16.msra.mxu1 %v2333_v14  ;;  %v537_v14 = vld [vmem:[%s2990_s4 + $0x1c0] sm:$0xff] }
  0x9f   : > { %1631 = vmatpush1.bf16.msra.mxu0 %v2331_v13  ;;  %2497 = vmatprep.subr.msk.bf16.mxu1 %vm1355_vm0, %v2466_v17  ;;  %v521_v13 = vld [vmem:[%s2990_s4 + $0x140] sm:$0xff]  ;;  %v538_v17 = vld [vmem:[%s2990_s4 + $0x1c8] sm:$0xff] }
  0xa0   : > { %2495 = vmatprep.subr.msk.bf16.mxu0 %vm1355_vm0, %v2464_v15  ;;  %v522_v15 = vld [vmem:[%s2990_s4 + $0x148] sm:$0xff]  ;;  %v2372_v20 = vcombine.high %v521_v13, %v537_v14 }
  0xa1   : > { %2494 = vmatmul.mubr.msk.bf16.vlgmr.msra.gmra.mxu1 %vm1351_vm1, %v3023_v4  ;;  %v2374_v21 = vcombine.high %v522_v15, %v538_v17 }
  0xa2   : > { %2492 = vmatmul.mubr.msk.bf16.vlgmr.msra.gmra.mxu0 %vm1351_vm1, %v3023_v4  ;;  %1746 = vmatpush1.bf16.msra.mxu1 %v1399_v25  ;;  %v506_v25 = vld [vmem:[%s2990_s4 + $0xc8] sm:$0xff] }
  0xa3   : > { %1705 = vmatpush1.bf16.msra.mxu0 %v1393_v24  ;;  %1747 = vmatprep.subr.bf16.mxu1 %v2434_v27  ;;  %v490_v24 = vld [vmem:[%s2990_s4 + $0x48] sm:$0xff]  ;;  %v2373_v27 = vcombine.low %v522_v15, %v538_v17  ;;  %v589_v15 = vld [vmem:[%s2990_s4 + $0x360] sm:$0xff] }
  0xa4   : > { %1706 = vmatprep.subr.bf16.mxu0 %v2432_v26  ;;  %1730 = vmatprep.mubr.bf16.mxu0 %v2634_v16  ;;  %v2371_v26 = vcombine.low %v521_v13, %v537_v14  ;;  %v2342_v29 = vcombine.high %v490_v24, %v506_v25  ;;  %v2475_v13 = vcombine.low %v621_v7, %v621_v7  ;;  %v605_v17 = vld [vmem:[%s2990_s4 + $0x3e0] sm:$0xff] }
  0xa5   : > { %1771 = vmatprep.mubr.bf16.mxu1 %v2634_v16  ;;  %v2477_v14 = vcombine.low %v622_v8, %v622_v8 }
  0xa6   : > { %1748 = vmatpush1.bf16.msra.mxu1 %v2433_v33  ;;  %v2341_v33 = vcombine.low %v490_v24, %v506_v25  ;;  %v557_v24 = vld [vmem:[%s2990_s4 + $0x260] sm:$0xff] }
  0xa7   : > { %1707 = vmatpush1.bf16.msra.mxu0 %v2431_v32  ;;  %1749 = vmatprep.subr.bf16.mxu1 %v2402_v35  ;;  %v2339_v32 = vcombine.low %v489_v22, %v505_v23  ;;  %v2474_v35 = vcombine.high %v620_v31, %v620_v31  ;;  %v2444_v22 = vcombine.high %v589_v15, %v605_v17  ;;  %v573_v25 = vld [vmem:[%s2990_s4 + $0x2e0] sm:$0xff] }
  0xa8   : > { %1708 = vmatprep.subr.bf16.mxu0 %v2400_v34  ;;  %v2472_v34 = vcombine.high %v619_v30, %v619_v30  ;;  %v2412_v30 = vcombine.high %v557_v24, %v573_v25 }
  0xaa   : > { %1750 = vmatpush1.bf16.msra.mxu1 %v2401_v41  ;;  %v604_v41 = vld [vmem:[%s2990_s4 + $0x3d8] sm:$0xff] }
  0xab   : > { %1709 = vmatpush1.bf16.msra.mxu0 %v2399_v40  ;;  %1751 = vmatprep.subr.bf16.mxu1 %v2370_v43  ;;  %v588_v40 = vld [vmem:[%s2990_s4 + $0x358] sm:$0xff]  ;;  %v1423_v43 = vsel %vm1355_vm0, %v2473_v37, 0 }
  0xac   : > { %1710 = vmatprep.subr.bf16.mxu0 %v2368_v42  ;;  %v1417_v42 = vsel %vm1355_vm0, %v2471_v36, 0  ;;  %v2442_v45 = vcombine.high %v588_v40, %v604_v41  ;;  %v2411_v36 = vcombine.low %v557_v24, %v573_v25 }
  0xae   : > { %1752 = vmatpush1.bf16.msra.mxu1 %v2369_v49  ;;  %v572_v49 = vld [vmem:[%s2990_s4 + $0x2d8] sm:$0xff] }
  0xaf   : > { %1711 = vmatpush1.bf16.msra.mxu0 %v2367_v48  ;;  %1753 = vmatprep.subr.bf16.mxu1 %v2338_v51  ;;  %v556_v48 = vld [vmem:[%s2990_s4 + $0x258] sm:$0xff]  ;;  %v2441_v51 = vcombine.low %v588_v40, %v604_v41  ;;  %v493_v40 = vld [vmem:[%s2990_s4 + $0x60] sm:$0xff] }
  0xb0   : > { %1712 = vmatprep.subr.bf16.mxu0 %v2336_v50  ;;  %v2439_v50 = vcombine.low %v587_v38, %v603_v39  ;;  %v2410_v53 = vcombine.high %v556_v48, %v572_v49  ;;  %v2409_v59 = vcombine.low %v556_v48, %v572_v49  ;;  %v509_v41 = vld [vmem:[%s2990_s4 + $0xe0] sm:$0xff]  ;;  %v623_v48 = vld [vmem:[%s2990_s4 + $0x470] sm:$0xff]  ;;  %v624_v49 = vld [vmem:[%s2990_s4 + $0x478] sm:$0xff] }
  0xb1   : > { %v2348_v46 = vcombine.high %v493_v40, %v509_v41 }
  0xb2   : > { %1754 = vmatpush1.bf16.msra.mxu1 %v2337_v55  ;;  %v539_v55 = vld [vmem:[%s2990_s4 + $0x1d0] sm:$0xff] }
  0xb3   : > { %1713 = vmatpush1.bf16.msra.mxu0 %v2335_v54  ;;  %2501 = vmatprep.subr.msk.bf16.mxu1 %vm1355_vm0, %v2470_v57  ;;  %v523_v54 = vld [vmem:[%s2990_s4 + $0x150] sm:$0xff]  ;;  %v540_v57 = vld [vmem:[%s2990_s4 + $0x1d8] sm:$0xff] }
  0xb4   : > { %2499 = vmatprep.subr.msk.bf16.mxu0 %vm1355_vm0, %v2468_v56  ;;  %v524_v56 = vld [vmem:[%s2990_s4 + $0x158] sm:$0xff]  ;;  %v2376_v60 = vcombine.high %v523_v54, %v539_v55 }
  0xb5   : > { %2498 = vmatmul.mubr.msk.bf16.vlgmr.msra.gmra.mxu1 %vm1351_vm1, %v3023_v4  ;;  %v2378_v61 = vcombine.high %v524_v56, %v540_v57 }
  0xb6   : > { %2496 = vmatmul.mubr.msk.bf16.vlgmr.msra.gmra.mxu0 %vm1351_vm1, %v3023_v4  ;;  %1828 = vmatpush1.bf16.msra.mxu1 %v1411_v1  ;;  %v508_v1 = vld [vmem:[%s2990_s4 + $0xd8] sm:$0xff] }
  0xb7   : > { %1787 = vmatpush1.bf16.msra.mxu0 %v1405_v0  ;;  %1829 = vmatprep.subr.bf16.mxu1 %v2438_v3  ;;  %v492_v0 = vld [vmem:[%s2990_s4 + $0x58] sm:$0xff]  ;;  %v2377_v3 = vcombine.low %v524_v56, %v540_v57  ;;  %v591_v56 = vld [vmem:[%s2990_s4 + $0x370] sm:$0xff] }
  0xb8   : > { %1788 = vmatprep.subr.bf16.mxu0 %v2436_v2  ;;  %1812 = vmatprep.mubr.bf16.mxu0 %v2634_v16  ;;  %v2375_v2 = vcombine.low %v523_v54, %v539_v55  ;;  %v2346_v6 = vcombine.high %v492_v0, %v508_v1  ;;  %v2479_v54 = vcombine.low %v623_v48, %v623_v48  ;;  %v607_v57 = vld [vmem:[%s2990_s4 + $0x3f0] sm:$0xff] }
  0xb9   : > { %1853 = vmatprep.mubr.bf16.mxu1 %v2634_v16  ;;  %v2481_v55 = vcombine.low %v624_v49, %v624_v49 }
  0xba   : > { %1830 = vmatpush1.bf16.msra.mxu1 %v2437_v10  ;;  %v2345_v10 = vcombine.low %v492_v0, %v508_v1  ;;  %v559_v0 = vld [vmem:[%s2990_s4 + $0x270] sm:$0xff] }
  0xbb   : > { %1789 = vmatpush1.bf16.msra.mxu0 %v2435_v9  ;;  %1831 = vmatprep.subr.bf16.mxu1 %v2406_v12  ;;  %v2343_v9 = vcombine.low %v491_v62, %v507_v63  ;;  %v2478_v12 = vcombine.high %v622_v8, %v622_v8  ;;  %v2448_v62 = vcombine.high %v591_v56, %v607_v57  ;;  %v575_v1 = vld [vmem:[%s2990_s4 + $0x2f0] sm:$0xff] }
  0xbc   : > { %1790 = vmatprep.subr.bf16.mxu0 %v2404_v11  ;;  %v2476_v11 = vcombine.high %v621_v7, %v621_v7  ;;  %v2416_v7 = vcombine.high %v559_v0, %v575_v1 }
  0xbe   : > { %1832 = vmatpush1.bf16.msra.mxu1 %v2405_v19  ;;  %v606_v19 = vld [vmem:[%s2990_s4 + $0x3e8] sm:$0xff] }
  0xbf   : > { %1791 = vmatpush1.bf16.msra.mxu0 %v2403_v18  ;;  %1833 = vmatprep.subr.bf16.mxu1 %v2374_v21  ;;  %v590_v18 = vld [vmem:[%s2990_s4 + $0x368] sm:$0xff]  ;;  %v1435_v21 = vsel %vm1355_vm0, %v2477_v14, 0 }
  0xc0   : > { %1792 = vmatprep.subr.bf16.mxu0 %v2372_v20  ;;  %v1429_v20 = vsel %vm1355_vm0, %v2475_v13, 0  ;;  %v2446_v23 = vcombine.high %v590_v18, %v606_v19  ;;  %v2415_v13 = vcombine.low %v559_v0, %v575_v1 }
  0xc2   : > { %1834 = vmatpush1.bf16.msra.mxu1 %v2373_v27  ;;  %v574_v27 = vld [vmem:[%s2990_s4 + $0x2e8] sm:$0xff] }
  0xc3   : > { %1793 = vmatpush1.bf16.msra.mxu0 %v2371_v26  ;;  %1835 = vmatprep.subr.bf16.mxu1 %v2342_v29  ;;  %v558_v26 = vld [vmem:[%s2990_s4 + $0x268] sm:$0xff]  ;;  %v2445_v29 = vcombine.low %v590_v18, %v606_v19  ;;  %v495_v18 = vld [vmem:[%s2990_s4 + $0x70] sm:$0xff] }
  0xc4   : > { %1794 = vmatprep.subr.bf16.mxu0 %v2340_v28  ;;  %v2443_v28 = vcombine.low %v589_v15, %v605_v17  ;;  %v2414_v31 = vcombine.high %v558_v26, %v574_v27  ;;  %v2413_v37 = vcombine.low %v558_v26, %v574_v27  ;;  %v511_v19 = vld [vmem:[%s2990_s4 + $0xf0] sm:$0xff] }
  0xc5   : > { %v2351_v25 = vcombine.low %v495_v18, %v511_v19 }
  0xc6   : > { %1836 = vmatpush1.bf16.msra.mxu1 %v2341_v33  ;;  %v541_v33 = vld [vmem:[%s2990_s4 + $0x1e0] sm:$0xff] }
  0xc7   : > { %1795 = vmatpush1.bf16.msra.mxu0 %v2339_v32  ;;  %2505 = vmatprep.subr.msk.bf16.mxu1 %vm1355_vm0, %v2474_v35  ;;  %v525_v32 = vld [vmem:[%s2990_s4 + $0x160] sm:$0xff]  ;;  %v542_v35 = vld [vmem:[%s2990_s4 + $0x1e8] sm:$0xff] }
  0xc8   : > { %2503 = vmatprep.subr.msk.bf16.mxu0 %vm1355_vm0, %v2472_v34  ;;  %v526_v34 = vld [vmem:[%s2990_s4 + $0x168] sm:$0xff]  ;;  %v2380_v38 = vcombine.high %v525_v32, %v541_v33 }
  0xc9   : > { %2502 = vmatmul.mubr.msk.bf16.vlgmr.msra.gmra.mxu1 %vm1351_vm1, %v3023_v4  ;;  %v2382_v39 = vcombine.high %v526_v34, %v542_v35 }
  0xca   : > { %2500 = vmatmul.mubr.msk.bf16.vlgmr.msra.gmra.mxu0 %vm1351_vm1, %v3023_v4  ;;  %1910 = vmatpush1.bf16.msra.mxu1 %v1423_v43  ;;  %v510_v43 = vld [vmem:[%s2990_s4 + $0xe8] sm:$0xff] }
  0xcb   : > { %1869 = vmatpush1.bf16.msra.mxu0 %v1417_v42  ;;  %1911 = vmatprep.subr.bf16.mxu1 %v2442_v45  ;;  %v494_v42 = vld [vmem:[%s2990_s4 + $0x68] sm:$0xff]  ;;  %v2381_v45 = vcombine.low %v526_v34, %v542_v35 }
  0xcc   : > { %1870 = vmatprep.subr.bf16.mxu0 %v2440_v44  ;;  %1894 = vmatprep.mubr.bf16.mxu0 %v2634_v16  ;;  %v2379_v44 = vcombine.low %v525_v32, %v541_v33  ;;  %v2350_v47 = vcombine.high %v494_v42, %v510_v43 }
  0xcd   : > { %1935 = vmatprep.mubr.bf16.mxu1 %v2634_v16 }
  0xce   : > { %1912 = vmatpush1.bf16.msra.mxu1 %v2441_v51  ;;  %v2349_v51 = vcombine.low %v494_v42, %v510_v43 }
  0xcf   : > { %1871 = vmatpush1.bf16.msra.mxu0 %v2439_v50  ;;  %1913 = vmatprep.subr.bf16.mxu1 %v2410_v53  ;;  %v2347_v50 = vcombine.low %v493_v40, %v509_v41  ;;  %v2482_v53 = vcombine.high %v624_v49, %v624_v49 }
  0xd0   : > { %1872 = vmatprep.subr.bf16.mxu0 %v2408_v52  ;;  %v2480_v52 = vcombine.high %v623_v48, %v623_v48 }
  0xd2   : > { %1914 = vmatpush1.bf16.msra.mxu1 %v2409_v59  ;;  %v608_v59 = vld [vmem:[%s2990_s4 + $0x3f8] sm:$0xff] }
  0xd3   : > { %1873 = vmatpush1.bf16.msra.mxu0 %v2407_v58  ;;  %1915 = vmatprep.subr.bf16.mxu1 %v2378_v61  ;;  %v592_v58 = vld [vmem:[%s2990_s4 + $0x378] sm:$0xff]  ;;  %v1447_v61 = vsel %vm1355_vm0, %v2481_v55, 0 }
  0xd4   : > { %1874 = vmatprep.subr.bf16.mxu0 %v2376_v60  ;;  %v1441_v60 = vsel %vm1355_vm0, %v2479_v54, 0  ;;  %v2450_v63 = vcombine.high %v592_v58, %v608_v59 }
  0xd6   : > { %1916 = vmatpush1.bf16.msra.mxu1 %v2377_v3  ;;  %v576_v3 = vld [vmem:[%s2990_s4 + $0x2f8] sm:$0xff] }
  0xd7   : > { %1875 = vmatpush1.bf16.msra.mxu0 %v2375_v2  ;;  %1917 = vmatprep.subr.bf16.mxu1 %v2346_v6  ;;  %v560_v2 = vld [vmem:[%s2990_s4 + $0x278] sm:$0xff]  ;;  %v2449_v6 = vcombine.low %v592_v58, %v608_v59 }
  0xd8   : > { %1876 = vmatprep.subr.bf16.mxu0 %v2344_v5  ;;  %v2447_v5 = vcombine.low %v591_v56, %v607_v57  ;;  %v2418_v8 = vcombine.high %v560_v2, %v576_v3  ;;  %v2417_v14 = vcombine.low %v560_v2, %v576_v3 }
  0xda   : > { %1918 = vmatpush1.bf16.msra.mxu1 %v2345_v10  ;;  %v543_v10 = vld [vmem:[%s2990_s4 + $0x1f0] sm:$0xff] }
  0xdb   : > { %1877 = vmatpush1.bf16.msra.mxu0 %v2343_v9  ;;  %2509 = vmatprep.subr.msk.bf16.mxu1 %vm1355_vm0, %v2478_v12  ;;  %v527_v9 = vld [vmem:[%s2990_s4 + $0x170] sm:$0xff]  ;;  %v544_v12 = vld [vmem:[%s2990_s4 + $0x1f8] sm:$0xff] }
  0xdc   : > { %2507 = vmatprep.subr.msk.bf16.mxu0 %vm1355_vm0, %v2476_v11  ;;  %v528_v11 = vld [vmem:[%s2990_s4 + $0x178] sm:$0xff]  ;;  %v2384_v15 = vcombine.high %v527_v9, %v543_v10 }
  0xdd   : > { %2506 = vmatmul.mubr.msk.bf16.vlgmr.msra.gmra.mxu1 %vm1351_vm1, %v3023_v4  ;;  %v2386_v17 = vcombine.high %v528_v11, %v544_v12 }
  0xde   : > { %2504 = vmatmul.mubr.msk.bf16.vlgmr.msra.gmra.mxu0 %vm1351_vm1, %v3023_v4  ;;  %1992 = vmatpush1.bf16.msra.mxu1 %v1435_v21  ;;  %v512_v21 = vld [vmem:[%s2990_s4 + $0xf8] sm:$0xff] }
  0xdf   : > { %1951 = vmatpush1.bf16.msra.mxu0 %v1429_v20  ;;  %1993 = vmatprep.subr.bf16.mxu1 %v2446_v23  ;;  %v496_v20 = vld [vmem:[%s2990_s4 + $0x78] sm:$0xff]  ;;  %v2385_v23 = vcombine.low %v528_v11, %v544_v12 }
  0xe0   : > { %1952 = vmatprep.subr.bf16.mxu0 %v2444_v22  ;;  %1976 = vmatprep.mubr.bf16.mxu0 %v2634_v16  ;;  %v2383_v22 = vcombine.low %v527_v9, %v543_v10  ;;  %v2354_v24 = vcombine.high %v496_v20, %v512_v21  ;;  %v2353_v26 = vcombine.low %v496_v20, %v512_v21  ;;  %v3221_v27 = vpop.permute.xlu0 %628 }
  0xe1   : > { %2017 = vmatprep.mubr.bf16.mxu1 %v2634_v16 }
  0xe2   : > { %1994 = vmatpush1.bf16.msra.mxu1 %v2445_v29 }
  0xe3   : > { %1953 = vmatpush1.bf16.msra.mxu0 %v2443_v28  ;;  %1995 = vmatprep.subr.bf16.mxu1 %v2414_v31 }
  0xe4   : > { %1954 = vmatprep.subr.bf16.mxu0 %v2412_v30 }
  0xe6   : > { %1996 = vmatpush1.bf16.msra.mxu1 %v2413_v37 }
  0xe7   : > { %1955 = vmatpush1.bf16.msra.mxu0 %v2411_v36  ;;  %1997 = vmatprep.subr.bf16.mxu1 %v2382_v39 }
  0xe8   : > { %1956 = vmatprep.subr.bf16.mxu0 %v2380_v38 }
  0xea   : > { %1998 = vmatpush1.bf16.msra.mxu1 %v2381_v45 }
  0xeb   : > { %1957 = vmatpush1.bf16.msra.mxu0 %v2379_v44  ;;  %1999 = vmatprep.subr.bf16.mxu1 %v2350_v47 }
  0xec   : > { %1958 = vmatprep.subr.bf16.mxu0 %v2348_v46 }
  0xee   : > { %2000 = vmatpush1.bf16.msra.mxu1 %v2349_v51 }
  0xef   : > { %1959 = vmatpush1.bf16.msra.mxu0 %v2347_v50  ;;  %2513 = vmatprep.subr.msk.bf16.mxu1 %vm1355_vm0, %v2482_v53 }
  0xf0   : > { %2511 = vmatprep.subr.msk.bf16.mxu0 %vm1355_vm0, %v2480_v52 }
  0xf1   : > { %2510 = vmatmul.mubr.msk.bf16.vlgmr.msra.gmra.mxu1 %vm1351_vm1, %v3023_v4 }
  0xf2   : > { %2508 = vmatmul.mubr.msk.bf16.vlgmr.msra.gmra.mxu0 %vm1351_vm1, %v3023_v4  ;;  %2074 = vmatpush1.bf16.msra.mxu1 %v1447_v61 }
  0xf3   : > { %2033 = vmatpush1.bf16.msra.mxu0 %v1441_v60  ;;  %2075 = vmatprep.subr.bf16.mxu1 %v2450_v63 }
  0xf4   : > { %2034 = vmatprep.subr.bf16.mxu0 %v2448_v62  ;;  %2058 = vmatprep.mubr.bf16.mxu0 %v2634_v16 }
  0xf5   : > { %2099 = vmatprep.mubr.bf16.mxu1 %v2634_v16  ;;  %v2352_v16 = vcombine.high %v495_v18, %v511_v19 }
  0xf6   : > { %2076 = vmatpush1.bf16.msra.mxu1 %v2449_v6 }
  0xf7   : > { %2035 = vmatpush1.bf16.msra.mxu0 %v2447_v5  ;;  %2077 = vmatprep.subr.bf16.mxu1 %v2418_v8 }
  0xf8   : > { %2036 = vmatprep.subr.bf16.mxu0 %v2416_v7 }
  0xfa   : > { %2078 = vmatpush1.bf16.msra.mxu1 %v2417_v14 }
  0xfb   : > { %2037 = vmatpush1.bf16.msra.mxu0 %v2415_v13  ;;  %2079 = vmatprep.subr.bf16.mxu1 %v2386_v17 }
  0xfc   : > { %2038 = vmatprep.subr.bf16.mxu0 %v2384_v15 }
  0xfe   : > { %2080 = vmatpush1.bf16.msra.mxu1 %v2385_v23 }
  0xff   : > { %2039 = vmatpush1.bf16.msra.mxu0 %v2383_v22  ;;  %2081 = vmatprep.subr.bf16.mxu1 %v2354_v24 }
 0x100   : > { %2040 = vmatprep.subr.bf16.mxu0 %v2352_v16 }
 0x102   : > { %2082 = vmatpush1.bf16.msra.mxu1 %v2353_v26 }
 0x103   : > { %2041 = vmatpush1.bf16.msra.mxu0 %v2351_v25 }
 0x105   : > { %2514 = vmatmul.mubr.msk.bf16.vlgmr.msra.gmra.mxu1 %vm1351_vm1, %v3023_v4 }
 0x106   : > { %2512 = vmatmul.mubr.msk.bf16.vlgmr.msra.gmra.mxu0 %vm1351_vm1, %v3023_v4 }
 0x139   : > { %v1527_v29 = vpop.f32.mrf.mxu1 }
 0x13a   : > { %v1486_v28 = vpop.f32.mrf.mxu0  ;;  %v1528_v31 = vadd.f32 %v1527_v29, %v3221_v27 }
 0x13b   : > { %v1487_v30 = vadd.f32 %v1486_v28, %v3221_v27  ;;  %v1529_v33 = vpop.f32.mrf.mxu1 }
 0x13c   : > { %v1488_v32 = vpop.f32.mrf.mxu0  ;;  %v1530_v35 = vadd.f32 %v1529_v33, %v3221_v27 }
 0x13d   : > { %v1489_v34 = vadd.f32 %v1488_v32, %v3221_v27  ;;  %v1531_v36 = vpop.f32.mrf.mxu1 }
 0x13e   : > { %v1490_v4 = vpop.f32.mrf.mxu0  ;;  %v2535_v38 = vpack.c.bf16 %v1530_v35, %v1528_v31 }
 0x13f   : > { %v2534_v37 = vpack.c.bf16 %v1489_v34, %v1487_v30  ;;  %v1532_v40 = vpop.f32.mrf.mxu1 }
 0x140   : > { %v1491_v39 = vpop.f32.mrf.mxu0  ;;  %2237 = vst [vmem:[%s3230_s11 + $0x8] sm:$0xff] %v2535_v38 }
 0x141   : > { %2236 = vst [vmem:[%s3230_s11] sm:$0xff] %v2534_v37 }
 0x14d   : > { %v1609_v42 = vpop.f32.mrf.mxu1 }
 0x14e   : > { %v1568_v41 = vpop.f32.mrf.mxu0  ;;  %v1610_v44 = vadd.f32 %v1609_v42, %v3221_v27 }
 0x14f   : > { %v1569_v43 = vadd.f32 %v1568_v41, %v3221_v27  ;;  %v1611_v46 = vpop.f32.mrf.mxu1 }
 0x150   : > { %v1570_v45 = vpop.f32.mrf.mxu0  ;;  %v1612_v48 = vadd.f32 %v1611_v46, %v3221_v27 }
 0x151   : > { %v1571_v47 = vadd.f32 %v1570_v45, %v3221_v27  ;;  %v1613_v50 = vpop.f32.mrf.mxu1 }
 0x152   : > { %v1572_v49 = vpop.f32.mrf.mxu0  ;;  %v2537_v52 = vpack.c.bf16 %v1612_v48, %v1610_v44 }
 0x153   : > { %v2536_v51 = vpack.c.bf16 %v1571_v47, %v1569_v43  ;;  %v1614_v54 = vpop.f32.mrf.mxu1 }
 0x154   : > { %v1573_v53 = vpop.f32.mrf.mxu0  ;;  %2239 = vst [vmem:[%s3230_s11 + $0x18] sm:$0xff] %v2537_v52 }
 0x155   : > { %2238 = vst [vmem:[%s3230_s11 + $0x10] sm:$0xff] %v2536_v51 }
 0x161   : > { %v1691_v56 = vpop.f32.mrf.mxu1 }
 0x162   : > { %v1650_v55 = vpop.f32.mrf.mxu0  ;;  %v1692_v58 = vadd.f32 %v1691_v56, %v3221_v27 }
 0x163   : > { %v1651_v57 = vadd.f32 %v1650_v55, %v3221_v27  ;;  %v1693_v60 = vpop.f32.mrf.mxu1 }
 0x164   : > { %v1652_v59 = vpop.f32.mrf.mxu0  ;;  %v1694_v62 = vadd.f32 %v1693_v60, %v3221_v27 }
 0x165   : > { %v1653_v61 = vadd.f32 %v1652_v59, %v3221_v27  ;;  %v1695_v0 = vpop.f32.mrf.mxu1 }
 0x166   : > { %v1654_v63 = vpop.f32.mrf.mxu0  ;;  %v2539_v2 = vpack.c.bf16 %v1694_v62, %v1692_v58 }
 0x167   : > { %v2538_v1 = vpack.c.bf16 %v1653_v61, %v1651_v57  ;;  %v1696_v5 = vpop.f32.mrf.mxu1 }
 0x168   : > { %v1655_v3 = vpop.f32.mrf.mxu0  ;;  %2241 = vst [vmem:[%s3230_s11 + $0x28] sm:$0xff] %v2539_v2 }
 0x169   : > { %2240 = vst [vmem:[%s3230_s11 + $0x20] sm:$0xff] %v2538_v1 }
 0x175   : > { %v1773_v7 = vpop.f32.mrf.mxu1 }
 0x176   : > { %v1732_v6 = vpop.f32.mrf.mxu0  ;;  %v1774_v9 = vadd.f32 %v1773_v7, %v3221_v27 }
 0x177   : > { %v1733_v8 = vadd.f32 %v1732_v6, %v3221_v27  ;;  %v1775_v11 = vpop.f32.mrf.mxu1 }
 0x178   : > { %v1734_v10 = vpop.f32.mrf.mxu0  ;;  %v1776_v13 = vadd.f32 %v1775_v11, %v3221_v27 }
 0x179   : > { %v1735_v12 = vadd.f32 %v1734_v10, %v3221_v27  ;;  %v1777_v15 = vpop.f32.mrf.mxu1 }
 0x17a   : > { %v1736_v14 = vpop.f32.mrf.mxu0  ;;  %v2541_v18 = vpack.c.bf16 %v1776_v13, %v1774_v9 }
 0x17b   : > { %v2540_v17 = vpack.c.bf16 %v1735_v12, %v1733_v8  ;;  %v1778_v20 = vpop.f32.mrf.mxu1 }
 0x17c   : > { %v1737_v19 = vpop.f32.mrf.mxu0  ;;  %2243 = vst [vmem:[%s3230_s11 + $0x38] sm:$0xff] %v2541_v18 }
 0x17d   : > { %2242 = vst [vmem:[%s3230_s11 + $0x30] sm:$0xff] %v2540_v17 }
 0x189   : > { %v1855_v22 = vpop.f32.mrf.mxu1 }
 0x18a   : > { %v1814_v21 = vpop.f32.mrf.mxu0  ;;  %v1856_v16 = vadd.f32 %v1855_v22, %v3221_v27 }
 0x18b   : > { %v1815_v23 = vadd.f32 %v1814_v21, %v3221_v27  ;;  %v1857_v25 = vpop.f32.mrf.mxu1 }
 0x18c   : > { %v1816_v24 = vpop.f32.mrf.mxu0  ;;  %v1858_v28 = vadd.f32 %v1857_v25, %v3221_v27 }
 0x18d   : > { %v1817_v26 = vadd.f32 %v1816_v24, %v3221_v27  ;;  %v1859_v30 = vpop.f32.mrf.mxu1 }
 0x18e   : > { %v1818_v29 = vpop.f32.mrf.mxu0  ;;  %v2543_v32 = vpack.c.bf16 %v1858_v28, %v1856_v16 }
 0x18f   : > { %v2542_v31 = vpack.c.bf16 %v1817_v26, %v1815_v23  ;;  %v1860_v34 = vpop.f32.mrf.mxu1 }
 0x190   : > { %v1819_v33 = vpop.f32.mrf.mxu0  ;;  %2245 = vst [vmem:[%s3230_s11 + $0x48] sm:$0xff] %v2543_v32 }
 0x191   : > { %2244 = vst [vmem:[%s3230_s11 + $0x40] sm:$0xff] %v2542_v31 }
 0x19d   : > { %v1937_v4 = vpop.f32.mrf.mxu1 }
 0x19e   : > { %v1896_v35 = vpop.f32.mrf.mxu0  ;;  %v1938_v37 = vadd.f32 %v1937_v4, %v3221_v27 }
 0x19f   : > { %v1897_v36 = vadd.f32 %v1896_v35, %v3221_v27  ;;  %v1939_v39 = vpop.f32.mrf.mxu1 }
 0x1a0   : > { %v1898_v38 = vpop.f32.mrf.mxu0  ;;  %v1940_v41 = vadd.f32 %v1939_v39, %v3221_v27 }
 0x1a1   : > { %v1899_v40 = vadd.f32 %v1898_v38, %v3221_v27  ;;  %v1941_v43 = vpop.f32.mrf.mxu1 }
 0x1a2   : > { %v1900_v42 = vpop.f32.mrf.mxu0  ;;  %v2545_v45 = vpack.c.bf16 %v1940_v41, %v1938_v37 }
 0x1a3   : > { %v2544_v44 = vpack.c.bf16 %v1899_v40, %v1897_v36  ;;  %v1942_v47 = vpop.f32.mrf.mxu1 }
 0x1a4   : > { %v1901_v46 = vpop.f32.mrf.mxu0  ;;  %2247 = vst [vmem:[%s3230_s11 + $0x58] sm:$0xff] %v2545_v45 }
 0x1a5   : > { %2246 = vst [vmem:[%s3230_s11 + $0x50] sm:$0xff] %v2544_v44 }
 0x1b1   : > { %v2019_v49 = vpop.f32.mrf.mxu1 }
 0x1b2   : > { %v1978_v48 = vpop.f32.mrf.mxu0  ;;  %v2020_v51 = vadd.f32 %v2019_v49, %v3221_v27 }
 0x1b3   : > { %v1979_v50 = vadd.f32 %v1978_v48, %v3221_v27  ;;  %v2021_v53 = vpop.f32.mrf.mxu1 }
 0x1b4   : > { %v1980_v52 = vpop.f32.mrf.mxu0  ;;  %v2022_v55 = vadd.f32 %v2021_v53, %v3221_v27 }
 0x1b5   : > { %v1981_v54 = vadd.f32 %v1980_v52, %v3221_v27  ;;  %v2023_v57 = vpop.f32.mrf.mxu1 }
 0x1b6   : > { %v1982_v56 = vpop.f32.mrf.mxu0  ;;  %v2547_v59 = vpack.c.bf16 %v2022_v55, %v2020_v51 }
 0x1b7   : > { %v2546_v58 = vpack.c.bf16 %v1981_v54, %v1979_v50  ;;  %v2024_v61 = vpop.f32.mrf.mxu1 }
 0x1b8   : > { %v1983_v60 = vpop.f32.mrf.mxu0  ;;  %2249 = vst [vmem:[%s3230_s11 + $0x68] sm:$0xff] %v2547_v59 }
 0x1b9   : > { %2248 = vst [vmem:[%s3230_s11 + $0x60] sm:$0xff] %v2546_v58 }
 0x1c5   : > { %v2101_v63 = vpop.f32.mrf.mxu1 }
 0x1c6   : > { %v2060_v62 = vpop.f32.mrf.mxu0  ;;  %v2102_v3 = vadd.f32 %v2101_v63, %v3221_v27 }
 0x1c7   : > { %v2103_v1 = vpop.f32.mrf.mxu1  ;;  %v2061_v2 = vadd.f32 %v2060_v62, %v3221_v27 }
 0x1c8   : > { %v2062_v0 = vpop.f32.mrf.mxu0  ;;  %v2104_v6 = vadd.f32 %v2103_v1, %v3221_v27 }
 0x1c9   : > { %v2063_v5 = vadd.f32 %v2062_v0, %v3221_v27  ;;  %v2105_v8 = vpop.f32.mrf.mxu1 }
 0x1ca   : > { %v2064_v7 = vpop.f32.mrf.mxu0  ;;  %v2549_v10 = vpack.c.bf16 %v2104_v6, %v2102_v3 }
 0x1cb   : > { %v2548_v9 = vpack.c.bf16 %v2063_v5, %v2061_v2  ;;  %v2106_v12 = vpop.f32.mrf.mxu1 }
 0x1cc   : > { %v2065_v11 = vpop.f32.mrf.mxu0  ;;  %2251 = vst [vmem:[%s3230_s11 + $0x78] sm:$0xff] %v2549_v10 }
 0x1cd   : > { %2250 = vst [vmem:[%s3230_s11 + $0x70] sm:$0xff] %v2548_v9 }
 0x1ce PF: > { %p10_p9 = scmp.ge.s32.totalorder %s2672_s16, 4   ;;  %s3290_s12 = smov %s2628_s13 }
 0x1cf   : > { %s3291_s13 = smov %s2681_s19  ;;  %s3292_s14 = smov %s2672_s16 }
 0x1d0   :  { %12 = sbr.rel (!%p10_p9) target bundleno = 2 (0x2), region = 90 }

// kernel: generator_forward.15
= control target key start
LH: loop header
LB: loop body
LE: loop exit
PB: predicated region body
PF: predicated region fallthrough
CT: control target
= control target key end

     0   :  { %v3217_v1 = vmov 0   ;;  %vm827_vm0 = vcmask 261120   ;;  %vm3219_vm1 = vmmov 0   ;;  %vm2491_vm2 = vcmask 15360   ;;  %s4145_s1 = inlined_call_operand.vmem [shape: bf16[32,8450], index: 1, kind: input, shape index: {}]   ;;  %s4146_s0 = inlined_call_operand.vmem [shape: bf16[12,32], index: 0, kind: input, shape index: {}]   ;;  %s4147_s2 = inlined_call_operand.vmem [shape: f32[12,8450], index: 2, kind: output, shape index: {}]  }
   0x1   :  { %v2748_v0 = vld [vmem:[%s4145_s1 + $0x21c] ss:$268 sps:$4 sm:$0xff]   ;;  %863 = vmatprep.mubr.bf16.mxu0 %v3217_v1  ;;  %906 = vmatprep.mubr.bf16.mxu1 %v3217_v1  ;;  %v2750_v2 = vld [vmem:[%s4145_s1 + $0x224] ss:$268 sps:$4 sm:$0xff]   ;;  %v2753_v4 = vld [vmem:[%s4145_s1 + $0x220] ss:$268 sps:$4 sm:$0xff]  }
   0x2   :  { %843 = vmatprep.subr.bf16.mxu0 %v2748_v0  ;;  %v2752_v3 = vld [vmem:[%s4145_s1 + $0x218] ss:$268 sps:$4 sm:$0xff]   ;;  %886 = vmatprep.subr.bf16.mxu1 %v2750_v2  ;;  %v2758_v7 = vld [vmem:[%s4145_s1] ss:$268 sps:$4 sm:$0xff]   ;;  %v2759_v8 = vld [vmem:[%s4145_s1 + $0x8] ss:$268 sps:$4 sm:$0xff]  }
   0x3   :  { %v2754_v5 = vld [vmem:[%s4145_s1 + $0x4] ss:$268 sps:$4 sm:$0xff]   ;;  %844 = vmatpush1.bf16.msra.mxu0 %v2752_v3  ;;  %887 = vmatpush1.bf16.msra.mxu1 %v2753_v4  ;;  %v2756_v6 = vld [vmem:[%s4145_s1 + $0xc] ss:$268 sps:$4 sm:$0xff]   ;;  %v2761_v10 = vld [vmem:[%s4145_s1 + $0x228] ss:$268 sps:$4 sm:$0xff]  }
   0x4   :  { %845 = vmatprep.subr.bf16.mxu0 %v2754_v5  ;;  %888 = vmatprep.subr.bf16.mxu1 %v2756_v6  ;;  %v3264_v9 = vld [vmem:[%s4146_s0] sm:$0x3f]   ;;  %v2763_v11 = vld [vmem:[%s4145_s1 + $0x22c] ss:$268 sps:$4 sm:$0xff]   ;;  %v2764_v12 = vld [vmem:[%s4145_s1 + $0x230] ss:$268 sps:$4 sm:$0xff]  }
   0x5   :  { %v2766_v13 = vld [vmem:[%s4145_s1 + $0x234] ss:$268 sps:$4 sm:$0xff]   ;;  %v2772_v15 = vld [vmem:[%s4145_s1 + $0x1c] ss:$268 sps:$4 sm:$0xff]   ;;  %v2770_v17 = vld [vmem:[%s4145_s1 + $0x18] ss:$268 sps:$4 sm:$0xff]  }
   0x6   :  { %v2769_v14 = vld [vmem:[%s4145_s1 + $0x14] ss:$268 sps:$4 sm:$0xff]   ;;  %v2767_v16 = vld [vmem:[%s4145_s1 + $0x10] ss:$268 sps:$4 sm:$0xff]   ;;  %v2773_v20 = vld [vmem:[%s4145_s1 + $0x238] ss:$268 sps:$4 sm:$0xff]  }
   0x7   :  { %846 = vmatpush1.bf16.msra.mxu0 %v2758_v7  ;;  %889 = vmatpush1.bf16.msra.mxu1 %v2759_v8  ;;  %v2775_v18 = vld [vmem:[%s4145_s1 + $0x23c] ss:$268 sps:$4 sm:$0xff]   ;;  %v2778_v19 = vld [vmem:[%s4145_s1 + $0x244] ss:$268 sps:$4 sm:$0xff]   ;;  %v2776_v21 = vld [vmem:[%s4145_s1 + $0x240] ss:$268 sps:$4 sm:$0xff]  }
   0x8   :  { %929 = vmatprep.subr.bf16.mxu0 %v2763_v11  ;;  %972 = vmatprep.subr.bf16.mxu1 %v2766_v13  ;;  %v2781_v22 = vld [vmem:[%s4145_s1 + $0x24] ss:$268 sps:$4 sm:$0xff]   ;;  %v2784_v23 = vld [vmem:[%s4145_s1 + $0x2c] ss:$268 sps:$4 sm:$0xff]   ;;  %v2782_v25 = vld [vmem:[%s4145_s1 + $0x28] ss:$268 sps:$4 sm:$0xff]  }
   0x9   :  { %v2779_v24 = vld [vmem:[%s4145_s1 + $0x20] ss:$268 sps:$4 sm:$0xff]   ;;  %v2785_v28 = vld [vmem:[%s4145_s1 + $0x248] ss:$268 sps:$4 sm:$0xff]   ;;  %v2788_v29 = vld [vmem:[%s4145_s1 + $0x250] ss:$268 sps:$4 sm:$0xff]  }
   0xa   :  { %2700 = vmatmul.mubr.msk.bf16.vlgmr.msra.gmra.mxu0 %vm827_vm0, %v3264_v9  ;;  %2701 = vmatmul.mubr.msk.bf16.vlgmr.msra.gmra.mxu1 %vm827_vm0, %v3264_v9  ;;  %v2787_v26 = vld [vmem:[%s4145_s1 + $0x24c] ss:$268 sps:$4 sm:$0xff]   ;;  %v2790_v27 = vld [vmem:[%s4145_s1 + $0x254] ss:$268 sps:$4 sm:$0xff]   ;;  %v2796_v31 = vld [vmem:[%s4145_s1 + $0x3c] ss:$268 sps:$4 sm:$0xff]  }
   0xb   :  { %930 = vmatpush1.bf16.msra.mxu0 %v2761_v10  ;;  %973 = vmatpush1.bf16.msra.mxu1 %v2764_v12  ;;  %v2793_v30 = vld [vmem:[%s4145_s1 + $0x34] ss:$268 sps:$4 sm:$0xff]   ;;  %v2791_v32 = vld [vmem:[%s4145_s1 + $0x30] ss:$268 sps:$4 sm:$0xff]   ;;  %v2794_v33 = vld [vmem:[%s4145_s1 + $0x38] ss:$268 sps:$4 sm:$0xff]  }
   0xc   :  { %931 = vmatprep.subr.bf16.mxu0 %v2769_v14  ;;  %974 = vmatprep.subr.bf16.mxu1 %v2772_v15  ;;  %v2799_v34 = vld [vmem:[%s4145_s1 + $0x25c] ss:$268 sps:$4 sm:$0xff]   ;;  %v2802_v35 = vld [vmem:[%s4145_s1 + $0x264] ss:$268 sps:$4 sm:$0xff]   ;;  %v2800_v37 = vld [vmem:[%s4145_s1 + $0x260] ss:$268 sps:$4 sm:$0xff]  }
   0xd   :  { %949 = vmatprep.mubr.bf16.mxu0 %v3217_v1  ;;  %992 = vmatprep.mubr.bf16.mxu1 %v3217_v1  ;;  %v2797_v36 = vld [vmem:[%s4145_s1 + $0x258] ss:$268 sps:$4 sm:$0xff]   ;;  %v2803_v40 = vld [vmem:[%s4145_s1 + $0x40] ss:$268 sps:$4 sm:$0xff]   ;;  %v2806_v41 = vld [vmem:[%s4145_s1 + $0x48] ss:$268 sps:$4 sm:$0xff]  }
   0xe   :  { %v2805_v38 = vld [vmem:[%s4145_s1 + $0x44] ss:$268 sps:$4 sm:$0xff]   ;;  %v2808_v39 = vld [vmem:[%s4145_s1 + $0x4c] ss:$268 sps:$4 sm:$0xff]   ;;  %v2814_v43 = vld [vmem:[%s4145_s1 + $0x274] ss:$268 sps:$4 sm:$0xff]  }
   0xf   :  { %932 = vmatpush1.bf16.msra.mxu0 %v2767_v16  ;;  %975 = vmatpush1.bf16.msra.mxu1 %v2770_v17  ;;  %v2811_v42 = vld [vmem:[%s4145_s1 + $0x26c] ss:$268 sps:$4 sm:$0xff]   ;;  %v2809_v44 = vld [vmem:[%s4145_s1 + $0x268] ss:$268 sps:$4 sm:$0xff]   ;;  %v2812_v45 = vld [vmem:[%s4145_s1 + $0x270] ss:$268 sps:$4 sm:$0xff]  }
  0x10   :  { %1015 = vmatprep.subr.bf16.mxu0 %v2775_v18  ;;  %1058 = vmatprep.subr.bf16.mxu1 %v2778_v19  ;;  %v2817_v46 = vld [vmem:[%s4145_s1 + $0x54] ss:$268 sps:$4 sm:$0xff]   ;;  %v2820_v47 = vld [vmem:[%s4145_s1 + $0x5c] ss:$268 sps:$4 sm:$0xff]   ;;  %v2818_v49 = vld [vmem:[%s4145_s1 + $0x58] ss:$268 sps:$4 sm:$0xff]  }
  0x11   :  { %v2815_v48 = vld [vmem:[%s4145_s1 + $0x50] ss:$268 sps:$4 sm:$0xff]   ;;  %v2821_v52 = vld [vmem:[%s4145_s1 + $0x278] ss:$268 sps:$4 sm:$0xff]   ;;  %v2824_v53 = vld [vmem:[%s4145_s1 + $0x280] ss:$268 sps:$4 sm:$0xff]  }
  0x12   :  { %2702 = vmatmul.mubr.msk.bf16.vlgmr.msra.gmra.mxu0 %vm827_vm0, %v3264_v9  ;;  %2703 = vmatmul.mubr.msk.bf16.vlgmr.msra.gmra.mxu1 %vm827_vm0, %v3264_v9  ;;  %v2823_v50 = vld [vmem:[%s4145_s1 + $0x27c] ss:$268 sps:$4 sm:$0xff]   ;;  %v2826_v51 = vld [vmem:[%s4145_s1 + $0x284] ss:$268 sps:$4 sm:$0xff]   ;;  %v2832_v55 = vld [vmem:[%s4145_s1 + $0x6c] ss:$268 sps:$4 sm:$0xff]  }
  0x13   :  { %1016 = vmatpush1.bf16.msra.mxu0 %v2773_v20  ;;  %1059 = vmatpush1.bf16.msra.mxu1 %v2776_v21  ;;  %v2829_v54 = vld [vmem:[%s4145_s1 + $0x64] ss:$268 sps:$4 sm:$0xff]   ;;  %v2827_v56 = vld [vmem:[%s4145_s1 + $0x60] ss:$268 sps:$4 sm:$0xff]   ;;  %v2830_v57 = vld [vmem:[%s4145_s1 + $0x68] ss:$268 sps:$4 sm:$0xff]  }
  0x14   :  { %1017 = vmatprep.subr.bf16.mxu0 %v2781_v22  ;;  %1060 = vmatprep.subr.bf16.mxu1 %v2784_v23  ;;  %v2835_v58 = vld [vmem:[%s4145_s1 + $0x28c] ss:$268 sps:$4 sm:$0xff]   ;;  %v2838_v59 = vld [vmem:[%s4145_s1 + $0x294] ss:$268 sps:$4 sm:$0xff]   ;;  %v2836_v61 = vld [vmem:[%s4145_s1 + $0x290] ss:$268 sps:$4 sm:$0xff]  }
  0x15   :  { %1035 = vmatprep.mubr.bf16.mxu0 %v3217_v1  ;;  %1078 = vmatprep.mubr.bf16.mxu1 %v3217_v1  ;;  %v2833_v60 = vld [vmem:[%s4145_s1 + $0x288] ss:$268 sps:$4 sm:$0xff]   ;;  %v2839_v0 = vld [vmem:[%s4145_s1 + $0x70] ss:$268 sps:$4 sm:$0xff]   ;;  %v2842_v2 = vld [vmem:[%s4145_s1 + $0x78] ss:$268 sps:$4 sm:$0xff]  }
  0x16   :  { %v2841_v62 = vld [vmem:[%s4145_s1 + $0x74] ss:$268 sps:$4 sm:$0xff]   ;;  %v2844_v63 = vld [vmem:[%s4145_s1 + $0x7c] ss:$268 sps:$4 sm:$0xff]   ;;  %v2850_v4 = vld [vmem:[%s4145_s1 + $0x2a4] ss:$268 sps:$4 sm:$0xff]  }
  0x17   :  { %1018 = vmatpush1.bf16.msra.mxu0 %v2779_v24  ;;  %1061 = vmatpush1.bf16.msra.mxu1 %v2782_v25  ;;  %v2847_v3 = vld [vmem:[%s4145_s1 + $0x29c] ss:$268 sps:$4 sm:$0xff]   ;;  %v2845_v5 = vld [vmem:[%s4145_s1 + $0x298] ss:$268 sps:$4 sm:$0xff]   ;;  %v2848_v6 = vld [vmem:[%s4145_s1 + $0x2a0] ss:$268 sps:$4 sm:$0xff]  }
  0x18   :  { %1101 = vmatprep.subr.bf16.mxu0 %v2787_v26  ;;  %1144 = vmatprep.subr.bf16.mxu1 %v2790_v27  ;;  %v2853_v7 = vld [vmem:[%s4145_s1 + $0x84] ss:$268 sps:$4 sm:$0xff]   ;;  %v2856_v8 = vld [vmem:[%s4145_s1 + $0x8c] ss:$268 sps:$4 sm:$0xff]   ;;  %v2854_v11 = vld [vmem:[%s4145_s1 + $0x88] ss:$268 sps:$4 sm:$0xff]  }
  0x19   :  { %v2851_v10 = vld [vmem:[%s4145_s1 + $0x80] ss:$268 sps:$4 sm:$0xff]   ;;  %v2857_v14 = vld [vmem:[%s4145_s1 + $0x2a8] ss:$268 sps:$4 sm:$0xff]   ;;  %v2860_v15 = vld [vmem:[%s4145_s1 + $0x2b0] ss:$268 sps:$4 sm:$0xff]  }
  0x1a   :  { %2704 = vmatmul.mubr.msk.bf16.vlgmr.msra.gmra.mxu0 %vm827_vm0, %v3264_v9  ;;  %2705 = vmatmul.mubr.msk.bf16.vlgmr.msra.gmra.mxu1 %vm827_vm0, %v3264_v9  ;;  %v2859_v12 = vld [vmem:[%s4145_s1 + $0x2ac] ss:$268 sps:$4 sm:$0xff]   ;;  %v2862_v13 = vld [vmem:[%s4145_s1 + $0x2b4] ss:$268 sps:$4 sm:$0xff]   ;;  %v2868_v17 = vld [vmem:[%s4145_s1 + $0x9c] ss:$268 sps:$4 sm:$0xff]  }
  0x1b   :  { %1102 = vmatpush1.bf16.msra.mxu0 %v2785_v28  ;;  %1145 = vmatpush1.bf16.msra.mxu1 %v2788_v29  ;;  %v2865_v16 = vld [vmem:[%s4145_s1 + $0x94] ss:$268 sps:$4 sm:$0xff]   ;;  %v2863_v18 = vld [vmem:[%s4145_s1 + $0x90] ss:$268 sps:$4 sm:$0xff]   ;;  %v2866_v19 = vld [vmem:[%s4145_s1 + $0x98] ss:$268 sps:$4 sm:$0xff]  }
  0x1c   :  { %1103 = vmatprep.subr.bf16.mxu0 %v2793_v30  ;;  %1146 = vmatprep.subr.bf16.mxu1 %v2796_v31  ;;  %v2871_v20 = vld [vmem:[%s4145_s1 + $0x2bc] ss:$268 sps:$4 sm:$0xff]   ;;  %v2874_v21 = vld [vmem:[%s4145_s1 + $0x2c4] ss:$268 sps:$4 sm:$0xff]   ;;  %v2872_v23 = vld [vmem:[%s4145_s1 + $0x2c0] ss:$268 sps:$4 sm:$0xff]  }
  0x1d   :  { %1121 = vmatprep.mubr.bf16.mxu0 %v3217_v1  ;;  %1164 = vmatprep.mubr.bf16.mxu1 %v3217_v1  ;;  %v2869_v22 = vld [vmem:[%s4145_s1 + $0x2b8] ss:$268 sps:$4 sm:$0xff]   ;;  %v2875_v26 = vld [vmem:[%s4145_s1 + $0xa0] ss:$268 sps:$4 sm:$0xff]   ;;  %v2878_v27 = vld [vmem:[%s4145_s1 + $0xa8] ss:$268 sps:$4 sm:$0xff]  }
  0x1e   :  { %v2877_v24 = vld [vmem:[%s4145_s1 + $0xa4] ss:$268 sps:$4 sm:$0xff]   ;;  %v2880_v25 = vld [vmem:[%s4145_s1 + $0xac] ss:$268 sps:$4 sm:$0xff]   ;;  %v2886_v29 = vld [vmem:[%s4145_s1 + $0x2d4] ss:$268 sps:$4 sm:$0xff]  }
  0x1f   :  { %1104 = vmatpush1.bf16.msra.mxu0 %v2791_v32  ;;  %1147 = vmatpush1.bf16.msra.mxu1 %v2794_v33  ;;  %v2883_v28 = vld [vmem:[%s4145_s1 + $0x2cc] ss:$268 sps:$4 sm:$0xff]   ;;  %v2881_v30 = vld [vmem:[%s4145_s1 + $0x2c8] ss:$268 sps:$4 sm:$0xff]   ;;  %v2884_v31 = vld [vmem:[%s4145_s1 + $0x2d0] ss:$268 sps:$4 sm:$0xff]  }
  0x20   :  { %1187 = vmatprep.subr.bf16.mxu0 %v2799_v34  ;;  %1230 = vmatprep.subr.bf16.mxu1 %v2802_v35  ;;  %v2889_v32 = vld [vmem:[%s4145_s1 + $0xb4] ss:$268 sps:$4 sm:$0xff]   ;;  %v2892_v33 = vld [vmem:[%s4145_s1 + $0xbc] ss:$268 sps:$4 sm:$0xff]   ;;  %v2890_v35 = vld [vmem:[%s4145_s1 + $0xb8] ss:$268 sps:$4 sm:$0xff]  }
  0x21   :  { %v2887_v34 = vld [vmem:[%s4145_s1 + $0xb0] ss:$268 sps:$4 sm:$0xff]   ;;  %vm2559_vm3 = vcmask 11264  }
  0x22   :  { %2706 = vmatmul.mubr.msk.bf16.vlgmr.msra.gmra.mxu0 %vm827_vm0, %v3264_v9  ;;  %2707 = vmatmul.mubr.msk.bf16.vlgmr.msra.gmra.mxu1 %vm827_vm0, %v3264_v9 }
  0x23   :  { %1188 = vmatpush1.bf16.msra.mxu0 %v2797_v36  ;;  %1231 = vmatpush1.bf16.msra.mxu1 %v2800_v37  ;;  %v2895_v36 = vld [vmem:[%s4145_s1 + $0x2dc] ss:$268 sps:$4 sm:$0xff]   ;;  %v2898_v37 = vld [vmem:[%s4145_s1 + $0x2e4] ss:$268 sps:$4 sm:$0xff]  }
  0x24   :  { %1189 = vmatprep.subr.bf16.mxu0 %v2805_v38  ;;  %1232 = vmatprep.subr.bf16.mxu1 %v2808_v39  ;;  %v2893_v38 = vld [vmem:[%s4145_s1 + $0x2d8] ss:$268 sps:$4 sm:$0xff]   ;;  %v2896_v39 = vld [vmem:[%s4145_s1 + $0x2e0] ss:$268 sps:$4 sm:$0xff]  }
  0x25   :  { %1207 = vmatprep.mubr.bf16.mxu0 %v3217_v1  ;;  %1250 = vmatprep.mubr.bf16.mxu1 %v3217_v1 }
  0x27   :  { %1190 = vmatpush1.bf16.msra.mxu0 %v2803_v40  ;;  %1233 = vmatpush1.bf16.msra.mxu1 %v2806_v41  ;;  %v2901_v40 = vld [vmem:[%s4145_s1 + $0xc4] ss:$268 sps:$4 sm:$0xff]   ;;  %v2904_v41 = vld [vmem:[%s4145_s1 + $0xcc] ss:$268 sps:$4 sm:$0xff]  }
  0x28   :  { %1273 = vmatprep.subr.bf16.mxu0 %v2811_v42  ;;  %1316 = vmatprep.subr.bf16.mxu1 %v2814_v43  ;;  %v2899_v42 = vld [vmem:[%s4145_s1 + $0xc0] ss:$268 sps:$4 sm:$0xff]   ;;  %v2902_v43 = vld [vmem:[%s4145_s1 + $0xc8] ss:$268 sps:$4 sm:$0xff]  }
  0x2a   :  { %2708 = vmatmul.mubr.msk.bf16.vlgmr.msra.gmra.mxu0 %vm827_vm0, %v3264_v9  ;;  %2709 = vmatmul.mubr.msk.bf16.vlgmr.msra.gmra.mxu1 %vm827_vm0, %v3264_v9 }
  0x2b   :  { %1274 = vmatpush1.bf16.msra.mxu0 %v2809_v44  ;;  %1317 = vmatpush1.bf16.msra.mxu1 %v2812_v45  ;;  %v2907_v44 = vld [vmem:[%s4145_s1 + $0x2ec] ss:$268 sps:$4 sm:$0xff]   ;;  %v2910_v45 = vld [vmem:[%s4145_s1 + $0x2f4] ss:$268 sps:$4 sm:$0xff]  }
  0x2c   :  { %1275 = vmatprep.subr.bf16.mxu0 %v2817_v46  ;;  %1318 = vmatprep.subr.bf16.mxu1 %v2820_v47  ;;  %v2905_v46 = vld [vmem:[%s4145_s1 + $0x2e8] ss:$268 sps:$4 sm:$0xff]   ;;  %v2908_v47 = vld [vmem:[%s4145_s1 + $0x2f0] ss:$268 sps:$4 sm:$0xff]  }
  0x2d   :  { %1293 = vmatprep.mubr.bf16.mxu0 %v3217_v1  ;;  %1336 = vmatprep.mubr.bf16.mxu1 %v3217_v1 }
  0x2f   :  { %1276 = vmatpush1.bf16.msra.mxu0 %v2815_v48  ;;  %1319 = vmatpush1.bf16.msra.mxu1 %v2818_v49  ;;  %v2913_v48 = vld [vmem:[%s4145_s1 + $0xd4] ss:$268 sps:$4 sm:$0xff]   ;;  %v2916_v49 = vld [vmem:[%s4145_s1 + $0xdc] ss:$268 sps:$4 sm:$0xff]  }
  0x30   :  { %1359 = vmatprep.subr.bf16.mxu0 %v2823_v50  ;;  %1402 = vmatprep.subr.bf16.mxu1 %v2826_v51  ;;  %v2911_v50 = vld [vmem:[%s4145_s1 + $0xd0] ss:$268 sps:$4 sm:$0xff]   ;;  %v2914_v51 = vld [vmem:[%s4145_s1 + $0xd8] ss:$268 sps:$4 sm:$0xff]  }
  0x32   :  { %2710 = vmatmul.mubr.msk.bf16.vlgmr.msra.gmra.mxu0 %vm827_vm0, %v3264_v9  ;;  %2711 = vmatmul.mubr.msk.bf16.vlgmr.msra.gmra.mxu1 %vm827_vm0, %v3264_v9 }
  0x33   :  { %1360 = vmatpush1.bf16.msra.mxu0 %v2821_v52  ;;  %1403 = vmatpush1.bf16.msra.mxu1 %v2824_v53  ;;  %v2919_v52 = vld [vmem:[%s4145_s1 + $0x2fc] ss:$268 sps:$4 sm:$0xff]   ;;  %v2922_v53 = vld [vmem:[%s4145_s1 + $0x304] ss:$268 sps:$4 sm:$0xff]  }
  0x34   :  { %1361 = vmatprep.subr.bf16.mxu0 %v2829_v54  ;;  %1404 = vmatprep.subr.bf16.mxu1 %v2832_v55  ;;  %v2917_v54 = vld [vmem:[%s4145_s1 + $0x2f8] ss:$268 sps:$4 sm:$0xff]   ;;  %v2920_v55 = vld [vmem:[%s4145_s1 + $0x300] ss:$268 sps:$4 sm:$0xff]  }
  0x35   :  { %1379 = vmatprep.mubr.bf16.mxu0 %v3217_v1  ;;  %1422 = vmatprep.mubr.bf16.mxu1 %v3217_v1 }
  0x37   :  { %1362 = vmatpush1.bf16.msra.mxu0 %v2827_v56  ;;  %1405 = vmatpush1.bf16.msra.mxu1 %v2830_v57  ;;  %v2925_v56 = vld [vmem:[%s4145_s1 + $0xe4] ss:$268 sps:$4 sm:$0xff]   ;;  %v2928_v57 = vld [vmem:[%s4145_s1 + $0xec] ss:$268 sps:$4 sm:$0xff]  }
  0x38   :  { %1445 = vmatprep.subr.bf16.mxu0 %v2835_v58  ;;  %1488 = vmatprep.subr.bf16.mxu1 %v2838_v59  ;;  %v2923_v58 = vld [vmem:[%s4145_s1 + $0xe0] ss:$268 sps:$4 sm:$0xff]   ;;  %v2926_v59 = vld [vmem:[%s4145_s1 + $0xe8] ss:$268 sps:$4 sm:$0xff]  }
  0x3a   :  { %2712 = vmatmul.mubr.msk.bf16.vlgmr.msra.gmra.mxu0 %vm827_vm0, %v3264_v9  ;;  %2713 = vmatmul.mubr.msk.bf16.vlgmr.msra.gmra.mxu1 %vm827_vm0, %v3264_v9 }
  0x3b   :  { %1446 = vmatpush1.bf16.msra.mxu0 %v2833_v60  ;;  %1489 = vmatpush1.bf16.msra.mxu1 %v2836_v61  ;;  %v2931_v60 = vld [vmem:[%s4145_s1 + $0x30c] ss:$268 sps:$4 sm:$0xff]   ;;  %v2934_v61 = vld [vmem:[%s4145_s1 + $0x314] ss:$268 sps:$4 sm:$0xff]  }
  0x3c   :  { %1447 = vmatprep.subr.bf16.mxu0 %v2841_v62  ;;  %1490 = vmatprep.subr.bf16.mxu1 %v2844_v63  ;;  %v2929_v62 = vld [vmem:[%s4145_s1 + $0x308] ss:$268 sps:$4 sm:$0xff]   ;;  %v2932_v63 = vld [vmem:[%s4145_s1 + $0x310] ss:$268 sps:$4 sm:$0xff]  }
  0x3d   :  { %1465 = vmatprep.mubr.bf16.mxu0 %v3217_v1  ;;  %1508 = vmatprep.mubr.bf16.mxu1 %v3217_v1 }
  0x3f   :  { %1448 = vmatpush1.bf16.msra.mxu0 %v2839_v0  ;;  %1491 = vmatpush1.bf16.msra.mxu1 %v2842_v2  ;;  %v2937_v0 = vld [vmem:[%s4145_s1 + $0xf4] ss:$268 sps:$4 sm:$0xff]   ;;  %v2940_v2 = vld [vmem:[%s4145_s1 + $0xfc] ss:$268 sps:$4 sm:$0xff]  }
  0x40   :  { %1531 = vmatprep.subr.bf16.mxu0 %v2847_v3  ;;  %1574 = vmatprep.subr.bf16.mxu1 %v2850_v4  ;;  %v2935_v3 = vld [vmem:[%s4145_s1 + $0xf0] ss:$268 sps:$4 sm:$0xff]   ;;  %v2938_v4 = vld [vmem:[%s4145_s1 + $0xf8] ss:$268 sps:$4 sm:$0xff]  }
  0x42   :  { %2714 = vmatmul.mubr.msk.bf16.vlgmr.msra.gmra.mxu0 %vm827_vm0, %v3264_v9  ;;  %2715 = vmatmul.mubr.msk.bf16.vlgmr.msra.gmra.mxu1 %vm827_vm0, %v3264_v9 }
  0x43   :  { %1532 = vmatpush1.bf16.msra.mxu0 %v2845_v5  ;;  %1575 = vmatpush1.bf16.msra.mxu1 %v2848_v6  ;;  %v2943_v5 = vld [vmem:[%s4145_s1 + $0x31c] ss:$268 sps:$4 sm:$0xff]   ;;  %v2941_v6 = vld [vmem:[%s4145_s1 + $0x318] ss:$268 sps:$4 sm:$0xff]  }
  0x44   :  { %1533 = vmatprep.subr.bf16.mxu0 %v2853_v7  ;;  %1576 = vmatprep.subr.bf16.mxu1 %v2856_v8  ;;  %v2944_v7 = vld [vmem:[%s4145_s1 + $0x320] ss:$268 sps:$4 sm:$0xff]   ;;  %v3218_v8 = vmov 0.0  }
  0x45   :  { %1551 = vmatprep.mubr.bf16.mxu0 %v3217_v1  ;;  %1594 = vmatprep.mubr.bf16.mxu1 %v3217_v1 }
  0x47   :  { %1534 = vmatpush1.bf16.msra.mxu0 %v2851_v10  ;;  %1577 = vmatpush1.bf16.msra.mxu1 %v2854_v11  ;;  %v2947_v10 = vld [vmem:[%s4145_s1 + $0x104] ss:$268 sps:$4 sm:$0xff]   ;;  %v2945_v11 = vld [vmem:[%s4145_s1 + $0x100] ss:$268 sps:$4 sm:$0xff]  }
  0x48   :  { %1617 = vmatprep.subr.bf16.mxu0 %v2859_v12  ;;  %1660 = vmatprep.subr.bf16.mxu1 %v2862_v13  ;;  %v2948_v12 = vld [vmem:[%s4145_s1 + $0x108] ss:$268 sps:$4 sm:$0xff]  }
  0x4a   :  { %2716 = vmatmul.mubr.msk.bf16.vlgmr.msra.gmra.mxu0 %vm827_vm0, %v3264_v9  ;;  %2717 = vmatmul.mubr.msk.bf16.vlgmr.msra.gmra.mxu1 %vm827_vm0, %v3264_v9 }
  0x4b   :  { %1618 = vmatpush1.bf16.msra.mxu0 %v2857_v14  ;;  %1661 = vmatpush1.bf16.msra.mxu1 %v2860_v15 }
  0x4c   :  { %1619 = vmatprep.subr.bf16.mxu0 %v2865_v16  ;;  %1662 = vmatprep.subr.bf16.mxu1 %v2868_v17 }
  0x4d   :  { %1637 = vmatprep.mubr.bf16.mxu0 %v3217_v1  ;;  %1680 = vmatprep.mubr.bf16.mxu1 %v3217_v1 }
  0x4f   :  { %1620 = vmatpush1.bf16.msra.mxu0 %v2863_v18  ;;  %1663 = vmatpush1.bf16.msra.mxu1 %v2866_v19 }
  0x50   :  { %1703 = vmatprep.subr.bf16.mxu0 %v2871_v20  ;;  %1746 = vmatprep.subr.bf16.mxu1 %v2874_v21 }
  0x52   :  { %2718 = vmatmul.mubr.msk.bf16.vlgmr.msra.gmra.mxu0 %vm827_vm0, %v3264_v9  ;;  %2719 = vmatmul.mubr.msk.bf16.vlgmr.msra.gmra.mxu1 %vm827_vm0, %v3264_v9 }
  0x53   :  { %1704 = vmatpush1.bf16.msra.mxu0 %v2869_v22  ;;  %1747 = vmatpush1.bf16.msra.mxu1 %v2872_v23 }
  0x54   :  { %1705 = vmatprep.subr.bf16.mxu0 %v2877_v24  ;;  %1748 = vmatprep.subr.bf16.mxu1 %v2880_v25 }
  0x55   :  { %1723 = vmatprep.mubr.bf16.mxu0 %v3217_v1  ;;  %1766 = vmatprep.mubr.bf16.mxu1 %v3217_v1 }
  0x57   :  { %1706 = vmatpush1.bf16.msra.mxu0 %v2875_v26  ;;  %1749 = vmatpush1.bf16.msra.mxu1 %v2878_v27 }
  0x58   :  { %1789 = vmatprep.subr.bf16.mxu0 %v2883_v28  ;;  %1832 = vmatprep.subr.bf16.mxu1 %v2886_v29 }
  0x5a   :  { %2720 = vmatmul.mubr.msk.bf16.vlgmr.msra.gmra.mxu0 %vm827_vm0, %v3264_v9  ;;  %2721 = vmatmul.mubr.msk.bf16.vlgmr.msra.gmra.mxu1 %vm827_vm0, %v3264_v9 }
  0x5b   :  { %1790 = vmatpush1.bf16.msra.mxu0 %v2881_v30  ;;  %1833 = vmatpush1.bf16.msra.mxu1 %v2884_v31 }
  0x5c   :  { %1791 = vmatprep.subr.bf16.mxu0 %v2889_v32  ;;  %1834 = vmatprep.subr.bf16.mxu1 %v2892_v33 }
  0x5d   :  { %1809 = vmatprep.mubr.bf16.mxu0 %v3217_v1  ;;  %1852 = vmatprep.mubr.bf16.mxu1 %v3217_v1 }
  0x5f   :  { %1792 = vmatpush1.bf16.msra.mxu0 %v2887_v34  ;;  %1835 = vmatpush1.bf16.msra.mxu1 %v2890_v35 }
  0x60   :  { %1875 = vmatprep.subr.bf16.mxu0 %v2895_v36  ;;  %1918 = vmatprep.subr.bf16.mxu1 %v2898_v37 }
  0x62   :  { %2722 = vmatmul.mubr.msk.bf16.vlgmr.msra.gmra.mxu0 %vm827_vm0, %v3264_v9  ;;  %2723 = vmatmul.mubr.msk.bf16.vlgmr.msra.gmra.mxu1 %vm827_vm0, %v3264_v9 }
  0x63   :  { %1876 = vmatpush1.bf16.msra.mxu0 %v2893_v38  ;;  %1919 = vmatpush1.bf16.msra.mxu1 %v2896_v39 }
  0x64   :  { %1877 = vmatprep.subr.bf16.mxu0 %v2901_v40  ;;  %1920 = vmatprep.subr.bf16.mxu1 %v2904_v41 }
  0x65   :  { %1895 = vmatprep.mubr.bf16.mxu0 %v3217_v1  ;;  %1938 = vmatprep.mubr.bf16.mxu1 %v3217_v1 }
  0x67   :  { %1878 = vmatpush1.bf16.msra.mxu0 %v2899_v42  ;;  %1921 = vmatpush1.bf16.msra.mxu1 %v2902_v43 }
  0x68   :  { %1961 = vmatprep.subr.bf16.mxu0 %v2907_v44  ;;  %2004 = vmatprep.subr.bf16.mxu1 %v2910_v45 }
  0x6a   :  { %2724 = vmatmul.mubr.msk.bf16.vlgmr.msra.gmra.mxu0 %vm827_vm0, %v3264_v9  ;;  %2725 = vmatmul.mubr.msk.bf16.vlgmr.msra.gmra.mxu1 %vm827_vm0, %v3264_v9 }
  0x6b   :  { %1962 = vmatpush1.bf16.msra.mxu0 %v2905_v46  ;;  %2005 = vmatpush1.bf16.msra.mxu1 %v2908_v47 }
  0x6c   :  { %1963 = vmatprep.subr.bf16.mxu0 %v2913_v48  ;;  %2006 = vmatprep.subr.bf16.mxu1 %v2916_v49 }
  0x6d   :  { %1981 = vmatprep.mubr.bf16.mxu0 %v3217_v1  ;;  %2024 = vmatprep.mubr.bf16.mxu1 %v3217_v1 }
  0x6f   :  { %1964 = vmatpush1.bf16.msra.mxu0 %v2911_v50  ;;  %2007 = vmatpush1.bf16.msra.mxu1 %v2914_v51 }
  0x70   :  { %2047 = vmatprep.subr.bf16.mxu0 %v2919_v52  ;;  %2090 = vmatprep.subr.bf16.mxu1 %v2922_v53 }
  0x72   :  { %2726 = vmatmul.mubr.msk.bf16.vlgmr.msra.gmra.mxu0 %vm827_vm0, %v3264_v9  ;;  %2727 = vmatmul.mubr.msk.bf16.vlgmr.msra.gmra.mxu1 %vm827_vm0, %v3264_v9 }
  0x73   :  { %2048 = vmatpush1.bf16.msra.mxu0 %v2917_v54  ;;  %2091 = vmatpush1.bf16.msra.mxu1 %v2920_v55 }
  0x74   :  { %2049 = vmatprep.subr.bf16.mxu0 %v2925_v56  ;;  %2092 = vmatprep.subr.bf16.mxu1 %v2928_v57 }
  0x75   :  { %2067 = vmatprep.mubr.bf16.mxu0 %v3217_v1  ;;  %2110 = vmatprep.mubr.bf16.mxu1 %v3217_v1 }
  0x77   :  { %2050 = vmatpush1.bf16.msra.mxu0 %v2923_v58  ;;  %2093 = vmatpush1.bf16.msra.mxu1 %v2926_v59 }
  0x78   :  { %2133 = vmatprep.subr.bf16.mxu0 %v2931_v60  ;;  %2176 = vmatprep.subr.bf16.mxu1 %v2934_v61 }
  0x7a   :  { %2728 = vmatmul.mubr.msk.bf16.vlgmr.msra.gmra.mxu0 %vm827_vm0, %v3264_v9  ;;  %2729 = vmatmul.mubr.msk.bf16.vlgmr.msra.gmra.mxu1 %vm827_vm0, %v3264_v9 }
  0x7b   :  { %2134 = vmatpush1.bf16.msra.mxu0 %v2929_v62  ;;  %2177 = vmatpush1.bf16.msra.mxu1 %v2932_v63 }
  0x7c   :  { %2135 = vmatprep.subr.bf16.mxu0 %v2937_v0  ;;  %2178 = vmatprep.subr.bf16.mxu1 %v2940_v2 }
  0x7d   :  { %2153 = vmatprep.mubr.bf16.mxu0 %v3217_v1  ;;  %2196 = vmatprep.mubr.bf16.mxu1 %v3217_v1 }
  0x7f   :  { %2136 = vmatpush1.bf16.msra.mxu0 %v2935_v3  ;;  %2179 = vmatpush1.bf16.msra.mxu1 %v2938_v4 }
  0x80   :  { %2219 = vmatprep.subr.bf16.mxu0 %v2943_v5  ;;  %2737 = vmatprep.subr.bf16.mxu1 %v3218_v8 }
  0x82   :  { %2730 = vmatmul.mubr.msk.bf16.vlgmr.msra.gmra.mxu0 %vm827_vm0, %v3264_v9  ;;  %2731 = vmatmul.mubr.msk.bf16.vlgmr.msra.gmra.mxu1 %vm827_vm0, %v3264_v9 }
  0x83   :  { %2220 = vmatpush1.bf16.msra.mxu0 %v2941_v6  ;;  %2738 = vmatpush3.bf16.msra.mxu1 %v2944_v7 }
  0x84   :  { %2221 = vmatprep.subr.bf16.mxu0 %v2947_v10  ;;  %2739 = vmatprep.subr.bf16.mxu1 %v3218_v8 }
  0x85   :  { %2239 = vmatprep.mubr.bf16.mxu0 %v3217_v1  ;;  %2741 = vmatprep.mubr.msk.bf16.mxu1 %vm3219_vm1, %v3218_v8 }
  0x87   :  { %2222 = vmatpush1.bf16.msra.mxu0 %v2945_v11  ;;  %2740 = vmatpush3.bf16.msra.mxu1 %v2948_v12 }
  0x8a   :  { %2732 = vmatmul.mubr.msk.bf16.vlgmr.msra.gmra.mxu0 %vm827_vm0, %v3264_v9  ;;  %2742 = vmatmul.mubr.msk.bf16.vlgmr.msra.gmra.mxu1 %vm827_vm0, %v3264_v9 }
  0xca   :  { %v865_v13 = vpop.f32.mrf.mxu0  ;;  %v908_v14 = vpop.f32.mrf.mxu1 }
  0xcb   :  { %2949 = vtanh.f32 %v865_v13 }
  0xcc   :  { %2951 = vtanh.f32 %v908_v14  ;;  %v867_v15 = vpop.f32.mrf.mxu0  ;;  %v910_v16 = vpop.f32.mrf.mxu1 }
  0xcd   :  { %2953 = vtanh.f32 %v867_v15 }
  0xce   :  { %2955 = vtanh.f32 %v910_v16  ;;  %v869_v17 = vpop.f32.mrf.mxu0  ;;  %v912_v1 = vpop.f32.mrf.mxu1 }
  0xcf   :  { %2957 = vtanh.f32 %v869_v17 }
  0xd0   :  { %2959 = vtanh.f32 %v912_v1  ;;  %v871_v18 = vpop.f32.mrf.mxu0  ;;  %v914_v19 = vpop.f32.mrf.mxu1 }
  0xd1   :  { %2961 = vtanh.f32 %v871_v18 }
  0xd2   :  { %2963 = vtanh.f32 %v914_v19  ;;  %v951_v20 = vpop.f32.mrf.mxu0  ;;  %v994_v21 = vpop.f32.mrf.mxu1 }
  0xd3   :  { %2965 = vtanh.f32 %v951_v20 }
  0xd4   :  { %2967 = vtanh.f32 %v994_v21  ;;  %v953_v9 = vpop.f32.mrf.mxu0  ;;  %v996_v22 = vpop.f32.mrf.mxu1 }
  0xd5   :  { %2969 = vtanh.f32 %v953_v9 }
  0xd6   :  { %2971 = vtanh.f32 %v996_v22  ;;  %v955_v23 = vpop.f32.mrf.mxu0  ;;  %v998_v24 = vpop.f32.mrf.mxu1 }
  0xd7   :  { %2973 = vtanh.f32 %v955_v23 }
  0xd8   :  { %v2950_v25 = vpop.eup %2949  ;;  %2975 = vtanh.f32 %v998_v24  ;;  %v957_v26 = vpop.f32.mrf.mxu0 }
  0xd9   :  { %v1000_v27 = vpop.f32.mrf.mxu1  ;;  %v2952_v28 = vpop.eup %2951  ;;  %2425 = vst [vmem:[%s4147_s2] sm:$0xff] %v2950_v25  ;;  %2977 = vtanh.f32 %v957_v26 }
  0xda   :  { %v2954_v29 = vpop.eup %2953  ;;  %2427 = vst [vmem:[%s4147_s2 + $0x10] sm:$0xff] %v2952_v28  ;;  %2979 = vtanh.f32 %v1000_v27  ;;  %v1037_v30 = vpop.f32.mrf.mxu0 }
  0xdb   :  { %v1080_v31 = vpop.f32.mrf.mxu1  ;;  %v2956_v32 = vpop.eup %2955  ;;  %2426 = vst [vmem:[%s4147_s2 + $0x8] sm:$0xff] %v2954_v29  ;;  %2981 = vtanh.f32 %v1037_v30 }
  0xdc   :  { %v2958_v33 = vpop.eup %2957  ;;  %2428 = vst [vmem:[%s4147_s2 + $0x18] sm:$0xff] %v2956_v32  ;;  %2983 = vtanh.f32 %v1080_v31  ;;  %v1039_v34 = vpop.f32.mrf.mxu0 }
  0xdd   :  { %v1082_v35 = vpop.f32.mrf.mxu1  ;;  %v2960_v36 = vpop.eup %2959  ;;  %2493 = vst [vmem:[%s4147_s2 + $0x218] sm:$0xf] %v2958_v33  ;;  %2985 = vtanh.f32 %v1039_v34 }
  0xde   :  { %v2962_v37 = vpop.eup %2961  ;;  %2495 = vst [vmem:[%s4147_s2 + $0x228] sm:$0xf] %v2960_v36  ;;  %2987 = vtanh.f32 %v1082_v35  ;;  %v1041_v38 = vpop.f32.mrf.mxu0 }
  0xdf   :  { %v1084_v39 = vpop.f32.mrf.mxu1  ;;  %v2964_v40 = vpop.eup %2963  ;;  %2494 = vst [vmem:[%s4147_s2 + $0x220] sm:$0xf] %v2962_v37  ;;  %2989 = vtanh.f32 %v1041_v38 }
  0xe0   :  { %v2966_v41 = vpop.eup %2965  ;;  %2496 = vst [vmem:[%s4147_s2 + $0x230] sm:$0xf] %v2964_v40  ;;  %2991 = vtanh.f32 %v1084_v39  ;;  %v1043_v42 = vpop.f32.mrf.mxu0 }
  0xe1   :  { %v1086_v43 = vpop.f32.mrf.mxu1  ;;  %v2968_v44 = vpop.eup %2967  ;;  %2429 = vst [vmem:[%s4147_s2 + $0x20] sm:$0xff] %v2966_v41  ;;  %2993 = vtanh.f32 %v1043_v42 }
  0xe2   :  { %v2970_v45 = vpop.eup %2969  ;;  %2431 = vst [vmem:[%s4147_s2 + $0x30] sm:$0xff] %v2968_v44  ;;  %2995 = vtanh.f32 %v1086_v43  ;;  %v1123_v46 = vpop.f32.mrf.mxu0 }
  0xe3   :  { %v1166_v47 = vpop.f32.mrf.mxu1  ;;  %v2972_v48 = vpop.eup %2971  ;;  %2430 = vst [vmem:[%s4147_s2 + $0x28] sm:$0xff] %v2970_v45  ;;  %2997 = vtanh.f32 %v1123_v46 }
  0xe4   :  { %v2974_v49 = vpop.eup %2973  ;;  %2432 = vst [vmem:[%s4147_s2 + $0x38] sm:$0xff] %v2972_v48  ;;  %2999 = vtanh.f32 %v1166_v47  ;;  %v1125_v50 = vpop.f32.mrf.mxu0 }
  0xe5   :  { %v1168_v51 = vpop.f32.mrf.mxu1  ;;  %v2976_v52 = vpop.eup %2975  ;;  %2497 = vst [vmem:[%s4147_s2 + $0x238] sm:$0xf] %v2974_v49  ;;  %3001 = vtanh.f32 %v1125_v50 }
  0xe6   :  { %v2978_v53 = vpop.eup %2977  ;;  %2499 = vst [vmem:[%s4147_s2 + $0x248] sm:$0xf] %v2976_v52  ;;  %3003 = vtanh.f32 %v1168_v51  ;;  %v1127_v54 = vpop.f32.mrf.mxu0 }
  0xe7   :  { %v1170_v55 = vpop.f32.mrf.mxu1  ;;  %v2980_v56 = vpop.eup %2979  ;;  %2498 = vst [vmem:[%s4147_s2 + $0x240] sm:$0xf] %v2978_v53  ;;  %3005 = vtanh.f32 %v1127_v54 }
  0xe8   :  { %v2982_v57 = vpop.eup %2981  ;;  %2500 = vst [vmem:[%s4147_s2 + $0x250] sm:$0xf] %v2980_v56  ;;  %3007 = vtanh.f32 %v1170_v55  ;;  %v1129_v58 = vpop.f32.mrf.mxu0 }
  0xe9   :  { %v1172_v59 = vpop.f32.mrf.mxu1  ;;  %v2984_v60 = vpop.eup %2983  ;;  %2433 = vst [vmem:[%s4147_s2 + $0x40] sm:$0xff] %v2982_v57  ;;  %3009 = vtanh.f32 %v1129_v58 }
  0xea   :  { %v2986_v61 = vpop.eup %2985  ;;  %2435 = vst [vmem:[%s4147_s2 + $0x50] sm:$0xff] %v2984_v60  ;;  %3011 = vtanh.f32 %v1172_v59  ;;  %v1209_v62 = vpop.f32.mrf.mxu0 }
  0xeb   :  { %v1252_v63 = vpop.f32.mrf.mxu1  ;;  %v2988_v0 = vpop.eup %2987  ;;  %2434 = vst [vmem:[%s4147_s2 + $0x48] sm:$0xff] %v2986_v61  ;;  %3013 = vtanh.f32 %v1209_v62 }
  0xec   :  { %v2990_v2 = vpop.eup %2989  ;;  %2436 = vst [vmem:[%s4147_s2 + $0x58] sm:$0xff] %v2988_v0  ;;  %3015 = vtanh.f32 %v1252_v63  ;;  %v1211_v3 = vpop.f32.mrf.mxu0 }
  0xed   :  { %v1254_v4 = vpop.f32.mrf.mxu1  ;;  %v2992_v5 = vpop.eup %2991  ;;  %2501 = vst [vmem:[%s4147_s2 + $0x258] sm:$0xf] %v2990_v2  ;;  %3017 = vtanh.f32 %v1211_v3 }
  0xee   :  { %v2994_v6 = vpop.eup %2993  ;;  %2503 = vst [vmem:[%s4147_s2 + $0x268] sm:$0xf] %v2992_v5  ;;  %3019 = vtanh.f32 %v1254_v4  ;;  %v1213_v7 = vpop.f32.mrf.mxu0 }
  0xef   :  { %v1256_v8 = vpop.f32.mrf.mxu1  ;;  %v2996_v10 = vpop.eup %2995  ;;  %2502 = vst [vmem:[%s4147_s2 + $0x260] sm:$0xf] %v2994_v6  ;;  %3021 = vtanh.f32 %v1213_v7 }
  0xf0   :  { %v2998_v11 = vpop.eup %2997  ;;  %2504 = vst [vmem:[%s4147_s2 + $0x270] sm:$0xf] %v2996_v10  ;;  %3023 = vtanh.f32 %v1256_v8  ;;  %v1215_v12 = vpop.f32.mrf.mxu0 }
  0xf1   :  { %v1258_v13 = vpop.f32.mrf.mxu1  ;;  %v3000_v14 = vpop.eup %2999  ;;  %2437 = vst [vmem:[%s4147_s2 + $0x60] sm:$0xff] %v2998_v11  ;;  %3025 = vtanh.f32 %v1215_v12 }
  0xf2   :  { %v3002_v15 = vpop.eup %3001  ;;  %2439 = vst [vmem:[%s4147_s2 + $0x70] sm:$0xff] %v3000_v14  ;;  %3027 = vtanh.f32 %v1258_v13  ;;  %v1295_v16 = vpop.f32.mrf.mxu0 }
  0xf3   :  { %v1338_v17 = vpop.f32.mrf.mxu1  ;;  %v3004_v1 = vpop.eup %3003  ;;  %2438 = vst [vmem:[%s4147_s2 + $0x68] sm:$0xff] %v3002_v15  ;;  %3029 = vtanh.f32 %v1295_v16 }
  0xf4   :  { %v3006_v18 = vpop.eup %3005  ;;  %2440 = vst [vmem:[%s4147_s2 + $0x78] sm:$0xff] %v3004_v1  ;;  %3031 = vtanh.f32 %v1338_v17  ;;  %v1297_v19 = vpop.f32.mrf.mxu0 }
  0xf5   :  { %v1340_v20 = vpop.f32.mrf.mxu1  ;;  %v3008_v21 = vpop.eup %3007  ;;  %2505 = vst [vmem:[%s4147_s2 + $0x278] sm:$0xf] %v3006_v18  ;;  %3033 = vtanh.f32 %v1297_v19 }
  0xf6   :  { %v3010_v9 = vpop.eup %3009  ;;  %2507 = vst [vmem:[%s4147_s2 + $0x288] sm:$0xf] %v3008_v21  ;;  %3035 = vtanh.f32 %v1340_v20  ;;  %v1299_v22 = vpop.f32.mrf.mxu0 }
  0xf7   :  { %v1342_v23 = vpop.f32.mrf.mxu1  ;;  %v3012_v24 = vpop.eup %3011  ;;  %2506 = vst [vmem:[%s4147_s2 + $0x280] sm:$0xf] %v3010_v9  ;;  %3037 = vtanh.f32 %v1299_v22 }
  0xf8   :  { %v3014_v25 = vpop.eup %3013  ;;  %2508 = vst [vmem:[%s4147_s2 + $0x290] sm:$0xf] %v3012_v24  ;;  %3039 = vtanh.f32 %v1342_v23  ;;  %v1301_v26 = vpop.f32.mrf.mxu0 }
  0xf9   :  { %v1344_v27 = vpop.f32.mrf.mxu1  ;;  %v3016_v28 = vpop.eup %3015  ;;  %2441 = vst [vmem:[%s4147_s2 + $0x80] sm:$0xff] %v3014_v25  ;;  %3041 = vtanh.f32 %v1301_v26 }
  0xfa   :  { %v3018_v29 = vpop.eup %3017  ;;  %2443 = vst [vmem:[%s4147_s2 + $0x90] sm:$0xff] %v3016_v28  ;;  %3043 = vtanh.f32 %v1344_v27  ;;  %v1381_v30 = vpop.f32.mrf.mxu0 }
  0xfb   :  { %v1424_v31 = vpop.f32.mrf.mxu1  ;;  %v3020_v32 = vpop.eup %3019  ;;  %2442 = vst [vmem:[%s4147_s2 + $0x88] sm:$0xff] %v3018_v29  ;;  %3045 = vtanh.f32 %v1381_v30 }
  0xfc   :  { %v3022_v33 = vpop.eup %3021  ;;  %2444 = vst [vmem:[%s4147_s2 + $0x98] sm:$0xff] %v3020_v32  ;;  %3047 = vtanh.f32 %v1424_v31  ;;  %v1383_v34 = vpop.f32.mrf.mxu0 }
  0xfd   :  { %v1426_v35 = vpop.f32.mrf.mxu1  ;;  %v3024_v36 = vpop.eup %3023  ;;  %2509 = vst [vmem:[%s4147_s2 + $0x298] sm:$0xf] %v3022_v33  ;;  %3049 = vtanh.f32 %v1383_v34 }
  0xfe   :  { %v3026_v37 = vpop.eup %3025  ;;  %2511 = vst [vmem:[%s4147_s2 + $0x2a8] sm:$0xf] %v3024_v36  ;;  %3051 = vtanh.f32 %v1426_v35  ;;  %v1385_v38 = vpop.f32.mrf.mxu0 }
  0xff   :  { %v1428_v39 = vpop.f32.mrf.mxu1  ;;  %v3028_v40 = vpop.eup %3027  ;;  %2510 = vst [vmem:[%s4147_s2 + $0x2a0] sm:$0xf] %v3026_v37  ;;  %3053 = vtanh.f32 %v1385_v38 }
 0x100   :  { %v3030_v41 = vpop.eup %3029  ;;  %2512 = vst [vmem:[%s4147_s2 + $0x2b0] sm:$0xf] %v3028_v40  ;;  %3055 = vtanh.f32 %v1428_v39  ;;  %v1387_v42 = vpop.f32.mrf.mxu0 }
 0x101   :  { %v1430_v43 = vpop.f32.mrf.mxu1  ;;  %v3032_v44 = vpop.eup %3031  ;;  %2445 = vst [vmem:[%s4147_s2 + $0xa0] sm:$0xff] %v3030_v41  ;;  %3057 = vtanh.f32 %v1387_v42 }
 0x102   :  { %v3034_v45 = vpop.eup %3033  ;;  %2447 = vst [vmem:[%s4147_s2 + $0xb0] sm:$0xff] %v3032_v44  ;;  %3059 = vtanh.f32 %v1430_v43  ;;  %v1467_v46 = vpop.f32.mrf.mxu0 }
 0x103   :  { %v1510_v47 = vpop.f32.mrf.mxu1  ;;  %v3036_v48 = vpop.eup %3035  ;;  %2446 = vst [vmem:[%s4147_s2 + $0xa8] sm:$0xff] %v3034_v45  ;;  %3061 = vtanh.f32 %v1467_v46 }
 0x104   :  { %v3038_v49 = vpop.eup %3037  ;;  %2448 = vst [vmem:[%s4147_s2 + $0xb8] sm:$0xff] %v3036_v48  ;;  %3063 = vtanh.f32 %v1510_v47  ;;  %v1469_v50 = vpop.f32.mrf.mxu0 }
 0x105   :  { %v1512_v51 = vpop.f32.mrf.mxu1  ;;  %v3040_v52 = vpop.eup %3039  ;;  %2513 = vst [vmem:[%s4147_s2 + $0x2b8] sm:$0xf] %v3038_v49  ;;  %3065 = vtanh.f32 %v1469_v50 }
 0x106   :  { %v3042_v53 = vpop.eup %3041  ;;  %2515 = vst [vmem:[%s4147_s2 + $0x2c8] sm:$0xf] %v3040_v52  ;;  %3067 = vtanh.f32 %v1512_v51  ;;  %v1471_v54 = vpop.f32.mrf.mxu0 }
 0x107   :  { %v1514_v55 = vpop.f32.mrf.mxu1  ;;  %v3044_v56 = vpop.eup %3043  ;;  %2514 = vst [vmem:[%s4147_s2 + $0x2c0] sm:$0xf] %v3042_v53  ;;  %3069 = vtanh.f32 %v1471_v54 }
 0x108   :  { %v3046_v57 = vpop.eup %3045  ;;  %2516 = vst [vmem:[%s4147_s2 + $0x2d0] sm:$0xf] %v3044_v56  ;;  %3071 = vtanh.f32 %v1514_v55  ;;  %v1473_v58 = vpop.f32.mrf.mxu0 }
 0x109   :  { %v1516_v59 = vpop.f32.mrf.mxu1  ;;  %v3048_v60 = vpop.eup %3047  ;;  %2449 = vst [vmem:[%s4147_s2 + $0xc0] sm:$0xff] %v3046_v57  ;;  %3073 = vtanh.f32 %v1473_v58 }
 0x10a   :  { %v3050_v61 = vpop.eup %3049  ;;  %2451 = vst [vmem:[%s4147_s2 + $0xd0] sm:$0xff] %v3048_v60  ;;  %3075 = vtanh.f32 %v1516_v59  ;;  %v1553_v62 = vpop.f32.mrf.mxu0 }
 0x10b   :  { %v1596_v63 = vpop.f32.mrf.mxu1  ;;  %v3052_v0 = vpop.eup %3051  ;;  %2450 = vst [vmem:[%s4147_s2 + $0xc8] sm:$0xff] %v3050_v61  ;;  %3077 = vtanh.f32 %v1553_v62 }
 0x10c   :  { %v3054_v2 = vpop.eup %3053  ;;  %2452 = vst [vmem:[%s4147_s2 + $0xd8] sm:$0xff] %v3052_v0  ;;  %3079 = vtanh.f32 %v1596_v63  ;;  %v1555_v3 = vpop.f32.mrf.mxu0 }
 0x10d   :  { %v1598_v4 = vpop.f32.mrf.mxu1  ;;  %v3056_v5 = vpop.eup %3055  ;;  %2517 = vst [vmem:[%s4147_s2 + $0x2d8] sm:$0xf] %v3054_v2  ;;  %3081 = vtanh.f32 %v1555_v3 }
 0x10e   :  { %v3058_v6 = vpop.eup %3057  ;;  %2519 = vst [vmem:[%s4147_s2 + $0x2e8] sm:$0xf] %v3056_v5  ;;  %3083 = vtanh.f32 %v1598_v4  ;;  %v1557_v7 = vpop.f32.mrf.mxu0 }
 0x10f   :  { %v1600_v8 = vpop.f32.mrf.mxu1  ;;  %v3060_v10 = vpop.eup %3059  ;;  %2518 = vst [vmem:[%s4147_s2 + $0x2e0] sm:$0xf] %v3058_v6  ;;  %3085 = vtanh.f32 %v1557_v7 }
 0x110   :  { %v3062_v11 = vpop.eup %3061  ;;  %2520 = vst [vmem:[%s4147_s2 + $0x2f0] sm:$0xf] %v3060_v10  ;;  %3087 = vtanh.f32 %v1600_v8  ;;  %v1559_v12 = vpop.f32.mrf.mxu0 }
 0x111   :  { %v1602_v13 = vpop.f32.mrf.mxu1  ;;  %v3064_v14 = vpop.eup %3063  ;;  %2453 = vst [vmem:[%s4147_s2 + $0xe0] sm:$0xff] %v3062_v11  ;;  %3089 = vtanh.f32 %v1559_v12 }
 0x112   :  { %v3066_v15 = vpop.eup %3065  ;;  %2455 = vst [vmem:[%s4147_s2 + $0xf0] sm:$0xff] %v3064_v14  ;;  %3091 = vtanh.f32 %v1602_v13  ;;  %v1639_v16 = vpop.f32.mrf.mxu0 }
 0x113   :  { %v1682_v17 = vpop.f32.mrf.mxu1  ;;  %v3068_v1 = vpop.eup %3067  ;;  %2454 = vst [vmem:[%s4147_s2 + $0xe8] sm:$0xff] %v3066_v15  ;;  %3093 = vtanh.f32 %v1639_v16 }
 0x114   :  { %v3070_v18 = vpop.eup %3069  ;;  %2456 = vst [vmem:[%s4147_s2 + $0xf8] sm:$0xff] %v3068_v1  ;;  %3095 = vtanh.f32 %v1682_v17  ;;  %v1641_v19 = vpop.f32.mrf.mxu0 }
 0x115   :  { %v1684_v20 = vpop.f32.mrf.mxu1  ;;  %v3072_v21 = vpop.eup %3071  ;;  %2521 = vst [vmem:[%s4147_s2 + $0x2f8] sm:$0xf] %v3070_v18  ;;  %3097 = vtanh.f32 %v1641_v19 }
 0x116   :  { %v3074_v9 = vpop.eup %3073  ;;  %2523 = vst [vmem:[%s4147_s2 + $0x308] sm:$0xf] %v3072_v21  ;;  %3099 = vtanh.f32 %v1684_v20  ;;  %v1643_v22 = vpop.f32.mrf.mxu0 }
 0x117   :  { %v1686_v23 = vpop.f32.mrf.mxu1  ;;  %v3076_v24 = vpop.eup %3075  ;;  %2522 = vst [vmem:[%s4147_s2 + $0x300] sm:$0xf] %v3074_v9  ;;  %3101 = vtanh.f32 %v1643_v22 }
 0x118   :  { %v3078_v25 = vpop.eup %3077  ;;  %2524 = vst [vmem:[%s4147_s2 + $0x310] sm:$0xf] %v3076_v24  ;;  %3103 = vtanh.f32 %v1686_v23  ;;  %v1645_v26 = vpop.f32.mrf.mxu0 }
 0x119   :  { %v1688_v27 = vpop.f32.mrf.mxu1  ;;  %v3080_v28 = vpop.eup %3079  ;;  %2457 = vst [vmem:[%s4147_s2 + $0x100] sm:$0xff] %v3078_v25  ;;  %3105 = vtanh.f32 %v1645_v26 }
 0x11a   :  { %v3082_v29 = vpop.eup %3081  ;;  %2459 = vst [vmem:[%s4147_s2 + $0x110] sm:$0xff] %v3080_v28  ;;  %3107 = vtanh.f32 %v1688_v27  ;;  %v1725_v30 = vpop.f32.mrf.mxu0 }
 0x11b   :  { %v1768_v31 = vpop.f32.mrf.mxu1  ;;  %v3084_v32 = vpop.eup %3083  ;;  %2458 = vst [vmem:[%s4147_s2 + $0x108] sm:$0xff] %v3082_v29  ;;  %3109 = vtanh.f32 %v1725_v30 }
 0x11c   :  { %v3086_v33 = vpop.eup %3085  ;;  %2460 = vst [vmem:[%s4147_s2 + $0x118] sm:$0xff] %v3084_v32  ;;  %3111 = vtanh.f32 %v1768_v31  ;;  %v1727_v34 = vpop.f32.mrf.mxu0 }
 0x11d   :  { %v1770_v35 = vpop.f32.mrf.mxu1  ;;  %v3088_v36 = vpop.eup %3087  ;;  %2525 = vst [vmem:[%s4147_s2 + $0x318] sm:$0xf] %v3086_v33  ;;  %3113 = vtanh.f32 %v1727_v34 }
 0x11e   :  { %v3090_v37 = vpop.eup %3089  ;;  %2527 = vst [vmem:[%s4147_s2 + $0x328] sm:$0xf] %v3088_v36  ;;  %3115 = vtanh.f32 %v1770_v35  ;;  %v1729_v38 = vpop.f32.mrf.mxu0 }
 0x11f   :  { %v1772_v39 = vpop.f32.mrf.mxu1  ;;  %v3092_v40 = vpop.eup %3091  ;;  %2526 = vst [vmem:[%s4147_s2 + $0x320] sm:$0xf] %v3090_v37  ;;  %3117 = vtanh.f32 %v1729_v38 }
 0x120   :  { %v3094_v41 = vpop.eup %3093  ;;  %2528 = vst [vmem:[%s4147_s2 + $0x330] sm:$0xf] %v3092_v40  ;;  %3119 = vtanh.f32 %v1772_v39  ;;  %v1731_v42 = vpop.f32.mrf.mxu0 }
 0x121   :  { %v1774_v43 = vpop.f32.mrf.mxu1  ;;  %v3096_v44 = vpop.eup %3095  ;;  %2461 = vst [vmem:[%s4147_s2 + $0x120] sm:$0xff] %v3094_v41  ;;  %3121 = vtanh.f32 %v1731_v42 }
 0x122   :  { %v3098_v45 = vpop.eup %3097  ;;  %2463 = vst [vmem:[%s4147_s2 + $0x130] sm:$0xff] %v3096_v44  ;;  %3123 = vtanh.f32 %v1774_v43  ;;  %v1811_v46 = vpop.f32.mrf.mxu0 }
 0x123   :  { %v1854_v47 = vpop.f32.mrf.mxu1  ;;  %v3100_v48 = vpop.eup %3099  ;;  %2462 = vst [vmem:[%s4147_s2 + $0x128] sm:$0xff] %v3098_v45  ;;  %3125 = vtanh.f32 %v1811_v46 }
 0x124   :  { %v3102_v49 = vpop.eup %3101  ;;  %2464 = vst [vmem:[%s4147_s2 + $0x138] sm:$0xff] %v3100_v48  ;;  %3127 = vtanh.f32 %v1854_v47  ;;  %v1813_v50 = vpop.f32.mrf.mxu0 }
 0x125   :  { %v1856_v51 = vpop.f32.mrf.mxu1  ;;  %v3104_v52 = vpop.eup %3103  ;;  %2529 = vst [vmem:[%s4147_s2 + $0x338] sm:$0xf] %v3102_v49  ;;  %3129 = vtanh.f32 %v1813_v50 }
 0x126   :  { %v3106_v53 = vpop.eup %3105  ;;  %2531 = vst [vmem:[%s4147_s2 + $0x348] sm:$0xf] %v3104_v52  ;;  %3131 = vtanh.f32 %v1856_v51  ;;  %v1815_v54 = vpop.f32.mrf.mxu0 }
 0x127   :  { %v1858_v55 = vpop.f32.mrf.mxu1  ;;  %v3108_v56 = vpop.eup %3107  ;;  %2530 = vst [vmem:[%s4147_s2 + $0x340] sm:$0xf] %v3106_v53  ;;  %3133 = vtanh.f32 %v1815_v54 }
 0x128   :  { %v3110_v57 = vpop.eup %3109  ;;  %2532 = vst [vmem:[%s4147_s2 + $0x350] sm:$0xf] %v3108_v56  ;;  %3135 = vtanh.f32 %v1858_v55  ;;  %v1817_v58 = vpop.f32.mrf.mxu0 }
 0x129   :  { %v1860_v59 = vpop.f32.mrf.mxu1  ;;  %v3112_v60 = vpop.eup %3111  ;;  %2465 = vst [vmem:[%s4147_s2 + $0x140] sm:$0xff] %v3110_v57  ;;  %3137 = vtanh.f32 %v1817_v58 }
 0x12a   :  { %v3114_v61 = vpop.eup %3113  ;;  %2467 = vst [vmem:[%s4147_s2 + $0x150] sm:$0xff] %v3112_v60  ;;  %3139 = vtanh.f32 %v1860_v59  ;;  %v1897_v62 = vpop.f32.mrf.mxu0 }
 0x12b   :  { %v1940_v63 = vpop.f32.mrf.mxu1  ;;  %v3116_v0 = vpop.eup %3115  ;;  %2466 = vst [vmem:[%s4147_s2 + $0x148] sm:$0xff] %v3114_v61  ;;  %3141 = vtanh.f32 %v1897_v62 }
 0x12c   :  { %v3118_v2 = vpop.eup %3117  ;;  %2468 = vst [vmem:[%s4147_s2 + $0x158] sm:$0xff] %v3116_v0  ;;  %3143 = vtanh.f32 %v1940_v63  ;;  %v1899_v3 = vpop.f32.mrf.mxu0 }
 0x12d   :  { %v1942_v4 = vpop.f32.mrf.mxu1  ;;  %v3120_v5 = vpop.eup %3119  ;;  %2533 = vst [vmem:[%s4147_s2 + $0x358] sm:$0xf] %v3118_v2  ;;  %3145 = vtanh.f32 %v1899_v3 }
 0x12e   :  { %v3122_v6 = vpop.eup %3121  ;;  %2535 = vst [vmem:[%s4147_s2 + $0x368] sm:$0xf] %v3120_v5  ;;  %3147 = vtanh.f32 %v1942_v4  ;;  %v1901_v7 = vpop.f32.mrf.mxu0 }
 0x12f   :  { %v1944_v8 = vpop.f32.mrf.mxu1  ;;  %v3124_v10 = vpop.eup %3123  ;;  %2534 = vst [vmem:[%s4147_s2 + $0x360] sm:$0xf] %v3122_v6  ;;  %3149 = vtanh.f32 %v1901_v7 }
 0x130   :  { %v3126_v11 = vpop.eup %3125  ;;  %2536 = vst [vmem:[%s4147_s2 + $0x370] sm:$0xf] %v3124_v10  ;;  %3151 = vtanh.f32 %v1944_v8  ;;  %v1903_v12 = vpop.f32.mrf.mxu0 }
 0x131   :  { %v1946_v13 = vpop.f32.mrf.mxu1  ;;  %v3128_v14 = vpop.eup %3127  ;;  %2469 = vst [vmem:[%s4147_s2 + $0x160] sm:$0xff] %v3126_v11  ;;  %3153 = vtanh.f32 %v1903_v12 }
 0x132   :  { %v3130_v15 = vpop.eup %3129  ;;  %2471 = vst [vmem:[%s4147_s2 + $0x170] sm:$0xff] %v3128_v14  ;;  %3155 = vtanh.f32 %v1946_v13  ;;  %v1983_v16 = vpop.f32.mrf.mxu0 }
 0x133   :  { %v2026_v17 = vpop.f32.mrf.mxu1  ;;  %v3132_v1 = vpop.eup %3131  ;;  %2470 = vst [vmem:[%s4147_s2 + $0x168] sm:$0xff] %v3130_v15  ;;  %3157 = vtanh.f32 %v1983_v16 }
 0x134   :  { %v3134_v18 = vpop.eup %3133  ;;  %2472 = vst [vmem:[%s4147_s2 + $0x178] sm:$0xff] %v3132_v1  ;;  %3159 = vtanh.f32 %v2026_v17  ;;  %v1985_v19 = vpop.f32.mrf.mxu0 }
 0x135   :  { %v2028_v20 = vpop.f32.mrf.mxu1  ;;  %v3136_v21 = vpop.eup %3135  ;;  %2537 = vst [vmem:[%s4147_s2 + $0x378] sm:$0xf] %v3134_v18  ;;  %3161 = vtanh.f32 %v1985_v19 }
 0x136   :  { %v3138_v9 = vpop.eup %3137  ;;  %2539 = vst [vmem:[%s4147_s2 + $0x388] sm:$0xf] %v3136_v21  ;;  %3163 = vtanh.f32 %v2028_v20  ;;  %v1987_v22 = vpop.f32.mrf.mxu0 }
 0x137   :  { %v2030_v23 = vpop.f32.mrf.mxu1  ;;  %v3140_v24 = vpop.eup %3139  ;;  %2538 = vst [vmem:[%s4147_s2 + $0x380] sm:$0xf] %v3138_v9  ;;  %3165 = vtanh.f32 %v1987_v22 }
 0x138   :  { %v3142_v25 = vpop.eup %3141  ;;  %2540 = vst [vmem:[%s4147_s2 + $0x390] sm:$0xf] %v3140_v24  ;;  %3167 = vtanh.f32 %v2030_v23  ;;  %v1989_v26 = vpop.f32.mrf.mxu0 }
 0x139   :  { %v2032_v27 = vpop.f32.mrf.mxu1  ;;  %v3144_v28 = vpop.eup %3143  ;;  %2473 = vst [vmem:[%s4147_s2 + $0x180] sm:$0xff] %v3142_v25  ;;  %3169 = vtanh.f32 %v1989_v26 }
 0x13a   :  { %v3146_v29 = vpop.eup %3145  ;;  %2475 = vst [vmem:[%s4147_s2 + $0x190] sm:$0xff] %v3144_v28  ;;  %3171 = vtanh.f32 %v2032_v27  ;;  %v2069_v30 = vpop.f32.mrf.mxu0 }
 0x13b   :  { %v2112_v31 = vpop.f32.mrf.mxu1  ;;  %v3148_v32 = vpop.eup %3147  ;;  %2474 = vst [vmem:[%s4147_s2 + $0x188] sm:$0xff] %v3146_v29  ;;  %3173 = vtanh.f32 %v2069_v30 }
 0x13c   :  { %v3150_v33 = vpop.eup %3149  ;;  %2476 = vst [vmem:[%s4147_s2 + $0x198] sm:$0xff] %v3148_v32  ;;  %3175 = vtanh.f32 %v2112_v31  ;;  %v2071_v34 = vpop.f32.mrf.mxu0 }
 0x13d   :  { %v2114_v35 = vpop.f32.mrf.mxu1  ;;  %v3152_v36 = vpop.eup %3151  ;;  %2541 = vst [vmem:[%s4147_s2 + $0x398] sm:$0xf] %v3150_v33  ;;  %3177 = vtanh.f32 %v2071_v34 }
 0x13e   :  { %v3154_v37 = vpop.eup %3153  ;;  %2543 = vst [vmem:[%s4147_s2 + $0x3a8] sm:$0xf] %v3152_v36  ;;  %3179 = vtanh.f32 %v2114_v35  ;;  %v2073_v38 = vpop.f32.mrf.mxu0 }
 0x13f   :  { %v2116_v39 = vpop.f32.mrf.mxu1  ;;  %v3156_v40 = vpop.eup %3155  ;;  %2542 = vst [vmem:[%s4147_s2 + $0x3a0] sm:$0xf] %v3154_v37  ;;  %3181 = vtanh.f32 %v2073_v38 }
 0x140   :  { %v3158_v41 = vpop.eup %3157  ;;  %2544 = vst [vmem:[%s4147_s2 + $0x3b0] sm:$0xf] %v3156_v40  ;;  %3183 = vtanh.f32 %v2116_v39  ;;  %v2075_v42 = vpop.f32.mrf.mxu0 }
 0x141   :  { %v2118_v43 = vpop.f32.mrf.mxu1  ;;  %v3160_v44 = vpop.eup %3159  ;;  %2477 = vst [vmem:[%s4147_s2 + $0x1a0] sm:$0xff] %v3158_v41  ;;  %3185 = vtanh.f32 %v2075_v42 }
 0x142   :  { %v3162_v45 = vpop.eup %3161  ;;  %2479 = vst [vmem:[%s4147_s2 + $0x1b0] sm:$0xff] %v3160_v44  ;;  %3187 = vtanh.f32 %v2118_v43  ;;  %v2155_v46 = vpop.f32.mrf.mxu0 }
 0x143   :  { %v2198_v47 = vpop.f32.mrf.mxu1  ;;  %v3164_v48 = vpop.eup %3163  ;;  %2478 = vst [vmem:[%s4147_s2 + $0x1a8] sm:$0xff] %v3162_v45  ;;  %3189 = vtanh.f32 %v2155_v46 }
 0x144   :  { %v3166_v49 = vpop.eup %3165  ;;  %2480 = vst [vmem:[%s4147_s2 + $0x1b8] sm:$0xff] %v3164_v48  ;;  %3191 = vtanh.f32 %v2198_v47  ;;  %v2157_v50 = vpop.f32.mrf.mxu0 }
 0x145   :  { %v2200_v51 = vpop.f32.mrf.mxu1  ;;  %v3168_v52 = vpop.eup %3167  ;;  %2545 = vst [vmem:[%s4147_s2 + $0x3b8] sm:$0xf] %v3166_v49  ;;  %3193 = vtanh.f32 %v2157_v50 }
 0x146   :  { %v3170_v53 = vpop.eup %3169  ;;  %2547 = vst [vmem:[%s4147_s2 + $0x3c8] sm:$0xf] %v3168_v52  ;;  %3195 = vtanh.f32 %v2200_v51  ;;  %v2159_v54 = vpop.f32.mrf.mxu0 }
 0x147   :  { %v2202_v55 = vpop.f32.mrf.mxu1  ;;  %v3172_v56 = vpop.eup %3171  ;;  %2546 = vst [vmem:[%s4147_s2 + $0x3c0] sm:$0xf] %v3170_v53  ;;  %3197 = vtanh.f32 %v2159_v54 }
 0x148   :  { %v3174_v57 = vpop.eup %3173  ;;  %2548 = vst [vmem:[%s4147_s2 + $0x3d0] sm:$0xf] %v3172_v56  ;;  %3199 = vtanh.f32 %v2202_v55  ;;  %v2161_v58 = vpop.f32.mrf.mxu0 }
 0x149   :  { %v2204_v59 = vpop.f32.mrf.mxu1  ;;  %v3176_v60 = vpop.eup %3175  ;;  %2481 = vst [vmem:[%s4147_s2 + $0x1c0] sm:$0xff] %v3174_v57  ;;  %3201 = vtanh.f32 %v2161_v58 }
 0x14a   :  { %v3178_v61 = vpop.eup %3177  ;;  %2483 = vst [vmem:[%s4147_s2 + $0x1d0] sm:$0xff] %v3176_v60  ;;  %3203 = vtanh.f32 %v2204_v59  ;;  %v2241_v62 = vpop.f32.mrf.mxu0 }
 0x14b   :  { %v2284_v63 = vpop.f32.mrf.mxu1  ;;  %v3180_v0 = vpop.eup %3179  ;;  %2482 = vst [vmem:[%s4147_s2 + $0x1c8] sm:$0xff] %v3178_v61  ;;  %3205 = vtanh.f32 %v2241_v62 }
 0x14c   :  { %v3182_v2 = vpop.eup %3181  ;;  %2484 = vst [vmem:[%s4147_s2 + $0x1d8] sm:$0xff] %v3180_v0  ;;  %3207 = vtanh.f32 %v2284_v63  ;;  %v2243_v3 = vpop.f32.mrf.mxu0 }
 0x14d   :  { %v2743_v4 = vpop.f32.mrf.mxu1  ;;  %v3184_v5 = vpop.eup %3183  ;;  %2549 = vst [vmem:[%s4147_s2 + $0x3d8] sm:$0xf] %v3182_v2  ;;  %3209 = vtanh.f32 %v2243_v3 }
 0x14e   :  { %v3186_v6 = vpop.eup %3185  ;;  %2551 = vst [vmem:[%s4147_s2 + $0x3e8] sm:$0xf] %v3184_v5  ;;  %v2245_v7 = vpop.f32.mrf.mxu0 }
 0x14f   :  { %v2287_v8 = vpop.f32.mrf.mxu1  ;;  %v3188_v10 = vpop.eup %3187  ;;  %2550 = vst [vmem:[%s4147_s2 + $0x3e0] sm:$0xf] %v3186_v6  ;;  %3211 = vtanh.f32 %v2245_v7 }
 0x150   :  { %v3190_v11 = vpop.eup %3189  ;;  %2552 = vst [vmem:[%s4147_s2 + $0x3f0] sm:$0xf] %v3188_v10  ;;  %3213 = vtanh.f32 %v2287_v8  ;;  %v2247_v12 = vpop.f32.mrf.mxu0 }
 0x151   :  { %v2744_v13 = vpop.f32.mrf.mxu1  ;;  %v3192_v14 = vpop.eup %3191  ;;  %2485 = vst [vmem:[%s4147_s2 + $0x1e0] sm:$0xff] %v3190_v11  ;;  %3215 = vtanh.f32 %v2247_v12 }
 0x152   :  { %v3194_v15 = vpop.eup %3193  ;;  %2487 = vst [vmem:[%s4147_s2 + $0x1f0] sm:$0xff] %v3192_v14 }
 0x153   :  { %v3196_v16 = vpop.eup %3195  ;;  %2486 = vst [vmem:[%s4147_s2 + $0x1e8] sm:$0xff] %v3194_v15 }
 0x154   :  { %v3198_v17 = vpop.eup %3197  ;;  %2488 = vst [vmem:[%s4147_s2 + $0x1f8] sm:$0xff] %v3196_v16 }
 0x155   :  { %v3200_v1 = vpop.eup %3199  ;;  %2553 = vst [vmem:[%s4147_s2 + $0x3f8] sm:$0xf] %v3198_v17 }
 0x156   :  { %v3202_v18 = vpop.eup %3201  ;;  %2555 = vst [vmem:[%s4147_s2 + $0x408] sm:$0xf] %v3200_v1 }
 0x157   :  { %v3204_v19 = vpop.eup %3203  ;;  %2554 = vst [vmem:[%s4147_s2 + $0x400] sm:$0xf] %v3202_v18 }
 0x158   :  { %v3206_v20 = vpop.eup %3205  ;;  %2556 = vst [vmem:[%s4147_s2 + $0x410] sm:$0xf] %v3204_v19 }
 0x159   :  { %v3208_v21 = vpop.eup %3207  ;;  %2489 = vst [vmem:[%s4147_s2 + $0x200] sm:$0xff] %v3206_v20 }
 0x15a   :  { %v3210_v9 = vpop.eup %3209  ;;  %2492 = vst.msk [vmem:[%s4147_s2 + $0x210] sm:$0xff] %vm2491_vm2, %v3208_v21 }
 0x15b   :  { %2490 = vst [vmem:[%s4147_s2 + $0x208] sm:$0xff] %v3210_v9 }
 0x15c   :  { %v3212_v22 = vpop.eup %3211 }
 0x15d   :  { %v3214_v23 = vpop.eup %3213  ;;  %2557 = vst [vmem:[%s4147_s2 + $0x418] sm:$0xf] %v3212_v22 }
 0x15e   :  { %v3216_v24 = vpop.eup %3215  ;;  %2560 = vst.msk [vmem:[%s4147_s2 + $0x428] sm:$0xf] %vm2559_vm3, %v3214_v23 }
 0x15f   :  { %2558 = vst [vmem:[%s4147_s2 + $0x420] sm:$0xf] %v3216_v24 }

</bundles_post_ra>
